<compile_context>
chip_gen: v6e
topology: v6e:2x2x1
jax: 0.10.0
libtpu: 0.0.40
codegen_flags: <defaults>
</compile_context>

<pallas_src>
import functools
import math

import numpy as np
import jax
import jax.numpy as jnp
from jax import lax
from jax.experimental import pallas as pl
from jax.experimental.pallas import tpu as pltpu


# ----------------------------- in-kernel helpers ----------------------------

def _depthwise_wmask(x, wm_ref, b_ref, *, W, ksize, relu):
    """Stride-1 'same' depthwise conv on a lane-dense (C, B*HW) slab.

    wm_ref : (k*k, C, B*HW)  per-tap weight with BN scale AND the zero-padding /
             image-boundary mask already folded in  -> one FMA per tap on the VPU.
    b_ref  : (C, 1)          folded BN bias.
    Taps are fetched with pltpu.roll along the flattened lane axis; cross-image /
    out-of-bounds wraps land on positions whose folded weight is exactly 0.
    """
    C, L = x.shape
    pad = ksize // 2
    acc = None
    for kh in range(ksize):
        for kw in range(ksize):
            t = kh * ksize + kw
            src_off = (kh - pad) * W + (kw - pad)      # tap reads x[:, i + src_off]
            tap = x if src_off == 0 else pltpu.roll(x, shift=(-src_off) % L, axis=1)
            term = tap * wm_ref[t]
            acc = term if acc is None else acc + term
    y = acc + b_ref[...]
    return jnp.maximum(y, 0.0) if relu else y


# --------------------------------- fused kernel ------------------------------

def _fused_ghost_mbconv_kernel(*refs, W, ksize, B, has_ghost1, has_se,
                               use_shortcut, shortcut_is_ghost):
    refs = list(refs)
    h_scr = refs.pop() if has_ghost1 else None          # VMEM scratch (exp_ch, L)
    o_ref = refs.pop()                                   # output      (out_ch, L)
    it = iter(refs)
    x_ref = next(it)

    if has_ghost1:
        g1_pw_w, g1_pw_b, g1_dw_wm, g1_dw_b, g1bn_s, g1bn_b = [next(it) for _ in range(6)]
    dw_wm, dw_b = next(it), next(it)
    if has_se:
        se_w1, se_b1, se_w2, se_b2 = [next(it) for _ in range(4)]
        if B > 1:
            se_pool, se_bcast = next(it), next(it)
    g2_pw_w, g2_pw_b, g2_dw_wm, g2_dw_b, g2bn_s, g2bn_b = [next(it) for _ in range(6)]
    if use_shortcut and shortcut_is_ghost:
        sc_pw_w, sc_pw_b, sc_dw_wm, sc_dw_b = [next(it) for _ in range(4)]

    x = x_ref[...]
    x_bf = x.astype(jnp.bfloat16)        # single MXU-feed cast, reused by shortcut

    # ---- ghost1: 1x1 conv->BN->ReLU, cheap 3x3 dw->BN->ReLU, ghost1_bn + ReLU.
    if has_ghost1:
        h1 = jnp.dot(g1_pw_w[...], x_bf, preferred_element_type=jnp.float32)
        h1 = jnp.maximum(h1 + g1_pw_b[...], 0.0)
        h2 = _depthwise_wmask(h1, g1_dw_wm, g1_dw_b, W=W, ksize=3, relu=True)
        c1 = h1.shape[0]
        # "concat" written straight into the VMEM scratch; ghost1_bn affine + ReLU
        # applied per half as an epilogue (c1 % 8 == 0 -> sublane-aligned writes).
        h_scr[:c1, :] = jnp.maximum(h1 * g1bn_s[:c1, :] + g1bn_b[:c1, :], 0.0)
        h_scr[c1:, :] = jnp.maximum(h2 * g1bn_s[c1:, :] + g1bn_b[c1:, :], 0.0)
        h = h_scr[...]
    else:
        h = x

    # ---- KxK depthwise + folded BN + ReLU (mask/scale pre-folded into dw_wm).
    h = _depthwise_wmask(h, dw_wm, dw_b, W=W, ksize=ksize, relu=True)

    # ---- SE fused: per-image GAP -> fc1 -> ReLU -> fc2 -> sigmoid -> scale.
    if has_se:
        if B > 1:
            pooled = jnp.dot(h, se_pool[...], preferred_element_type=jnp.float32)   # (C, B)
        else:
            pooled = jnp.mean(h, axis=1, keepdims=True)                             # (C, 1)
        z = jnp.maximum(jnp.dot(se_w1[...], pooled,
                                preferred_element_type=jnp.float32) + se_b1[...], 0.0)
        s = jax.nn.sigmoid(jnp.dot(se_w2[...], z,
                                   preferred_element_type=jnp.float32) + se_b2[...])
        if B > 1:
            s = jnp.dot(s, se_bcast[...], preferred_element_type=jnp.float32)       # (C, L)
        h = h * s

    # ---- ghost2 + ghost2_bn (affine epilogue, no ReLU).
    h_bf = h.astype(jnp.bfloat16)
    y1 = jnp.dot(g2_pw_w[...], h_bf, preferred_element_type=jnp.float32)
    y1 = jnp.maximum(y1 + g2_pw_b[...], 0.0)
    y2 = _depthwise_wmask(y1, g2_dw_wm, g2_dw_b, W=W, ksize=3, relu=True)
    c2 = y1.shape[0]
    y1 = y1 * g2bn_s[:c2, :] + g2bn_b[:c2, :]
    y2 = y2 * g2bn_s[c2:, :] + g2bn_b[c2:, :]

    # ---- shortcut GhostModule / identity + residual add.
    if use_shortcut:
        if shortcut_is_ghost:
            s1 = jnp.dot(sc_pw_w[...], x_bf, preferred_element_type=jnp.float32)
            s1 = jnp.maximum(s1 + sc_pw_b[...], 0.0)
            s2 = _depthwise_wmask(s1, sc_dw_wm, sc_dw_b, W=W, ksize=3, relu=True)
        else:                       # identity shortcut (in_ch == out_ch)
            s1, s2 = x[:c2, :], x[c2:, :]
        # TODO(synk): StochasticDepth (survival < 1) skipped; inference / survival=1.
        y1 = y1 + s1
        y2 = y2 + s2

    o_ref[:c2, :] = y1.astype(o_ref.dtype)
    o_ref[c2:, :] = y2.astype(o_ref.dtype)


# ----------------------------- pallas_call wrapper ----------------------------

def _full_spec(shape):
    zeros = (0,) * len(shape)
    return pl.BlockSpec(tuple(shape), lambda *_: zeros)


def ghost_mbconv_forward(x_nchw, KP):
    """Forward pass. NCHW at the API boundary; (C, N*H*W) lane-dense inside."""
    N, Cin, H, W = x_nchw.shape
    assert (H, W) == (KP['H'], KP['W']) and Cin == KP['in_ch']
    # TODO(synk): stride==2 path (AvgPool2d ceil_mode shortcut + strided depthwise)
    # not implemented; demo config uses stride=1.
    assert KP['stride'] == 1
    HW = H * W
    B = KP['images_per_step']
    assert N % B == 0
    L = B * HW
    out_ch, exp_ch = KP['out_ch'], KP['exp_ch']

    # One boundary transpose so every in-kernel activation is a lane-dense (C, lanes)
    # slab and the 1x1 convs see an MXU N-dimension of B*HW.
    x2 = jnp.transpose(x_nchw.reshape(N, Cin, HW), (1, 0, 2)).reshape(Cin, N * HW)

    has_ghost1 = KP['expand_ratio'] != 1
    has_se = KP.get('se') is not None
    use_shortcut = bool(KP['use_shortcut'])
    shortcut_is_ghost = 'shortcut' in KP

    # TODO(synk): if the activation DMA becomes exposed at production resolutions,
    # set pipeline_mode=pl.Buffered(3) on this (streaming) input only.
    args = [x2]
    in_specs = [pl.BlockSpec((Cin, L), lambda i: (0, i))]

    def add_full(*ts):
        for t in ts:
            args.append(t)
            in_specs.append(_full_spec(t.shape))

    if has_ghost1:
        g1 = KP['ghost1']
        add_full(g1['pw_w'], g1['pw_b'], g1['dw_wm'], g1['dw_b'],
                 KP['g1bn_s'], KP['g1bn_b'])
    add_full(KP['dw_wm'], KP['dw_b'])
    if has_se:
        add_full(*KP['se'])
        if B > 1:
            add_full(KP['se_pool'], KP['se_bcast'])
    g2 = KP['ghost2']
    add_full(g2['pw_w'], g2['pw_b'], g2['dw_wm'], g2['dw_b'],
             KP['g2bn_s'], KP['g2bn_b'])
    if use_shortcut and shortcut_is_ghost:
        sc = KP['shortcut']
        add_full(sc['pw_w'], sc['pw_b'], sc['dw_wm'], sc['dw_b'])

    out_spec = pl.BlockSpec((out_ch, L), lambda i: (0, i))
    scratch = [pltpu.VMEM((exp_ch, L), jnp.float32)] if has_ghost1 else []

    # Explicit VMEM budget (v7x: 64 MiB physical / 32 MiB default scoped).
    act_bytes = (Cin + out_ch) * L * 4
    wt_bytes = sum(int(np.prod(a.shape)) * a.dtype.itemsize for a in args[1:])
    scr_bytes = exp_ch * L * 4 if has_ghost1 else 0
    vmem_limit = int(min(48 << 20,
                         max(16 << 20, 2 * (act_bytes + wt_bytes) + scr_bytes + (4 << 20))))

    kernel = functools.partial(
        _fused_ghost_mbconv_kernel, W=W, ksize=KP['ksize'], B=B,
        has_ghost1=has_ghost1, has_se=has_se, use_shortcut=use_shortcut,
        shortcut_is_ghost=shortcut_is_ghost)

    out2 = pl.pallas_call(
        kernel,
        out_shape=jax.ShapeDtypeStruct((out_ch, N * HW), jnp.float32),
        grid=(N // B,),
        in_specs=in_specs,
        out_specs=out_spec,
        scratch_shapes=scratch,
        compiler_params=pltpu.CompilerParams(
            dimension_semantics=("parallel",),
            vmem_limit_bytes=vmem_limit),
    )(*args)

    return jnp.transpose(out2.reshape(out_ch, N, HW), (1, 0, 2)).reshape(N, out_ch, H, W)


# ------------------------------ module plumbing ------------------------------

def round_filter(filters, divisor=8):
    new = max(divisor, int(filters + divisor / 2) // divisor * divisor)
    if new < 0.9 * filters:
        new += divisor
    return int(new)


def choose_images_per_step(N, HW, n_channels, vmem_budget_bytes=8 << 20):
    """Images per grid step: keeps >= 2 parallel steps (v7x megacore), keeps the
    double-buffered per-step activation block small, and divides N."""
    per_img = 2 * n_channels * HW * 4
    cap = max(1, int(vmem_budget_bytes // max(per_img, 1)))
    B = max(1, min(N // 2, cap)) if N >= 2 else 1
    while N % B:
        B -= 1
    return B


def _rand_bn(key, C):
    k1, k2, k3, k4 = jax.random.split(key, 4)
    return dict(gamma=jax.random.uniform(k1, (C,), jnp.float32, 0.5, 1.5),
                beta=jax.random.normal(k2, (C,), jnp.float32) * 0.1,
                mean=jax.random.normal(k3, (C,), jnp.float32) * 0.1,
                var=jax.random.uniform(k4, (C,), jnp.float32, 0.5, 1.5))


def _bn_scale_bias(bn, eps):
    s = bn['gamma'] / jnp.sqrt(bn['var'] + eps)
    b = bn['beta'] - bn['mean'] * s
    return s, b


def make_dw_masks(H, W, ksize):
    """{0,1} validity mask per tap for a stride-1 'same' depthwise conv, (k*k, H*W)."""
    pad = ksize // 2
    r = np.arange(H * W) // W
    c = np.arange(H * W) % W
    m = np.zeros((ksize * ksize, H * W), np.float32)
    for kh in range(ksize):
        for kw in range(ksize):
            dh, dw = kh - pad, kw - pad
            ok = (r + dh >= 0) & (r + dh < H) & (c + dw >= 0) & (c + dw < W)
            m[kh * ksize + kw] = ok.astype(np.float32)
    return m


def _fold_dw_wmask(w_ckk, scale_c, mask_tiled):
    """(C,k,k) depthwise weight -> (k*k, C, B*HW) with BN scale AND tap mask folded."""
    C, k, _ = w_ckk.shape
    w = (w_ckk * scale_c[:, None, None]).reshape(C, k * k).transpose(1, 0)   # (k*k, C)
    return w[:, :, None] * jnp.asarray(mask_tiled)[:, None, :]               # (k*k, C, L)


def make_ghost_raw(key, inp, oup, ratio=2):
    init_ch = int(math.ceil(oup / ratio))
    new_ch = init_ch * (ratio - 1)
    k1, k2, k3, k4 = jax.random.split(key, 4)
    return dict(inp=inp, oup=oup, init_ch=init_ch, new_ch=new_ch,
                pw_w=jax.random.normal(k1, (init_ch, inp), jnp.float32) * 0.1,
                pw_bn=_rand_bn(k2, init_ch),
                dw_w=jax.random.normal(k3, (new_ch, 3, 3), jnp.float32) * 0.1,
                dw_bn=_rand_bn(k4, new_ch))


def prep_ghost(gp, eps, mask3_tiled):
    # TODO(synk): odd oup (GhostModule output slice [..., :oup]) not supported;
    # all channel counts in this block are even.
    assert gp['oup'] == 2 * gp['init_ch']
    assert gp['init_ch'] % 8 == 0, "sublane-aligned split writes require init_ch % 8 == 0"
    s_pw, b_pw = _bn_scale_bias(gp['pw_bn'], eps)
    s_dw, b_dw = _bn_scale_bias(gp['dw_bn'], eps)
    return dict(pw_w=(gp['pw_w'] * s_pw[:, None]).astype(jnp.bfloat16),  # pre-cast MXU feed
                pw_b=b_pw[:, None],
                dw_wm=_fold_dw_wmask(gp['dw_w'], s_dw, mask3_tiled),
                dw_b=b_dw[:, None])


def make_params(key, in_ch=8, out_ch=16, ksize=3, expand_ratio=6, stride=1,
                se_ratio=4, eps=1e-5):
    exp_ch = round_filter(in_ch * expand_ratio)
    keys = jax.random.split(key, 11)
    P = dict(in_ch=in_ch, out_ch=out_ch, ksize=ksize, expand_ratio=expand_ratio,
             stride=stride, se_ratio=se_ratio, eps=eps, exp_ch=exp_ch,
             use_shortcut=True)
    if in_ch != out_ch:
        P['shortcut'] = make_ghost_raw(keys[0], in_ch, out_ch)
    if expand_ratio != 1:
        P['ghost1'] = make_ghost_raw(keys[1], in_ch, exp_ch)
        P['ghost1_bn'] = _rand_bn(keys[2], exp_ch)
    P['dw_w'] = jax.random.normal(keys[3], (exp_ch, ksize, ksize), jnp.float32) * 0.1
    P['dw_bn'] = _rand_bn(keys[4], exp_ch)
    if se_ratio is not None:
        cs = max(1, in_ch // se_ratio)
        P['se_w1'] = jax.random.normal(keys[5], (cs, exp_ch), jnp.float32) * 0.1
        P['se_b1'] = jax.random.normal(keys[6], (cs,), jnp.float32) * 0.1
        P['se_w2'] = jax.random.normal(keys[7], (exp_ch, cs), jnp.float32) * 0.1
        P['se_b2'] = jax.random.normal(keys[8], (exp_ch,), jnp.float32) * 0.1
    P['ghost2'] = make_ghost_raw(keys[9], exp_ch, out_ch)
    P['ghost2_bn'] = _rand_bn(keys[10], out_ch)
    return P


def prep_params(P, *, H, W, images_per_step=1):
    """Fold BNs / masks, pre-cast MXU weights, build SE pool/broadcast matrices."""
    eps = P['eps']
    B = int(images_per_step)
    HW = H * W
    assert (B * HW) % 128 == 0, "per-step lane width must stay lane-dense"
    mask3 = np.tile(make_dw_masks(H, W, 3), (1, B))
    mask_k = mask3 if P['ksize'] == 3 else np.tile(make_dw_masks(H, W, P['ksize']), (1, B))

    KP = {k: P[k] for k in ('in_ch', 'out_ch', 'ksize', 'expand_ratio', 'stride',
                            'se_ratio', 'exp_ch', 'use_shortcut')}
    KP.update(H=H, W=W, images_per_step=B)
    assert KP['exp_ch'] % 8 == 0 and KP['out_ch'] % 8 == 0

    if 'shortcut' in P:
        KP['shortcut'] = prep_ghost(P['shortcut'], eps, mask3)
    if 'ghost1' in P:
        KP['ghost1'] = prep_ghost(P['ghost1'], eps, mask3)
        s, b = _bn_scale_bias(P['ghost1_bn'], eps)
        KP['g1bn_s'], KP['g1bn_b'] = s[:, None], b[:, None]

    s, b = _bn_scale_bias(P['dw_bn'], eps)
    KP['dw_wm'] = _fold_dw_wmask(P['dw_w'], s, mask_k)
    KP['dw_b'] = b[:, None]

    if P['se_ratio'] is not None:
        KP['se'] = (P['se_w1'], P['se_b1'][:, None], P['se_w2'], P['se_b2'][:, None])
        if B > 1:
            pool = np.zeros((B * HW, B), np.float32)
            bcast = np.zeros((B, B * HW), np.float32)
            for bi in range(B):
                pool[bi * HW:(bi + 1) * HW, bi] = 1.0 / HW
                bcast[bi, bi * HW:(bi + 1) * HW] = 1.0
            KP['se_pool'] = jnp.asarray(pool)
            KP['se_bcast'] = jnp.asarray(bcast)

    KP['ghost2'] = prep_ghost(P['ghost2'], eps, mask3)
    s, b = _bn_scale_bias(P['ghost2_bn'], eps)
    KP['g2bn_s'], KP['g2bn_b'] = s[:, None], b[:, None]
    return KP


# ----------------------------- pure-JAX reference ----------------------------

def _ref_bn(x, bn, eps):
    s = bn['gamma'] / jnp.sqrt(bn['var'] + eps)
    b = bn['beta'] - bn['mean'] * s
    return x * s[None, :, None, None] + b[None, :, None, None]


def _ref_ghost(x, gp, eps):
    w1 = gp['pw_w'][:, :, None, None]
    x1 = lax.conv_general_dilated(x, w1, (1, 1), 'VALID',
                                  dimension_numbers=('NCHW', 'OIHW', 'NCHW'))
    x1 = jnp.maximum(_ref_bn(x1, gp['pw_bn'], eps), 0.0)
    w2 = gp['dw_w'][:, None, :, :]
    x2 = lax.conv_general_dilated(x1, w2, (1, 1), [(1, 1), (1, 1)],
                                  dimension_numbers=('NCHW', 'OIHW', 'NCHW'),
                                  feature_group_count=gp['init_ch'])
    x2 = jnp.maximum(_ref_bn(x2, gp['dw_bn'], eps), 0.0)
    return jnp.concatenate([x1, x2], axis=1)[:, :gp['oup']]


def ghost_mbconv_ref(x, P):
    eps = P['eps']
    sc = x
    if P['in_ch'] != P['out_ch']:
        sc = _ref_ghost(sc, P['shortcut'], eps)
    h = x
    if P['expand_ratio'] != 1:
        h = _ref_ghost(h, P['ghost1'], eps)
        h = jnp.maximum(_ref_bn(h, P['ghost1_bn'], eps), 0.0)
    k = P['ksize']
    pad = k // 2
    wd = P['dw_w'][:, None, :, :]
    h = lax.conv_general_dilated(h, wd, (1, 1), [(pad, pad), (pad, pad)],
                                 dimension_numbers=('NCHW', 'OIHW', 'NCHW'),
                                 feature_group_count=P['exp_ch'])
    h = jnp.maximum(_ref_bn(h, P['dw_bn'], eps), 0.0)
    if P['se_ratio'] is not None:
        pooled = jnp.mean(h, axis=(2, 3))
        z = jnp.maximum(pooled @ P['se_w1'].T + P['se_b1'][None, :], 0.0)
        s = jax.nn.sigmoid(z @ P['se_w2'].T + P['se_b2'][None, :])
        h = h * s[:, :, None, None]
    h = _ref_ghost(h, P['ghost2'], eps)
    h = _ref_bn(h, P['ghost2_bn'], eps)
    return sc + h if P['use_shortcut'] else h


# --------------------------------- main ---------------------------------------

if __name__ == "__main__":
    key = jax.random.PRNGKey(0)
    kx, kp = jax.random.split(key)
    N, Cin, H, W = 2, 8, 16, 16
    x = jax.random.normal(kx, (N, Cin, H, W), jnp.float32)

    P = make_params(kp, in_ch=Cin, out_ch=16, ksize=3, expand_ratio=6,
                    stride=1, se_ratio=4)
    B = choose_images_per_step(N, H * W, P['in_ch'] + P['out_ch'] + P['exp_ch'])
    KP = prep_params(P, H=H, W=W, images_per_step=B)

    fwd = jax.jit(lambda a: ghost_mbconv_forward(a, KP))
    out = jax.block_until_ready(fwd(x))

    ref = ghost_mbconv_ref(x, P)
    assert out.shape == (N, 16, H, W), out.shape
    err = float(jnp.max(jnp.abs(out - ref)))
    # Kernel feeds the MXU in bf16 (f32 accumulate); reference is pure f32.
    assert err < 5e-2, f"max abs err {err}"
    print("KERNEL_OK")
</pallas_src>

<mosaic_0001>
module attributes {stable_mosaic.version = 11 : i64} {
  func.func @_fused_ghost_mbconv_kernel(%arg0: i32, %arg1: memref<8x256xf32, #tpu.memory_space<vmem>>, %arg2: memref<24x8xbf16, #tpu.memory_space<vmem>>, %arg3: memref<24x1xf32, #tpu.memory_space<vmem>>, %arg4: memref<9x24x256xf32, #tpu.memory_space<vmem>>, %arg5: memref<24x1xf32, #tpu.memory_space<vmem>>, %arg6: memref<48x1xf32, #tpu.memory_space<vmem>>, %arg7: memref<48x1xf32, #tpu.memory_space<vmem>>, %arg8: memref<9x48x256xf32, #tpu.memory_space<vmem>>, %arg9: memref<48x1xf32, #tpu.memory_space<vmem>>, %arg10: memref<2x48xf32, #tpu.memory_space<vmem>>, %arg11: memref<2x1xf32, #tpu.memory_space<vmem>>, %arg12: memref<48x2xf32, #tpu.memory_space<vmem>>, %arg13: memref<48x1xf32, #tpu.memory_space<vmem>>, %arg14: memref<8x48xbf16, #tpu.memory_space<vmem>>, %arg15: memref<8x1xf32, #tpu.memory_space<vmem>>, %arg16: memref<9x8x256xf32, #tpu.memory_space<vmem>>, %arg17: memref<8x1xf32, #tpu.memory_space<vmem>>, %arg18: memref<16x1xf32, #tpu.memory_space<vmem>>, %arg19: memref<16x1xf32, #tpu.memory_space<vmem>>, %arg20: memref<8x8xbf16, #tpu.memory_space<vmem>>, %arg21: memref<8x1xf32, #tpu.memory_space<vmem>>, %arg22: memref<9x8x256xf32, #tpu.memory_space<vmem>>, %arg23: memref<8x1xf32, #tpu.memory_space<vmem>>, %arg24: memref<16x256xf32, #tpu.memory_space<vmem>>, %arg25: memref<48x256xf32, #tpu.memory_space<vmem>>) attributes {dimension_semantics = [#tpu.dimension_semantics<parallel>], iteration_bounds = array<i64: 2>, scalar_prefetch = 0 : i64, scratch_operands = 1 : i64, tpu.core_type = #tpu.core_type<tc>, window_params = [{transform_indices = @transform_0, window_bounds = array<i64: 8, 256>}, {pipeline_mode = #tpu.pipeline_mode<synchronous>, transform_indices = @transform_1, window_bounds = array<i64: 24, 8>}, {pipeline_mode = #tpu.pipeline_mode<synchronous>, transform_indices = @transform_2, window_bounds = array<i64: 24, 1>}, {pipeline_mode = #tpu.pipeline_mode<synchronous>, transform_indices = @transform_3, window_bounds = array<i64: 9, 24, 256>}, {pipeline_mode = #tpu.pipeline_mode<synchronous>, transform_indices = @transform_4, window_bounds = array<i64: 24, 1>}, {pipeline_mode = #tpu.pipeline_mode<synchronous>, transform_indices = @transform_5, window_bounds = array<i64: 48, 1>}, {pipeline_mode = #tpu.pipeline_mode<synchronous>, transform_indices = @transform_6, window_bounds = array<i64: 48, 1>}, {pipeline_mode = #tpu.pipeline_mode<synchronous>, transform_indices = @transform_7, window_bounds = array<i64: 9, 48, 256>}, {pipeline_mode = #tpu.pipeline_mode<synchronous>, transform_indices = @transform_8, window_bounds = array<i64: 48, 1>}, {pipeline_mode = #tpu.pipeline_mode<synchronous>, transform_indices = @transform_9, window_bounds = array<i64: 2, 48>}, {pipeline_mode = #tpu.pipeline_mode<synchronous>, transform_indices = @transform_10, window_bounds = array<i64: 2, 1>}, {pipeline_mode = #tpu.pipeline_mode<synchronous>, transform_indices = @transform_11, window_bounds = array<i64: 48, 2>}, {pipeline_mode = #tpu.pipeline_mode<synchronous>, transform_indices = @transform_12, window_bounds = array<i64: 48, 1>}, {pipeline_mode = #tpu.pipeline_mode<synchronous>, transform_indices = @transform_13, window_bounds = array<i64: 8, 48>}, {pipeline_mode = #tpu.pipeline_mode<synchronous>, transform_indices = @transform_14, window_bounds = array<i64: 8, 1>}, {pipeline_mode = #tpu.pipeline_mode<synchronous>, transform_indices = @transform_15, window_bounds = array<i64: 9, 8, 256>}, {pipeline_mode = #tpu.pipeline_mode<synchronous>, transform_indices = @transform_16, window_bounds = array<i64: 8, 1>}, {pipeline_mode = #tpu.pipeline_mode<synchronous>, transform_indices = @transform_17, window_bounds = array<i64: 16, 1>}, {pipeline_mode = #tpu.pipeline_mode<synchronous>, transform_indices = @transform_18, window_bounds = array<i64: 16, 1>}, {pipeline_mode = #tpu.pipeline_mode<synchronous>, transform_indices = @transform_19, window_bounds = array<i64: 8, 8>}, {pipeline_mode = #tpu.pipeline_mode<synchronous>, transform_indices = @transform_20, window_bounds = array<i64: 8, 1>}, {pipeline_mode = #tpu.pipeline_mode<synchronous>, transform_indices = @transform_21, window_bounds = array<i64: 9, 8, 256>}, {pipeline_mode = #tpu.pipeline_mode<synchronous>, transform_indices = @transform_22, window_bounds = array<i64: 8, 1>}, {transform_indices = @transform_23, window_bounds = array<i64: 16, 256>}]} {
    %c0 = arith.constant 0 : index
    %c0_0 = arith.constant 0 : index
    %0 = vector.load %arg1[%c0, %c0_0] : memref<8x256xf32, #tpu.memory_space<vmem>>, vector<8x256xf32>
    %1 = arith.truncf %0 : vector<8x256xf32> to vector<8x256xbf16>
    %c0_1 = arith.constant 0 : index
    %c0_2 = arith.constant 0 : index
    %2 = vector.load %arg2[%c0_1, %c0_2] : memref<24x8xbf16, #tpu.memory_space<vmem>>, vector<24x8xbf16>
    %cst = arith.constant dense<0.000000e+00> : vector<24x256xf32>
    %3 = tpu.matmul %2, %1, %cst {dimension_numbers = #tpu.dot_dimension_numbers<[1], [0], [0], [1], [0, 0, 1, 1], [], []>} : vector<24x8xbf16>, vector<8x256xbf16>, vector<24x256xf32> -> vector<24x256xf32>
    %c0_3 = arith.constant 0 : index
    %c0_4 = arith.constant 0 : index
    %4 = vector.load %arg3[%c0_3, %c0_4] : memref<24x1xf32, #tpu.memory_space<vmem>>, vector<24x1xf32>
    %5 = vector.broadcast %4 : vector<24x1xf32> to vector<24x256xf32>
    %6 = arith.addf %3, %5 : vector<24x256xf32>
    %cst_5 = arith.constant 0.000000e+00 : f32
    %7 = vector.broadcast %cst_5 : f32 to vector<24x256xf32>
    %8 = arith.maximumf %6, %7 : vector<24x256xf32>
    %c17_i32 = arith.constant 17 : i32
    %9 = tpu.dynamic_rotate %8 by %c17_i32 dim 1 : vector<24x256xf32>, i32 -> vector<24x256xf32>
    %c0_6 = arith.constant 0 : index
    %c0_7 = arith.constant 0 : index
    %c0_8 = arith.constant 0 : index
    %10 = vector.load %arg4[%c0_6, %c0_7, %c0_8] : memref<9x24x256xf32, #tpu.memory_space<vmem>>, vector<1x24x256xf32>
    %11 = vector.shape_cast %10 : vector<1x24x256xf32> to vector<24x256xf32>
    %12 = arith.mulf %9, %11 : vector<24x256xf32>
    %c16_i32 = arith.constant 16 : i32
    %13 = tpu.dynamic_rotate %8 by %c16_i32 dim 1 : vector<24x256xf32>, i32 -> vector<24x256xf32>
    %c1 = arith.constant 1 : index
    %c0_9 = arith.constant 0 : index
    %c0_10 = arith.constant 0 : index
    %14 = vector.load %arg4[%c1, %c0_9, %c0_10] : memref<9x24x256xf32, #tpu.memory_space<vmem>>, vector<1x24x256xf32>
    %15 = vector.shape_cast %14 : vector<1x24x256xf32> to vector<24x256xf32>
    %16 = arith.mulf %13, %15 : vector<24x256xf32>
    %17 = arith.addf %12, %16 : vector<24x256xf32>
    %c15_i32 = arith.constant 15 : i32
    %18 = tpu.dynamic_rotate %8 by %c15_i32 dim 1 : vector<24x256xf32>, i32 -> vector<24x256xf32>
    %c2 = arith.constant 2 : index
    %c0_11 = arith.constant 0 : index
    %c0_12 = arith.constant 0 : index
    %19 = vector.load %arg4[%c2, %c0_11, %c0_12] : memref<9x24x256xf32, #tpu.memory_space<vmem>>, vector<1x24x256xf32>
    %20 = vector.shape_cast %19 : vector<1x24x256xf32> to vector<24x256xf32>
    %21 = arith.mulf %18, %20 : vector<24x256xf32>
    %22 = arith.addf %17, %21 : vector<24x256xf32>
    %c1_i32 = arith.constant 1 : i32
    %23 = tpu.dynamic_rotate %8 by %c1_i32 dim 1 : vector<24x256xf32>, i32 -> vector<24x256xf32>
    %c3 = arith.constant 3 : index
    %c0_13 = arith.constant 0 : index
    %c0_14 = arith.constant 0 : index
    %24 = vector.load %arg4[%c3, %c0_13, %c0_14] : memref<9x24x256xf32, #tpu.memory_space<vmem>>, vector<1x24x256xf32>
    %25 = vector.shape_cast %24 : vector<1x24x256xf32> to vector<24x256xf32>
    %26 = arith.mulf %23, %25 : vector<24x256xf32>
    %27 = arith.addf %22, %26 : vector<24x256xf32>
    %c4 = arith.constant 4 : index
    %c0_15 = arith.constant 0 : index
    %c0_16 = arith.constant 0 : index
    %28 = vector.load %arg4[%c4, %c0_15, %c0_16] : memref<9x24x256xf32, #tpu.memory_space<vmem>>, vector<1x24x256xf32>
    %29 = vector.shape_cast %28 : vector<1x24x256xf32> to vector<24x256xf32>
    %30 = arith.mulf %8, %29 : vector<24x256xf32>
    %31 = arith.addf %27, %30 : vector<24x256xf32>
    %c255_i32 = arith.constant 255 : i32
    %32 = tpu.dynamic_rotate %8 by %c255_i32 dim 1 : vector<24x256xf32>, i32 -> vector<24x256xf32>
    %c5 = arith.constant 5 : index
    %c0_17 = arith.constant 0 : index
    %c0_18 = arith.constant 0 : index
    %33 = vector.load %arg4[%c5, %c0_17, %c0_18] : memref<9x24x256xf32, #tpu.memory_space<vmem>>, vector<1x24x256xf32>
    %34 = vector.shape_cast %33 : vector<1x24x256xf32> to vector<24x256xf32>
    %35 = arith.mulf %32, %34 : vector<24x256xf32>
    %36 = arith.addf %31, %35 : vector<24x256xf32>
    %c241_i32 = arith.constant 241 : i32
    %37 = tpu.dynamic_rotate %8 by %c241_i32 dim 1 : vector<24x256xf32>, i32 -> vector<24x256xf32>
    %c6 = arith.constant 6 : index
    %c0_19 = arith.constant 0 : index
    %c0_20 = arith.constant 0 : index
    %38 = vector.load %arg4[%c6, %c0_19, %c0_20] : memref<9x24x256xf32, #tpu.memory_space<vmem>>, vector<1x24x256xf32>
    %39 = vector.shape_cast %38 : vector<1x24x256xf32> to vector<24x256xf32>
    %40 = arith.mulf %37, %39 : vector<24x256xf32>
    %41 = arith.addf %36, %40 : vector<24x256xf32>
    %c240_i32 = arith.constant 240 : i32
    %42 = tpu.dynamic_rotate %8 by %c240_i32 dim 1 : vector<24x256xf32>, i32 -> vector<24x256xf32>
    %c7 = arith.constant 7 : index
    %c0_21 = arith.constant 0 : index
    %c0_22 = arith.constant 0 : index
    %43 = vector.load %arg4[%c7, %c0_21, %c0_22] : memref<9x24x256xf32, #tpu.memory_space<vmem>>, vector<1x24x256xf32>
    %44 = vector.shape_cast %43 : vector<1x24x256xf32> to vector<24x256xf32>
    %45 = arith.mulf %42, %44 : vector<24x256xf32>
    %46 = arith.addf %41, %45 : vector<24x256xf32>
    %c239_i32 = arith.constant 239 : i32
    %47 = tpu.dynamic_rotate %8 by %c239_i32 dim 1 : vector<24x256xf32>, i32 -> vector<24x256xf32>
    %c8 = arith.constant 8 : index
    %c0_23 = arith.constant 0 : index
    %c0_24 = arith.constant 0 : index
    %48 = vector.load %arg4[%c8, %c0_23, %c0_24] : memref<9x24x256xf32, #tpu.memory_space<vmem>>, vector<1x24x256xf32>
    %49 = vector.shape_cast %48 : vector<1x24x256xf32> to vector<24x256xf32>
    %50 = arith.mulf %47, %49 : vector<24x256xf32>
    %51 = arith.addf %46, %50 : vector<24x256xf32>
    %c0_25 = arith.constant 0 : index
    %c0_26 = arith.constant 0 : index
    %52 = vector.load %arg5[%c0_25, %c0_26] : memref<24x1xf32, #tpu.memory_space<vmem>>, vector<24x1xf32>
    %53 = vector.broadcast %52 : vector<24x1xf32> to vector<24x256xf32>
    %54 = arith.addf %51, %53 : vector<24x256xf32>
    %cst_27 = arith.constant 0.000000e+00 : f32
    %55 = vector.broadcast %cst_27 : f32 to vector<24x256xf32>
    %56 = arith.maximumf %54, %55 : vector<24x256xf32>
    %c0_28 = arith.constant 0 : index
    %c0_29 = arith.constant 0 : index
    %57 = vector.load %arg6[%c0_28, %c0_29] : memref<48x1xf32, #tpu.memory_space<vmem>>, vector<24x1xf32>
    %58 = vector.broadcast %57 : vector<24x1xf32> to vector<24x256xf32>
    %59 = arith.mulf %8, %58 : vector<24x256xf32>
    %c0_30 = arith.constant 0 : index
    %c0_31 = arith.constant 0 : index
    %60 = vector.load %arg7[%c0_30, %c0_31] : memref<48x1xf32, #tpu.memory_space<vmem>>, vector<24x1xf32>
    %61 = vector.broadcast %60 : vector<24x1xf32> to vector<24x256xf32>
    %62 = arith.addf %59, %61 : vector<24x256xf32>
    %cst_32 = arith.constant 0.000000e+00 : f32
    %63 = vector.broadcast %cst_32 : f32 to vector<24x256xf32>
    %64 = arith.maximumf %62, %63 : vector<24x256xf32>
    %c0_33 = arith.constant 0 : index
    %c0_34 = arith.constant 0 : index
    %65 = vector.load %arg25[%c0_33, %c0_34] : memref<48x256xf32, #tpu.memory_space<vmem>>, vector<24x256xf32>
    tpu.vector_store %arg25[%c0_33, %c0_34], %64 {strides = array<i32>} : memref<48x256xf32, #tpu.memory_space<vmem>>, vector<24x256xf32>,
    %c24 = arith.constant 24 : index
    %c0_35 = arith.constant 0 : index
    %66 = vector.load %arg6[%c24, %c0_35] : memref<48x1xf32, #tpu.memory_space<vmem>>, vector<24x1xf32>
    %67 = vector.broadcast %66 : vector<24x1xf32> to vector<24x256xf32>
    %68 = arith.mulf %56, %67 : vector<24x256xf32>
    %c24_36 = arith.constant 24 : index
    %c0_37 = arith.constant 0 : index
    %69 = vector.load %arg7[%c24_36, %c0_37] : memref<48x1xf32, #tpu.memory_space<vmem>>, vector<24x1xf32>
    %70 = vector.broadcast %69 : vector<24x1xf32> to vector<24x256xf32>
    %71 = arith.addf %68, %70 : vector<24x256xf32>
    %cst_38 = arith.constant 0.000000e+00 : f32
    %72 = vector.broadcast %cst_38 : f32 to vector<24x256xf32>
    %73 = arith.maximumf %71, %72 : vector<24x256xf32>
    %c24_39 = arith.constant 24 : index
    %c0_40 = arith.constant 0 : index
    %74 = vector.load %arg25[%c24_39, %c0_40] : memref<48x256xf32, #tpu.memory_space<vmem>>, vector<24x256xf32>
    tpu.vector_store %arg25[%c24_39, %c0_40], %73 {strides = array<i32>} : memref<48x256xf32, #tpu.memory_space<vmem>>, vector<24x256xf32>,
    %c0_41 = arith.constant 0 : index
    %c0_42 = arith.constant 0 : index
    %75 = vector.load %arg25[%c0_41, %c0_42] : memref<48x256xf32, #tpu.memory_space<vmem>>, vector<48x256xf32>
    %c17_i32_43 = arith.constant 17 : i32
    %76 = tpu.dynamic_rotate %75 by %c17_i32_43 dim 1 : vector<48x256xf32>, i32 -> vector<48x256xf32>
    %c0_44 = arith.constant 0 : index
    %c0_45 = arith.constant 0 : index
    %c0_46 = arith.constant 0 : index
    %77 = vector.load %arg8[%c0_44, %c0_45, %c0_46] : memref<9x48x256xf32, #tpu.memory_space<vmem>>, vector<1x48x256xf32>
    %78 = vector.shape_cast %77 : vector<1x48x256xf32> to vector<48x256xf32>
    %79 = arith.mulf %76, %78 : vector<48x256xf32>
    %c16_i32_47 = arith.constant 16 : i32
    %80 = tpu.dynamic_rotate %75 by %c16_i32_47 dim 1 : vector<48x256xf32>, i32 -> vector<48x256xf32>
    %c1_48 = arith.constant 1 : index
    %c0_49 = arith.constant 0 : index
    %c0_50 = arith.constant 0 : index
    %81 = vector.load %arg8[%c1_48, %c0_49, %c0_50] : memref<9x48x256xf32, #tpu.memory_space<vmem>>, vector<1x48x256xf32>
    %82 = vector.shape_cast %81 : vector<1x48x256xf32> to vector<48x256xf32>
    %83 = arith.mulf %80, %82 : vector<48x256xf32>
    %84 = arith.addf %79, %83 : vector<48x256xf32>
    %c15_i32_51 = arith.constant 15 : i32
    %85 = tpu.dynamic_rotate %75 by %c15_i32_51 dim 1 : vector<48x256xf32>, i32 -> vector<48x256xf32>
    %c2_52 = arith.constant 2 : index
    %c0_53 = arith.constant 0 : index
    %c0_54 = arith.constant 0 : index
    %86 = vector.load %arg8[%c2_52, %c0_53, %c0_54] : memref<9x48x256xf32, #tpu.memory_space<vmem>>, vector<1x48x256xf32>
    %87 = vector.shape_cast %86 : vector<1x48x256xf32> to vector<48x256xf32>
    %88 = arith.mulf %85, %87 : vector<48x256xf32>
    %89 = arith.addf %84, %88 : vector<48x256xf32>
    %c1_i32_55 = arith.constant 1 : i32
    %90 = tpu.dynamic_rotate %75 by %c1_i32_55 dim 1 : vector<48x256xf32>, i32 -> vector<48x256xf32>
    %c3_56 = arith.constant 3 : index
    %c0_57 = arith.constant 0 : index
    %c0_58 = arith.constant 0 : index
    %91 = vector.load %arg8[%c3_56, %c0_57, %c0_58] : memref<9x48x256xf32, #tpu.memory_space<vmem>>, vector<1x48x256xf32>
    %92 = vector.shape_cast %91 : vector<1x48x256xf32> to vector<48x256xf32>
    %93 = arith.mulf %90, %92 : vector<48x256xf32>
    %94 = arith.addf %89, %93 : vector<48x256xf32>
    %c4_59 = arith.constant 4 : index
    %c0_60 = arith.constant 0 : index
    %c0_61 = arith.constant 0 : index
    %95 = vector.load %arg8[%c4_59, %c0_60, %c0_61] : memref<9x48x256xf32, #tpu.memory_space<vmem>>, vector<1x48x256xf32>
    %96 = vector.shape_cast %95 : vector<1x48x256xf32> to vector<48x256xf32>
    %97 = arith.mulf %75, %96 : vector<48x256xf32>
    %98 = arith.addf %94, %97 : vector<48x256xf32>
    %c255_i32_62 = arith.constant 255 : i32
    %99 = tpu.dynamic_rotate %75 by %c255_i32_62 dim 1 : vector<48x256xf32>, i32 -> vector<48x256xf32>
    %c5_63 = arith.constant 5 : index
    %c0_64 = arith.constant 0 : index
    %c0_65 = arith.constant 0 : index
    %100 = vector.load %arg8[%c5_63, %c0_64, %c0_65] : memref<9x48x256xf32, #tpu.memory_space<vmem>>, vector<1x48x256xf32>
    %101 = vector.shape_cast %100 : vector<1x48x256xf32> to vector<48x256xf32>
    %102 = arith.mulf %99, %101 : vector<48x256xf32>
    %103 = arith.addf %98, %102 : vector<48x256xf32>
    %c241_i32_66 = arith.constant 241 : i32
    %104 = tpu.dynamic_rotate %75 by %c241_i32_66 dim 1 : vector<48x256xf32>, i32 -> vector<48x256xf32>
    %c6_67 = arith.constant 6 : index
    %c0_68 = arith.constant 0 : index
    %c0_69 = arith.constant 0 : index
    %105 = vector.load %arg8[%c6_67, %c0_68, %c0_69] : memref<9x48x256xf32, #tpu.memory_space<vmem>>, vector<1x48x256xf32>
    %106 = vector.shape_cast %105 : vector<1x48x256xf32> to vector<48x256xf32>
    %107 = arith.mulf %104, %106 : vector<48x256xf32>
    %108 = arith.addf %103, %107 : vector<48x256xf32>
    %c240_i32_70 = arith.constant 240 : i32
    %109 = tpu.dynamic_rotate %75 by %c240_i32_70 dim 1 : vector<48x256xf32>, i32 -> vector<48x256xf32>
    %c7_71 = arith.constant 7 : index
    %c0_72 = arith.constant 0 : index
    %c0_73 = arith.constant 0 : index
    %110 = vector.load %arg8[%c7_71, %c0_72, %c0_73] : memref<9x48x256xf32, #tpu.memory_space<vmem>>, vector<1x48x256xf32>
    %111 = vector.shape_cast %110 : vector<1x48x256xf32> to vector<48x256xf32>
    %112 = arith.mulf %109, %111 : vector<48x256xf32>
    %113 = arith.addf %108, %112 : vector<48x256xf32>
    %c239_i32_74 = arith.constant 239 : i32
    %114 = tpu.dynamic_rotate %75 by %c239_i32_74 dim 1 : vector<48x256xf32>, i32 -> vector<48x256xf32>
    %c8_75 = arith.constant 8 : index
    %c0_76 = arith.constant 0 : index
    %c0_77 = arith.constant 0 : index
    %115 = vector.load %arg8[%c8_75, %c0_76, %c0_77] : memref<9x48x256xf32, #tpu.memory_space<vmem>>, vector<1x48x256xf32>
    %116 = vector.shape_cast %115 : vector<1x48x256xf32> to vector<48x256xf32>
    %117 = arith.mulf %114, %116 : vector<48x256xf32>
    %118 = arith.addf %113, %117 : vector<48x256xf32>
    %c0_78 = arith.constant 0 : index
    %c0_79 = arith.constant 0 : index
    %119 = vector.load %arg9[%c0_78, %c0_79] : memref<48x1xf32, #tpu.memory_space<vmem>>, vector<48x1xf32>
    %120 = vector.broadcast %119 : vector<48x1xf32> to vector<48x256xf32>
    %121 = arith.addf %118, %120 : vector<48x256xf32>
    %cst_80 = arith.constant 0.000000e+00 : f32
    %122 = vector.broadcast %cst_80 : f32 to vector<48x256xf32>
    %123 = arith.maximumf %121, %122 : vector<48x256xf32>
    %cst_81 = arith.constant dense<0.000000e+00> : vector<48xf32>
    %124 = vector.multi_reduction <add>, %123, %cst_81 [1] : vector<48x256xf32> to vector<48xf32>
    %125 = vector.shape_cast %124 : vector<48xf32> to vector<48x1xf32>
    %cst_82 = arith.constant 2.560000e+02 : f32
    %126 = vector.broadcast %cst_82 : f32 to vector<48x1xf32>
    %127 = arith.divf %125, %126 : vector<48x1xf32>
    %c0_83 = arith.constant 0 : index
    %c0_84 = arith.constant 0 : index
    %128 = vector.load %arg10[%c0_83, %c0_84] : memref<2x48xf32, #tpu.memory_space<vmem>>, vector<2x48xf32>
    %cst_85 = arith.constant dense<0.000000e+00> : vector<2x1xf32>
    %129 = tpu.matmul %128, %127, %cst_85 {dimension_numbers = #tpu.dot_dimension_numbers<[1], [0], [0], [1], [0, 0, 1, 1], [], []>} : vector<2x48xf32>, vector<48x1xf32>, vector<2x1xf32> -> vector<2x1xf32>
    %c0_86 = arith.constant 0 : index
    %c0_87 = arith.constant 0 : index
    %130 = vector.load %arg11[%c0_86, %c0_87] : memref<2x1xf32, #tpu.memory_space<vmem>>, vector<2x1xf32>
    %131 = arith.addf %129, %130 : vector<2x1xf32>
    %cst_88 = arith.constant 0.000000e+00 : f32
    %132 = vector.broadcast %cst_88 : f32 to vector<2x1xf32>
    %133 = arith.maximumf %131, %132 : vector<2x1xf32>
    %c0_89 = arith.constant 0 : index
    %c0_90 = arith.constant 0 : index
    %134 = vector.load %arg12[%c0_89, %c0_90] : memref<48x2xf32, #tpu.memory_space<vmem>>, vector<48x2xf32>
    %cst_91 = arith.constant dense<0.000000e+00> : vector<48x1xf32>
    %135 = tpu.matmul %134, %133, %cst_91 {dimension_numbers = #tpu.dot_dimension_numbers<[1], [0], [0], [1], [0, 0, 1, 1], [], []>} : vector<48x2xf32>, vector<2x1xf32>, vector<48x1xf32> -> vector<48x1xf32>
    %c0_92 = arith.constant 0 : index
    %c0_93 = arith.constant 0 : index
    %136 = vector.load %arg13[%c0_92, %c0_93] : memref<48x1xf32, #tpu.memory_space<vmem>>, vector<48x1xf32>
    %137 = arith.addf %135, %136 : vector<48x1xf32>
    %138 = arith.negf %137 : vector<48x1xf32>
    %139 = math.exp %138 : vector<48x1xf32>
    %cst_94 = arith.constant 1.000000e+00 : f32
    %140 = vector.broadcast %cst_94 : f32 to vector<48x1xf32>
    %141 = arith.addf %140, %139 : vector<48x1xf32>
    %142 = arith.divf %140, %141 : vector<48x1xf32>
    %143 = vector.broadcast %142 : vector<48x1xf32> to vector<48x256xf32>
    %144 = arith.mulf %123, %143 : vector<48x256xf32>
    %145 = arith.truncf %144 : vector<48x256xf32> to vector<48x256xbf16>
    %c0_95 = arith.constant 0 : index
    %c0_96 = arith.constant 0 : index
    %146 = vector.load %arg14[%c0_95, %c0_96] : memref<8x48xbf16, #tpu.memory_space<vmem>>, vector<8x48xbf16>
    %cst_97 = arith.constant dense<0.000000e+00> : vector<8x256xf32>
    %147 = tpu.matmul %146, %145, %cst_97 {dimension_numbers = #tpu.dot_dimension_numbers<[1], [0], [0], [1], [0, 0, 1, 1], [], []>} : vector<8x48xbf16>, vector<48x256xbf16>, vector<8x256xf32> -> vector<8x256xf32>
    %c0_98 = arith.constant 0 : index
    %c0_99 = arith.constant 0 : index
    %148 = vector.load %arg15[%c0_98, %c0_99] : memref<8x1xf32, #tpu.memory_space<vmem>>, vector<8x1xf32>
    %149 = vector.broadcast %148 : vector<8x1xf32> to vector<8x256xf32>
    %150 = arith.addf %147, %149 : vector<8x256xf32>
    %cst_100 = arith.constant 0.000000e+00 : f32
    %151 = vector.broadcast %cst_100 : f32 to vector<8x256xf32>
    %152 = arith.maximumf %150, %151 : vector<8x256xf32>
    %c17_i32_101 = arith.constant 17 : i32
    %153 = tpu.dynamic_rotate %152 by %c17_i32_101 dim 1 : vector<8x256xf32>, i32 -> vector<8x256xf32>
    %c0_102 = arith.constant 0 : index
    %c0_103 = arith.constant 0 : index
    %c0_104 = arith.constant 0 : index
    %154 = vector.load %arg16[%c0_102, %c0_103, %c0_104] : memref<9x8x256xf32, #tpu.memory_space<vmem>>, vector<1x8x256xf32>
    %155 = vector.shape_cast %154 : vector<1x8x256xf32> to vector<8x256xf32>
    %156 = arith.mulf %153, %155 : vector<8x256xf32>
    %c16_i32_105 = arith.constant 16 : i32
    %157 = tpu.dynamic_rotate %152 by %c16_i32_105 dim 1 : vector<8x256xf32>, i32 -> vector<8x256xf32>
    %c1_106 = arith.constant 1 : index
    %c0_107 = arith.constant 0 : index
    %c0_108 = arith.constant 0 : index
    %158 = vector.load %arg16[%c1_106, %c0_107, %c0_108] : memref<9x8x256xf32, #tpu.memory_space<vmem>>, vector<1x8x256xf32>
    %159 = vector.shape_cast %158 : vector<1x8x256xf32> to vector<8x256xf32>
    %160 = arith.mulf %157, %159 : vector<8x256xf32>
    %161 = arith.addf %156, %160 : vector<8x256xf32>
    %c15_i32_109 = arith.constant 15 : i32
    %162 = tpu.dynamic_rotate %152 by %c15_i32_109 dim 1 : vector<8x256xf32>, i32 -> vector<8x256xf32>
    %c2_110 = arith.constant 2 : index
    %c0_111 = arith.constant 0 : index
    %c0_112 = arith.constant 0 : index
    %163 = vector.load %arg16[%c2_110, %c0_111, %c0_112] : memref<9x8x256xf32, #tpu.memory_space<vmem>>, vector<1x8x256xf32>
    %164 = vector.shape_cast %163 : vector<1x8x256xf32> to vector<8x256xf32>
    %165 = arith.mulf %162, %164 : vector<8x256xf32>
    %166 = arith.addf %161, %165 : vector<8x256xf32>
    %c1_i32_113 = arith.constant 1 : i32
    %167 = tpu.dynamic_rotate %152 by %c1_i32_113 dim 1 : vector<8x256xf32>, i32 -> vector<8x256xf32>
    %c3_114 = arith.constant 3 : index
    %c0_115 = arith.constant 0 : index
    %c0_116 = arith.constant 0 : index
    %168 = vector.load %arg16[%c3_114, %c0_115, %c0_116] : memref<9x8x256xf32, #tpu.memory_space<vmem>>, vector<1x8x256xf32>
    %169 = vector.shape_cast %168 : vector<1x8x256xf32> to vector<8x256xf32>
    %170 = arith.mulf %167, %169 : vector<8x256xf32>
    %171 = arith.addf %166, %170 : vector<8x256xf32>
    %c4_117 = arith.constant 4 : index
    %c0_118 = arith.constant 0 : index
    %c0_119 = arith.constant 0 : index
    %172 = vector.load %arg16[%c4_117, %c0_118, %c0_119] : memref<9x8x256xf32, #tpu.memory_space<vmem>>, vector<1x8x256xf32>
    %173 = vector.shape_cast %172 : vector<1x8x256xf32> to vector<8x256xf32>
    %174 = arith.mulf %152, %173 : vector<8x256xf32>
    %175 = arith.addf %171, %174 : vector<8x256xf32>
    %c255_i32_120 = arith.constant 255 : i32
    %176 = tpu.dynamic_rotate %152 by %c255_i32_120 dim 1 : vector<8x256xf32>, i32 -> vector<8x256xf32>
    %c5_121 = arith.constant 5 : index
    %c0_122 = arith.constant 0 : index
    %c0_123 = arith.constant 0 : index
    %177 = vector.load %arg16[%c5_121, %c0_122, %c0_123] : memref<9x8x256xf32, #tpu.memory_space<vmem>>, vector<1x8x256xf32>
    %178 = vector.shape_cast %177 : vector<1x8x256xf32> to vector<8x256xf32>
    %179 = arith.mulf %176, %178 : vector<8x256xf32>
    %180 = arith.addf %175, %179 : vector<8x256xf32>
    %c241_i32_124 = arith.constant 241 : i32
    %181 = tpu.dynamic_rotate %152 by %c241_i32_124 dim 1 : vector<8x256xf32>, i32 -> vector<8x256xf32>
    %c6_125 = arith.constant 6 : index
    %c0_126 = arith.constant 0 : index
    %c0_127 = arith.constant 0 : index
    %182 = vector.load %arg16[%c6_125, %c0_126, %c0_127] : memref<9x8x256xf32, #tpu.memory_space<vmem>>, vector<1x8x256xf32>
    %183 = vector.shape_cast %182 : vector<1x8x256xf32> to vector<8x256xf32>
    %184 = arith.mulf %181, %183 : vector<8x256xf32>
    %185 = arith.addf %180, %184 : vector<8x256xf32>
    %c240_i32_128 = arith.constant 240 : i32
    %186 = tpu.dynamic_rotate %152 by %c240_i32_128 dim 1 : vector<8x256xf32>, i32 -> vector<8x256xf32>
    %c7_129 = arith.constant 7 : index
    %c0_130 = arith.constant 0 : index
    %c0_131 = arith.constant 0 : index
    %187 = vector.load %arg16[%c7_129, %c0_130, %c0_131] : memref<9x8x256xf32, #tpu.memory_space<vmem>>, vector<1x8x256xf32>
    %188 = vector.shape_cast %187 : vector<1x8x256xf32> to vector<8x256xf32>
    %189 = arith.mulf %186, %188 : vector<8x256xf32>
    %190 = arith.addf %185, %189 : vector<8x256xf32>
    %c239_i32_132 = arith.constant 239 : i32
    %191 = tpu.dynamic_rotate %152 by %c239_i32_132 dim 1 : vector<8x256xf32>, i32 -> vector<8x256xf32>
    %c8_133 = arith.constant 8 : index
    %c0_134 = arith.constant 0 : index
    %c0_135 = arith.constant 0 : index
    %192 = vector.load %arg16[%c8_133, %c0_134, %c0_135] : memref<9x8x256xf32, #tpu.memory_space<vmem>>, vector<1x8x256xf32>
    %193 = vector.shape_cast %192 : vector<1x8x256xf32> to vector<8x256xf32>
    %194 = arith.mulf %191, %193 : vector<8x256xf32>
    %195 = arith.addf %190, %194 : vector<8x256xf32>
    %c0_136 = arith.constant 0 : index
    %c0_137 = arith.constant 0 : index
    %196 = vector.load %arg17[%c0_136, %c0_137] : memref<8x1xf32, #tpu.memory_space<vmem>>, vector<8x1xf32>
    %197 = vector.broadcast %196 : vector<8x1xf32> to vector<8x256xf32>
    %198 = arith.addf %195, %197 : vector<8x256xf32>
    %cst_138 = arith.constant 0.000000e+00 : f32
    %199 = vector.broadcast %cst_138 : f32 to vector<8x256xf32>
    %200 = arith.maximumf %198, %199 : vector<8x256xf32>
    %c0_139 = arith.constant 0 : index
    %c0_140 = arith.constant 0 : index
    %201 = vector.load %arg18[%c0_139, %c0_140] : memref<16x1xf32, #tpu.memory_space<vmem>>, vector<8x1xf32>
    %202 = vector.broadcast %201 : vector<8x1xf32> to vector<8x256xf32>
    %203 = arith.mulf %152, %202 : vector<8x256xf32>
    %c0_141 = arith.constant 0 : index
    %c0_142 = arith.constant 0 : index
    %204 = vector.load %arg19[%c0_141, %c0_142] : memref<16x1xf32, #tpu.memory_space<vmem>>, vector<8x1xf32>
    %205 = vector.broadcast %204 : vector<8x1xf32> to vector<8x256xf32>
    %206 = arith.addf %203, %205 : vector<8x256xf32>
    %c8_143 = arith.constant 8 : index
    %c0_144 = arith.constant 0 : index
    %207 = vector.load %arg18[%c8_143, %c0_144] : memref<16x1xf32, #tpu.memory_space<vmem>>, vector<8x1xf32>
    %208 = vector.broadcast %207 : vector<8x1xf32> to vector<8x256xf32>
    %209 = arith.mulf %200, %208 : vector<8x256xf32>
    %c8_145 = arith.constant 8 : index
    %c0_146 = arith.constant 0 : index
    %210 = vector.load %arg19[%c8_145, %c0_146] : memref<16x1xf32, #tpu.memory_space<vmem>>, vector<8x1xf32>
    %211 = vector.broadcast %210 : vector<8x1xf32> to vector<8x256xf32>
    %212 = arith.addf %209, %211 : vector<8x256xf32>
    %c0_147 = arith.constant 0 : index
    %c0_148 = arith.constant 0 : index
    %213 = vector.load %arg20[%c0_147, %c0_148] : memref<8x8xbf16, #tpu.memory_space<vmem>>, vector<8x8xbf16>
    %cst_149 = arith.constant dense<0.000000e+00> : vector<8x256xf32>
    %214 = tpu.matmul %213, %1, %cst_149 {dimension_numbers = #tpu.dot_dimension_numbers<[1], [0], [0], [1], [0, 0, 1, 1], [], []>} : vector<8x8xbf16>, vector<8x256xbf16>, vector<8x256xf32> -> vector<8x256xf32>
    %c0_150 = arith.constant 0 : index
    %c0_151 = arith.constant 0 : index
    %215 = vector.load %arg21[%c0_150, %c0_151] : memref<8x1xf32, #tpu.memory_space<vmem>>, vector<8x1xf32>
    %216 = vector.broadcast %215 : vector<8x1xf32> to vector<8x256xf32>
    %217 = arith.addf %214, %216 : vector<8x256xf32>
    %cst_152 = arith.constant 0.000000e+00 : f32
    %218 = vector.broadcast %cst_152 : f32 to vector<8x256xf32>
    %219 = arith.maximumf %217, %218 : vector<8x256xf32>
    %c17_i32_153 = arith.constant 17 : i32
    %220 = tpu.dynamic_rotate %219 by %c17_i32_153 dim 1 : vector<8x256xf32>, i32 -> vector<8x256xf32>
    %c0_154 = arith.constant 0 : index
    %c0_155 = arith.constant 0 : index
    %c0_156 = arith.constant 0 : index
    %221 = vector.load %arg22[%c0_154, %c0_155, %c0_156] : memref<9x8x256xf32, #tpu.memory_space<vmem>>, vector<1x8x256xf32>
    %222 = vector.shape_cast %221 : vector<1x8x256xf32> to vector<8x256xf32>
    %223 = arith.mulf %220, %222 : vector<8x256xf32>
    %c16_i32_157 = arith.constant 16 : i32
    %224 = tpu.dynamic_rotate %219 by %c16_i32_157 dim 1 : vector<8x256xf32>, i32 -> vector<8x256xf32>
    %c1_158 = arith.constant 1 : index
    %c0_159 = arith.constant 0 : index
    %c0_160 = arith.constant 0 : index
    %225 = vector.load %arg22[%c1_158, %c0_159, %c0_160] : memref<9x8x256xf32, #tpu.memory_space<vmem>>, vector<1x8x256xf32>
    %226 = vector.shape_cast %225 : vector<1x8x256xf32> to vector<8x256xf32>
    %227 = arith.mulf %224, %226 : vector<8x256xf32>
    %228 = arith.addf %223, %227 : vector<8x256xf32>
    %c15_i32_161 = arith.constant 15 : i32
    %229 = tpu.dynamic_rotate %219 by %c15_i32_161 dim 1 : vector<8x256xf32>, i32 -> vector<8x256xf32>
    %c2_162 = arith.constant 2 : index
    %c0_163 = arith.constant 0 : index
    %c0_164 = arith.constant 0 : index
    %230 = vector.load %arg22[%c2_162, %c0_163, %c0_164] : memref<9x8x256xf32, #tpu.memory_space<vmem>>, vector<1x8x256xf32>
    %231 = vector.shape_cast %230 : vector<1x8x256xf32> to vector<8x256xf32>
    %232 = arith.mulf %229, %231 : vector<8x256xf32>
    %233 = arith.addf %228, %232 : vector<8x256xf32>
    %c1_i32_165 = arith.constant 1 : i32
    %234 = tpu.dynamic_rotate %219 by %c1_i32_165 dim 1 : vector<8x256xf32>, i32 -> vector<8x256xf32>
    %c3_166 = arith.constant 3 : index
    %c0_167 = arith.constant 0 : index
    %c0_168 = arith.constant 0 : index
    %235 = vector.load %arg22[%c3_166, %c0_167, %c0_168] : memref<9x8x256xf32, #tpu.memory_space<vmem>>, vector<1x8x256xf32>
    %236 = vector.shape_cast %235 : vector<1x8x256xf32> to vector<8x256xf32>
    %237 = arith.mulf %234, %236 : vector<8x256xf32>
    %238 = arith.addf %233, %237 : vector<8x256xf32>
    %c4_169 = arith.constant 4 : index
    %c0_170 = arith.constant 0 : index
    %c0_171 = arith.constant 0 : index
    %239 = vector.load %arg22[%c4_169, %c0_170, %c0_171] : memref<9x8x256xf32, #tpu.memory_space<vmem>>, vector<1x8x256xf32>
    %240 = vector.shape_cast %239 : vector<1x8x256xf32> to vector<8x256xf32>
    %241 = arith.mulf %219, %240 : vector<8x256xf32>
    %242 = arith.addf %238, %241 : vector<8x256xf32>
    %c255_i32_172 = arith.constant 255 : i32
    %243 = tpu.dynamic_rotate %219 by %c255_i32_172 dim 1 : vector<8x256xf32>, i32 -> vector<8x256xf32>
    %c5_173 = arith.constant 5 : index
    %c0_174 = arith.constant 0 : index
    %c0_175 = arith.constant 0 : index
    %244 = vector.load %arg22[%c5_173, %c0_174, %c0_175] : memref<9x8x256xf32, #tpu.memory_space<vmem>>, vector<1x8x256xf32>
    %245 = vector.shape_cast %244 : vector<1x8x256xf32> to vector<8x256xf32>
    %246 = arith.mulf %243, %245 : vector<8x256xf32>
    %247 = arith.addf %242, %246 : vector<8x256xf32>
    %c241_i32_176 = arith.constant 241 : i32
    %248 = tpu.dynamic_rotate %219 by %c241_i32_176 dim 1 : vector<8x256xf32>, i32 -> vector<8x256xf32>
    %c6_177 = arith.constant 6 : index
    %c0_178 = arith.constant 0 : index
    %c0_179 = arith.constant 0 : index
    %249 = vector.load %arg22[%c6_177, %c0_178, %c0_179] : memref<9x8x256xf32, #tpu.memory_space<vmem>>, vector<1x8x256xf32>
    %250 = vector.shape_cast %249 : vector<1x8x256xf32> to vector<8x256xf32>
    %251 = arith.mulf %248, %250 : vector<8x256xf32>
    %252 = arith.addf %247, %251 : vector<8x256xf32>
    %c240_i32_180 = arith.constant 240 : i32
    %253 = tpu.dynamic_rotate %219 by %c240_i32_180 dim 1 : vector<8x256xf32>, i32 -> vector<8x256xf32>
    %c7_181 = arith.constant 7 : index
    %c0_182 = arith.constant 0 : index
    %c0_183 = arith.constant 0 : index
    %254 = vector.load %arg22[%c7_181, %c0_182, %c0_183] : memref<9x8x256xf32, #tpu.memory_space<vmem>>, vector<1x8x256xf32>
    %255 = vector.shape_cast %254 : vector<1x8x256xf32> to vector<8x256xf32>
    %256 = arith.mulf %253, %255 : vector<8x256xf32>
    %257 = arith.addf %252, %256 : vector<8x256xf32>
    %c239_i32_184 = arith.constant 239 : i32
    %258 = tpu.dynamic_rotate %219 by %c239_i32_184 dim 1 : vector<8x256xf32>, i32 -> vector<8x256xf32>
    %c8_185 = arith.constant 8 : index
    %c0_186 = arith.constant 0 : index
    %c0_187 = arith.constant 0 : index
    %259 = vector.load %arg22[%c8_185, %c0_186, %c0_187] : memref<9x8x256xf32, #tpu.memory_space<vmem>>, vector<1x8x256xf32>
    %260 = vector.shape_cast %259 : vector<1x8x256xf32> to vector<8x256xf32>
    %261 = arith.mulf %258, %260 : vector<8x256xf32>
    %262 = arith.addf %257, %261 : vector<8x256xf32>
    %c0_188 = arith.constant 0 : index
    %c0_189 = arith.constant 0 : index
    %263 = vector.load %arg23[%c0_188, %c0_189] : memref<8x1xf32, #tpu.memory_space<vmem>>, vector<8x1xf32>
    %264 = vector.broadcast %263 : vector<8x1xf32> to vector<8x256xf32>
    %265 = arith.addf %262, %264 : vector<8x256xf32>
    %cst_190 = arith.constant 0.000000e+00 : f32
    %266 = vector.broadcast %cst_190 : f32 to vector<8x256xf32>
    %267 = arith.maximumf %265, %266 : vector<8x256xf32>
    %268 = arith.addf %206, %219 : vector<8x256xf32>
    %269 = arith.addf %212, %267 : vector<8x256xf32>
    %c0_191 = arith.constant 0 : index
    %c0_192 = arith.constant 0 : index
    %270 = vector.load %arg24[%c0_191, %c0_192] : memref<16x256xf32, #tpu.memory_space<vmem>>, vector<8x256xf32>
    tpu.vector_store %arg24[%c0_191, %c0_192], %268 {strides = array<i32>} : memref<16x256xf32, #tpu.memory_space<vmem>>, vector<8x256xf32>,
    %c8_193 = arith.constant 8 : index
    %c0_194 = arith.constant 0 : index
    %271 = vector.load %arg24[%c8_193, %c0_194] : memref<16x256xf32, #tpu.memory_space<vmem>>, vector<8x256xf32>
    tpu.vector_store %arg24[%c8_193, %c0_194], %269 {strides = array<i32>} : memref<16x256xf32, #tpu.memory_space<vmem>>, vector<8x256xf32>,
    return
  }
  func.func @transform_0(%arg0: i32) -> (i32, i32) {
    %c0_i32 = arith.constant 0 : i32
    %c0_i32_0 = arith.constant 0 : i32
    return %c0_i32, %arg0 : i32, i32
  }
  func.func @transform_1(%arg0: i32) -> (i32, i32) {
    %c0_i32 = arith.constant 0 : i32
    %c0_i32_0 = arith.constant 0 : i32
    %c0_i32_1 = arith.constant 0 : i32
    return %c0_i32, %c0_i32_0 : i32, i32
  }
  func.func @transform_2(%arg0: i32) -> (i32, i32) {
    %c0_i32 = arith.constant 0 : i32
    %c0_i32_0 = arith.constant 0 : i32
    %c0_i32_1 = arith.constant 0 : i32
    return %c0_i32, %c0_i32_0 : i32, i32
  }
  func.func @transform_3(%arg0: i32) -> (i32, i32, i32) {
    %c0_i32 = arith.constant 0 : i32
    %c0_i32_0 = arith.constant 0 : i32
    %c0_i32_1 = arith.constant 0 : i32
    %c0_i32_2 = arith.constant 0 : i32
    return %c0_i32, %c0_i32_0, %c0_i32_1 : i32, i32, i32
  }
  func.func @transform_4(%arg0: i32) -> (i32, i32) {
    %c0_i32 = arith.constant 0 : i32
    %c0_i32_0 = arith.constant 0 : i32
    %c0_i32_1 = arith.constant 0 : i32
    return %c0_i32, %c0_i32_0 : i32, i32
  }
  func.func @transform_5(%arg0: i32) -> (i32, i32) {
    %c0_i32 = arith.constant 0 : i32
    %c0_i32_0 = arith.constant 0 : i32
    %c0_i32_1 = arith.constant 0 : i32
    return %c0_i32, %c0_i32_0 : i32, i32
  }
  func.func @transform_6(%arg0: i32) -> (i32, i32) {
    %c0_i32 = arith.constant 0 : i32
    %c0_i32_0 = arith.constant 0 : i32
    %c0_i32_1 = arith.constant 0 : i32
    return %c0_i32, %c0_i32_0 : i32, i32
  }
  func.func @transform_7(%arg0: i32) -> (i32, i32, i32) {
    %c0_i32 = arith.constant 0 : i32
    %c0_i32_0 = arith.constant 0 : i32
    %c0_i32_1 = arith.constant 0 : i32
    %c0_i32_2 = arith.constant 0 : i32
    return %c0_i32, %c0_i32_0, %c0_i32_1 : i32, i32, i32
  }
  func.func @transform_8(%arg0: i32) -> (i32, i32) {
    %c0_i32 = arith.constant 0 : i32
    %c0_i32_0 = arith.constant 0 : i32
    %c0_i32_1 = arith.constant 0 : i32
    return %c0_i32, %c0_i32_0 : i32, i32
  }
  func.func @transform_9(%arg0: i32) -> (i32, i32) {
    %c0_i32 = arith.constant 0 : i32
    %c0_i32_0 = arith.constant 0 : i32
    %c0_i32_1 = arith.constant 0 : i32
    return %c0_i32, %c0_i32_0 : i32, i32
  }
  func.func @transform_10(%arg0: i32) -> (i32, i32) {
    %c0_i32 = arith.constant 0 : i32
    %c0_i32_0 = arith.constant 0 : i32
    %c0_i32_1 = arith.constant 0 : i32
    return %c0_i32, %c0_i32_0 : i32, i32
  }
  func.func @transform_11(%arg0: i32) -> (i32, i32) {
    %c0_i32 = arith.constant 0 : i32
    %c0_i32_0 = arith.constant 0 : i32
    %c0_i32_1 = arith.constant 0 : i32
    return %c0_i32, %c0_i32_0 : i32, i32
  }
  func.func @transform_12(%arg0: i32) -> (i32, i32) {
    %c0_i32 = arith.constant 0 : i32
    %c0_i32_0 = arith.constant 0 : i32
    %c0_i32_1 = arith.constant 0 : i32
    return %c0_i32, %c0_i32_0 : i32, i32
  }
  func.func @transform_13(%arg0: i32) -> (i32, i32) {
    %c0_i32 = arith.constant 0 : i32
    %c0_i32_0 = arith.constant 0 : i32
    %c0_i32_1 = arith.constant 0 : i32
    return %c0_i32, %c0_i32_0 : i32, i32
  }
  func.func @transform_14(%arg0: i32) -> (i32, i32) {
    %c0_i32 = arith.constant 0 : i32
    %c0_i32_0 = arith.constant 0 : i32
    %c0_i32_1 = arith.constant 0 : i32
    return %c0_i32, %c0_i32_0 : i32, i32
  }
  func.func @transform_15(%arg0: i32) -> (i32, i32, i32) {
    %c0_i32 = arith.constant 0 : i32
    %c0_i32_0 = arith.constant 0 : i32
    %c0_i32_1 = arith.constant 0 : i32
    %c0_i32_2 = arith.constant 0 : i32
    return %c0_i32, %c0_i32_0, %c0_i32_1 : i32, i32, i32
  }
  func.func @transform_16(%arg0: i32) -> (i32, i32) {
    %c0_i32 = arith.constant 0 : i32
    %c0_i32_0 = arith.constant 0 : i32
    %c0_i32_1 = arith.constant 0 : i32
    return %c0_i32, %c0_i32_0 : i32, i32
  }
  func.func @transform_17(%arg0: i32) -> (i32, i32) {
    %c0_i32 = arith.constant 0 : i32
    %c0_i32_0 = arith.constant 0 : i32
    %c0_i32_1 = arith.constant 0 : i32
    return %c0_i32, %c0_i32_0 : i32, i32
  }
  func.func @transform_18(%arg0: i32) -> (i32, i32) {
    %c0_i32 = arith.constant 0 : i32
    %c0_i32_0 = arith.constant 0 : i32
    %c0_i32_1 = arith.constant 0 : i32
    return %c0_i32, %c0_i32_0 : i32, i32
  }
  func.func @transform_19(%arg0: i32) -> (i32, i32) {
    %c0_i32 = arith.constant 0 : i32
    %c0_i32_0 = arith.constant 0 : i32
    %c0_i32_1 = arith.constant 0 : i32
    return %c0_i32, %c0_i32_0 : i32, i32
  }
  func.func @transform_20(%arg0: i32) -> (i32, i32) {
    %c0_i32 = arith.constant 0 : i32
    %c0_i32_0 = arith.constant 0 : i32
    %c0_i32_1 = arith.constant 0 : i32
    return %c0_i32, %c0_i32_0 : i32, i32
  }
  func.func @transform_21(%arg0: i32) -> (i32, i32, i32) {
    %c0_i32 = arith.constant 0 : i32
    %c0_i32_0 = arith.constant 0 : i32
    %c0_i32_1 = arith.constant 0 : i32
    %c0_i32_2 = arith.constant 0 : i32
    return %c0_i32, %c0_i32_0, %c0_i32_1 : i32, i32, i32
  }
  func.func @transform_22(%arg0: i32) -> (i32, i32) {
    %c0_i32 = arith.constant 0 : i32
    %c0_i32_0 = arith.constant 0 : i32
    %c0_i32_1 = arith.constant 0 : i32
    return %c0_i32, %c0_i32_0 : i32, i32
  }
  func.func @transform_23(%arg0: i32) -> (i32, i32) {
    %c0_i32 = arith.constant 0 : i32
    %c0_i32_0 = arith.constant 0 : i32
    return %c0_i32, %arg0 : i32, i32
  }
}

</mosaic_0001>

<bundles_post_ra>
// kernel: _lambda_.1
= control target key start
LH: loop header
LB: loop body
LE: loop exit
PB: predicated region body
PF: predicated region fallthrough
CT: control target
= control target key end

     0   :  { %s5744_s0 = inlined_call_operand.vmem [shape: f32[8,512], index: 0, kind: input, shape index: {}]   ;;  %s5745_s1 = inlined_call_operand.hbm [shape: bf16[24,8], index: 1, kind: input, shape index: {}]   ;;  %s5746_s2 = inlined_call_operand.hbm [shape: f32[24,1], index: 2, kind: input, shape index: {}]   ;;  %s5747_s3 = inlined_call_operand.hbm [shape: f32[9,24,256], index: 3, kind: input, shape index: {}]   ;;  %s5748_s4 = inlined_call_operand.hbm [shape: f32[24,1], index: 4, kind: input, shape index: {}]   ;;  %s5749_s5 = inlined_call_operand.hbm [shape: f32[48,1], index: 5, kind: input, shape index: {}]   ;;  %s5750_s6 = inlined_call_operand.hbm [shape: f32[48,1], index: 6, kind: input, shape index: {}]   ;;  %s5751_s7 = inlined_call_operand.hbm [shape: f32[9,48,256], index: 7, kind: input, shape index: {}]   ;;  %s5752_s8 = inlined_call_operand.hbm [shape: f32[48,1], index: 8, kind: input, shape index: {}]   ;;  %s5753_s9 = inlined_call_operand.hbm [shape: f32[2,48], index: 9, kind: input, shape index: {}]   ;;  %s5754_s10 = inlined_call_operand.vmem [shape: f32[2,1], index: 10, kind: input, shape index: {}]   ;;  %s5755_s11 = inlined_call_operand.hbm [shape: f32[48,2], index: 11, kind: input, shape index: {}]   ;;  %s5756_s12 = inlined_call_operand.hbm [shape: f32[48,1], index: 12, kind: input, shape index: {}]   ;;  %s5757_s13 = inlined_call_operand.hbm [shape: bf16[8,48], index: 13, kind: input, shape index: {}]   ;;  %s5758_s14 = inlined_call_operand.hbm [shape: f32[8,1], index: 14, kind: input, shape index: {}]   ;;  %s5759_s15 = inlined_call_operand.vmem [shape: f32[9,8,256], index: 15, kind: input, shape index: {}]   ;;  %s5760_s16 = inlined_call_operand.hbm [shape: f32[8,1], index: 16, kind: input, shape index: {}]   ;;  %s5761_s17 = inlined_call_operand.hbm [shape: f32[16,1], index: 17, kind: input, shape index: {}]   ;;  %s5762_s18 = inlined_call_operand.vmem [shape: f32[16,1], index: 18, kind: input, shape index: {}]   ;;  %s5763_s19 = inlined_call_operand.hbm [shape: bf16[8,8], index: 19, kind: input, shape index: {}]   ;;  %s5764_s20 = inlined_call_operand.vmem [shape: f32[8,1], index: 20, kind: input, shape index: {}]   ;;  %s5765_s21 = inlined_call_operand.vmem [shape: f32[9,8,256], index: 21, kind: input, shape index: {}]   ;;  %s5766_s22 = inlined_call_operand.vmem [shape: f32[8,1], index: 22, kind: input, shape index: {}]   ;;  %s5767_s23 = inlined_call_operand.vmem [shape: f32[16,512], index: 23, kind: output, shape index: {}]  }
   0x1   :  { %5806 = sst [smem:[#allocation71_spill]] %s5744_s0 }
   0x2   :  { %5807 = sst [smem:[#allocation72_spill]] %s5745_s1 }
   0x3   :  { %5808 = sst [smem:[#allocation73_spill]] %s5746_s2 }
   0x4   :  { %5809 = sst [smem:[#allocation74_spill]] %s5747_s3 }
   0x5   :  { %5810 = sst [smem:[#allocation75_spill]] %s5748_s4 }
   0x6   :  { %5811 = sst [smem:[#allocation76_spill]] %s5749_s5 }
   0x7   :  { %5812 = sst [smem:[#allocation77_spill]] %s5750_s6 }
   0x8   :  { %5813 = sst [smem:[#allocation78_spill]] %s5751_s7 }
   0x9   :  { %5814 = sst [smem:[#allocation79_spill]] %s5752_s8 }
   0xa   :  { %5815 = sst [smem:[#allocation80_spill]] %s5767_s23 }
   0xb   :  { %28 = vsyncpa [#allocation4], 0 }
   0xc   :  { %29 = vsyncpa [#allocation6], 0 }
   0xd   :  { %30 = vsyncpa [#allocation9], 0 }
   0xe   :  { %31 = vsyncpa [#allocation12], 0 }
   0xf   :  { %32 = vsyncpa [#allocation15], 0 }
  0x10   :  { %33 = vsyncpa [#allocation18], 0 }
  0x11   :  { %34 = vsyncpa [#allocation21], 0 }
  0x12   :  { %35 = vsyncpa [#allocation24], 0 }
  0x13   :  { %36 = vsyncpa [#allocation27], 0  ;;  %s4119_s4 = smov 0   ;;  %s4121_s30 = smov 0  }
  0x14   :  { %s4123_s24 = smov 0  }
  0x15 LB: > { %5816 = sst [smem:[#allocation38_spill]] %s3956_s4  ;;  %s4132_s25 = sadd.s32 4294967295, %s3964_s24   ;;  %s3964_s24 = sphi %s4123_s24, %s5916_s24   ;;  %s3960_s30 = sphi %s4121_s30, %s5918_s30   ;;  %s3956_s4 = sphi %s4119_s4, %s5917_s4  }
  0x16   : > { %5817 = sst [smem:[#allocation39_spill]] %s3960_s30  ;;  %s4134_s5 = sadd.s32 1, %s3964_s24  }
  0x17   : > { %5818 = sst [smem:[#allocation40_spill]] %s4134_s5  ;;  %s534_s1 = ssub.s32 %s3964_s24, %s4134_s5 }
  0x18   : > { %s537_s26 = sadd.s32 1, %s3960_s30  ;;  %p535_p0 = scmp.eq.s32.totalorder %s534_s1, 0 }
  0x19   : > { %p547_p1 = scmp.ne.s32.totalorder %s3960_s30, %s3956_s4  ;;  %p548_p2 = scmp.eq.s32.totalorder %s4132_s25, 1 }
  0x1a   : > { %p3122_p3 = scmp.ge.s32.totalorder %s3964_s24, 1  ;;  %p561_p5 = scmp.lt.s32.totalorder %s3964_s24, 3 }
  0x1b   : > { %s4142_s2 = scalar_select %p535_p0, %s3960_s30, %s537_s26  }
  0x1c   : > { %p4144_p4 = por %p548_p2, %p547_p1  ;;  %p5773_p6 = scmp.eq.s32.totalorder %s4132_s25, 0 }
  0x1d   : > { %5819 = sst [smem:[#allocation41_spill]] %s4142_s2  ;;  %p4149_p7 = pnand %p3122_p3, %p561_p5 }
  0x1e   : > { %s5820_s6 = scalar_select %p4144_p4, 1, 0 }
  0x1f   : > { %s5822_s27 = scalar_select %p4149_p7, 1, 0 }
  0x20   : > { %5821 = sst [smem:[#allocation42_spill]] %s5820_s6  ;;  %s3966_s7 = smov [#allocation5]  }
  0x21   : > { %s586_s28 = sshll.u32 %s3966_s7, 4  ;;  %p3324_p8 = pneg %p4149_p7  ;;  %s587_s28 = int_to_ptr.vmem [resolvable:$true] %s586_s28 }
  0x22   : > { %s3967_s3 = smov [#allocation8]   ;;  %s3968_s24 = smov [#allocation11]  }
  0x23   : > { %p4157_p9 = pnand %p5773_p6, %p3324_p8  ;;  %s612_s0 = sshll.u32 %s3967_s3, 4  ;;  %s613_s0 = int_to_ptr.vmem [resolvable:$true] %s612_s0 }
  0x24   : > { %s638_s1 = sshll.u32 %s3968_s24, 4  ;;  %s3501_s7 = scalar_lea.vmem %s587_s28, 384  ;;  %s639_s1 = int_to_ptr.vmem [resolvable:$true] %s638_s1 }
  0x25   : > { %p4163_p10 = pneg %p4157_p9  ;;  %p3502_p11 = scmp.ne.s32.totalorder %s587_s28, %s3501_s7 }
  0x26   : > { %p3509_p0 = scmp.lt.s32.totalorder %s587_s28, %s587_s28  ;;  %p3510_p1 = scmp.lt.s32.totalorder %s3501_s7, %s3501_s7 }
  0x27   : > { %p3504_p12 = pnand %p3502_p11, %p4163_p10 }
  0x28   : > { %p3511_p2 = por %p3510_p1, %p3509_p0 }
  0x29   : > { %p3505_p13 = pneg %p3504_p12 }
  0x2b   : > { %p3512_p3 = pnand %p3511_p2, %p3505_p13 }
  0x2d   : > { %3515 = shalt.err (!%p3512_p3)
}
  0x2e   : > { %s5775_s3 = smov 128   ;;  %s5777_s24 = smov 8  }
  0x2f   : > { %s5825_s5 = sld [smem:[#allocation73_spill]]  ;;  %s3527_s23 = scalar_lea.vmem %s613_s0, 384 }
  0x30   : > { %p3528_p5 = scmp.ne.s32.totalorder %s613_s0, %s3527_s23  ;;  %p3535_p12 = scmp.lt.s32.totalorder %s613_s0, %s613_s0 }
  0x31   : > { %p3536_p13 = scmp.lt.s32.totalorder %s3527_s23, %s3527_s23 }
  0x32   : > { %p3530_p8 = pnand %p3528_p5, %p4163_p10 }
  0x33   : > { %p3537_p0 = por %p3536_p13, %p3535_p12 }
  0x34   : > { %p3531_p11 = pneg %p3530_p8 }
  0x35   : > { %3330 = dma.hbm_to_vmem [thread:$0]  (!%p4157_p9), %s5825_s5, 384, %s587_s28, [#allocation6], %s5775_s3, %s5775_s3, %s5777_s24  }
  0x36   : > { %p3538_p1 = pnand %p3537_p0, %p3531_p11 }
  0x38   : > { %3541 = shalt.err (!%p3538_p1)
}
  0x39   : > { %s5826_s4 = sld [smem:[#allocation75_spill]]  ;;  %s3553_s30 = scalar_lea.vmem %s639_s1, 768 }
  0x3a   : > { %p3554_p2 = scmp.ne.s32.totalorder %s639_s1, %s3553_s30  ;;  %p3561_p8 = scmp.lt.s32.totalorder %s639_s1, %s639_s1 }
  0x3b   : > { %p3562_p12 = scmp.lt.s32.totalorder %s3553_s30, %s3553_s30 }
  0x3c   : > { %p3556_p3 = pnand %p3554_p2, %p4163_p10 }
  0x3d   : > { %p3563_p11 = por %p3562_p12, %p3561_p8 }
  0x3e   : > { %p3557_p5 = pneg %p3556_p3 }
  0x3f   : > { %3336 = dma.hbm_to_vmem [thread:$0]  (!%p4157_p9), %s5826_s4, 384, %s613_s0, [#allocation9], %s5775_s3, %s5775_s3, %s5777_s24  }
  0x40   : > { %p3564_p13 = pnand %p3563_p11, %p3557_p5 }
  0x42   : > { %3567 = shalt.err (!%p3564_p13)
}
  0x43   : > { %s5827_s2 = sld [smem:[#allocation77_spill]]  ;;  %s3971_s4 = smov [#allocation14]  }
  0x44   : > { %s664_s6 = sshll.u32 %s3971_s4, 4  ;;  %s3972_s28 = smov [#allocation17]   ;;  %s665_s6 = int_to_ptr.vmem [resolvable:$true] %s664_s6 }
  0x45   : > { %s691_s0 = sshll.u32 %s3972_s28, 4  ;;  %s3579_s7 = scalar_lea.vmem %s665_s6, 768  ;;  %s692_s0 = int_to_ptr.vmem [resolvable:$true] %s691_s0 }
  0x46   : > { %p3580_p0 = scmp.ne.s32.totalorder %s665_s6, %s3579_s7  ;;  %p3587_p3 = scmp.lt.s32.totalorder %s665_s6, %s665_s6 }
  0x47   : > { %p3588_p5 = scmp.lt.s32.totalorder %s3579_s7, %s3579_s7 }
  0x48   : > { %p3582_p1 = pnand %p3580_p0, %p4163_p10 }
  0x49   : > { %3342 = dma.hbm_to_vmem [thread:$0]  (!%p4157_p9), %s5827_s2, 768, %s639_s1, [#allocation12], %s5775_s3, %s5775_s3, %s5777_s24  }
  0x4a   : > { %p3583_p2 = pneg %p3582_p1  ;;  %p3589_p8 = por %p3588_p5, %p3587_p3 }
  0x4c   : > { %p3590_p12 = pnand %p3589_p8, %p3583_p2 }
  0x4e   : > { %3593 = shalt.err (!%p3590_p12)
}
  0x4f   : > { %s5828_s8 = sld [smem:[#allocation79_spill]]  ;;  %s3605_s23 = scalar_lea.vmem %s692_s0, 768 }
  0x50   : > { %p3606_p11 = scmp.ne.s32.totalorder %s692_s0, %s3605_s23  ;;  %p3613_p1 = scmp.lt.s32.totalorder %s692_s0, %s692_s0 }
  0x51   : > { %p3614_p3 = scmp.lt.s32.totalorder %s3605_s23, %s3605_s23 }
  0x52   : > { %p3608_p13 = pnand %p3606_p11, %p4163_p10 }
  0x53   : > { %p3615_p2 = por %p3614_p3, %p3613_p1 }
  0x54   : > { %p3609_p0 = pneg %p3608_p13 }
  0x55   : > { %3348 = dma.hbm_to_vmem [thread:$0]  (!%p4157_p9), %s5828_s8, 768, %s665_s6, [#allocation15], %s5775_s3, %s5775_s3, %s5777_s24  }
  0x56   : > { %p3616_p5 = pnand %p3615_p2, %p3609_p0 }
  0x58   : > { %3619 = shalt.err (!%p3616_p5)
}
  0x59   : > { %3354 = dma.hbm_to_vmem [thread:$0]  (!%p4157_p9), %s5755_s11, 768, %s692_s0, [#allocation18], %s5775_s3, %s5775_s3, %s5777_s24  }
  0x5a   : > { %s3973_s4 = smov [#allocation20]   ;;  %s3974_s28 = smov [#allocation23]  }
  0x5b   : > { %s718_s6 = sshll.u32 %s3973_s4, 4  ;;  %s743_s7 = sshll.u32 %s3974_s28, 4  ;;  %s719_s6 = int_to_ptr.vmem [resolvable:$true] %s718_s6  ;;  %s744_s7 = int_to_ptr.vmem [resolvable:$true] %s743_s7 }
  0x5c   : > { %s3631_s1 = scalar_lea.vmem %s719_s6, 64  ;;  %p3639_p13 = scmp.lt.s32.totalorder %s719_s6, %s719_s6 }
  0x5d   : > { %p3632_p8 = scmp.ne.s32.totalorder %s719_s6, %s3631_s1  ;;  %p3640_p0 = scmp.lt.s32.totalorder %s3631_s1, %s3631_s1 }
  0x5f   : > { %p3634_p12 = pnand %p3632_p8, %p4163_p10  ;;  %p3641_p1 = por %p3640_p0, %p3639_p13 }
  0x61   : > { %p3635_p11 = pneg %p3634_p12 }
  0x63   : > { %p3642_p3 = pnand %p3641_p1, %p3635_p11 }
  0x65   : > { %3645 = shalt.err (!%p3642_p3)
}
  0x66   : > { %3360 = dma.hbm_to_vmem [thread:$0]  (!%p4157_p9), %s5757_s13, 64, %s719_s6, [#allocation21]  }
  0x67   : > { %s3657_s0 = scalar_lea.vmem %s744_s7, 128  ;;  %p3665_p8 = scmp.lt.s32.totalorder %s744_s7, %s744_s7 }
  0x68   : > { %p3658_p2 = scmp.ne.s32.totalorder %s744_s7, %s3657_s0  ;;  %p3666_p12 = scmp.lt.s32.totalorder %s3657_s0, %s3657_s0 }
  0x6a   : > { %p3660_p5 = pnand %p3658_p2, %p4163_p10  ;;  %p3667_p4 = por %p3666_p12, %p3665_p8 }
  0x6c   : > { %p3661_p6 = pneg %p3660_p5 }
  0x6e   : > { %p3668_p7 = pnand %p3667_p4, %p3661_p6 }
  0x70   : > { %3671 = shalt.err (!%p3668_p7)
}
  0x71   : > { %3366 = dma.hbm_to_vmem [thread:$0]  (!%p4157_p9), %s5760_s16, 128, %s744_s7, [#allocation24]  }
  0x72   : > { %s3975_s4 = smov [#allocation3]  }
  0x73   : > { %s573_s6 = sshll.u32 %s3975_s4, 4  ;;  %s574_s6 = int_to_ptr.vmem [resolvable:$true] %s573_s6 }
  0x74   : > { %s3683_s28 = scalar_lea.vmem %s574_s6, 192  ;;  %p3691_p1 = scmp.lt.s32.totalorder %s574_s6, %s574_s6 }
  0x75   : > { %p3684_p11 = scmp.ne.s32.totalorder %s574_s6, %s3683_s28  ;;  %p3692_p3 = scmp.lt.s32.totalorder %s3683_s28, %s3683_s28 }
  0x77   : > { %p3686_p13 = pnand %p3684_p11, %p4163_p10  ;;  %p3693_p2 = por %p3692_p3, %p3691_p1 }
  0x79   : > { %p3687_p0 = pneg %p3686_p13 }
  0x7b   : > { %p3694_p4 = pnand %p3693_p2, %p3687_p0 }
  0x7d   : > { %3697 = shalt.err (!%p3694_p4)
}
  0x7e   : > { %s3976_s1 = smov 64   ;;  %s3977_s30 = smov 4  }
  0x7f   : > { %s5829_s0 = sld [smem:[#allocation72_spill]]  ;;  %s3978_s5 = smov [#allocation7]  }
  0x80   : > { %s599_s2 = sshll.u32 %s3978_s5, 4  ;;  %s600_s2 = int_to_ptr.vmem [resolvable:$true] %s599_s2 }
  0x81   : > { %s3709_s4 = scalar_lea.vmem %s600_s2, 6912  ;;  %p3717_p8 = scmp.lt.s32.totalorder %s600_s2, %s600_s2 }
  0x82   : > { %p3710_p6 = scmp.ne.s32.totalorder %s600_s2, %s3709_s4  ;;  %p3718_p12 = scmp.lt.s32.totalorder %s3709_s4, %s3709_s4 }
  0x84   : > { %p3712_p7 = pnand %p3710_p6, %p4163_p10  ;;  %p3719_p11 = por %p3718_p12, %p3717_p8 }
  0x85   : > { %3327 = dma.hbm_to_vmem [thread:$0]  (!%p4157_p9), %s5829_s0, 192, %s574_s6, [#allocation4], %s3976_s1, %s3976_s1, %s3977_s30  }
  0x86   : > { %p3713_p5 = pneg %p3712_p7 }
  0x88   : > { %p3720_p13 = pnand %p3719_p11, %p3713_p5 }
  0x8a   : > { %3723 = shalt.err (!%p3720_p13)
}
  0x8b   : > { %s3979_s28 = smov 256   ;;  %s3980_s3 = smov 16  }
  0x8c   : > { %s5830_s30 = sld [smem:[#allocation74_spill]]  ;;  %s3981_s23 = smov [#allocation10]  }
  0x8d   : > { %s625_s7 = sshll.u32 %s3981_s23, 4  ;;  %s3982_s0 = smov [#allocation13]   ;;  %s626_s7 = int_to_ptr.vmem [resolvable:$true] %s625_s7 }
  0x8e   : > { %s651_s5 = sshll.u32 %s3982_s0, 4  ;;  %s3735_s4 = scalar_lea.vmem %s626_s7, 768  ;;  %s652_s5 = int_to_ptr.vmem [resolvable:$true] %s651_s5 }
  0x8f   : > { %p3736_p0 = scmp.ne.s32.totalorder %s626_s7, %s3735_s4  ;;  %p3743_p2 = scmp.lt.s32.totalorder %s626_s7, %s626_s7 }
  0x90   : > { %p3744_p4 = scmp.lt.s32.totalorder %s3735_s4, %s3735_s4 }
  0x91   : > { %p3738_p1 = pnand %p3736_p0, %p4163_p10 }
  0x92   : > { %3333 = dma.hbm_to_vmem [thread:$0]  (!%p4157_p9), %s5830_s30, 6912, %s600_s2, [#allocation6], %s3979_s28, %s3979_s28, %s3980_s3  }
  0x93   : > { %p3739_p3 = pneg %p3738_p1  ;;  %p3745_p6 = por %p3744_p4, %p3743_p2 }
  0x95   : > { %p3746_p7 = pnand %p3745_p6, %p3739_p3 }
  0x97   : > { %3749 = shalt.err (!%p3746_p7)
}
  0x98   : > { %s5831_s6 = smov 128   ;;  %s5832_s30 = sld [smem:[#allocation76_spill]] }
  0x99   : > { %s3761_s23 = scalar_lea.vmem %s652_s5, 13824  ;;  %p3769_p11 = scmp.lt.s32.totalorder %s652_s5, %s652_s5 }
  0x9a   : > { %p3762_p5 = scmp.ne.s32.totalorder %s652_s5, %s3761_s23  ;;  %p3770_p13 = scmp.lt.s32.totalorder %s3761_s23, %s3761_s23 }
  0x9c   : > { %p3764_p8 = pnand %p3762_p5, %p4163_p10  ;;  %p3771_p0 = por %p3770_p13, %p3769_p11 }
  0x9e   : > { %3339 = dma.hbm_to_vmem [thread:$0]  (!%p4157_p9), %s5832_s30, 768, %s626_s7, [#allocation9], %s5831_s6, %s5831_s6, %s5777_s24  }
  0x9f   : > { %p3765_p12 = pneg %p3764_p8 }
  0xa1   : > { %p3772_p1 = pnand %p3771_p0, %p3765_p12 }
  0xa3   : > { %3775 = shalt.err (!%p3772_p1)
}
  0xa4   : > { %s5833_s2 = sld [smem:[#allocation78_spill]]  ;;  %s3983_s7 = smov [#allocation16]  }
  0xa5   : > { %s678_s1 = sshll.u32 %s3983_s7, 4  ;;  %s3984_s30 = smov [#allocation19]   ;;  %s679_s1 = int_to_ptr.vmem [resolvable:$true] %s678_s1 }
  0xa6   : > { %s704_s24 = sshll.u32 %s3984_s30, 4  ;;  %s3787_s8 = scalar_lea.vmem %s679_s1, 32  ;;  %s705_s24 = int_to_ptr.vmem [resolvable:$true] %s704_s24 }
  0xa7   : > { %p3788_p3 = scmp.ne.s32.totalorder %s679_s1, %s3787_s8  ;;  %p3795_p6 = scmp.lt.s32.totalorder %s679_s1, %s679_s1 }
  0xa8   : > { %p3796_p7 = scmp.lt.s32.totalorder %s3787_s8, %s3787_s8 }
  0xa9   : > { %p3790_p2 = pnand %p3788_p3, %p4163_p10 }
  0xaa   : > { %3345 = dma.hbm_to_vmem [thread:$0]  (!%p4157_p9), %s5833_s2, 13824, %s652_s5, [#allocation12], %s3979_s28, %s3979_s28, %s3980_s3  }
  0xab   : > { %p3791_p4 = pneg %p3790_p2  ;;  %p3797_p5 = por %p3796_p7, %p3795_p6 }
  0xad   : > { %p3798_p8 = pnand %p3797_p5, %p3791_p4 }
  0xaf   : > { %3801 = shalt.err (!%p3798_p8)
}
  0xb0   : > { %3351 = dma.hbm_to_vmem [thread:$0]  (!%p4157_p9), %s5753_s9, 32, %s679_s1, [#allocation15]  }
  0xb1   : > { %s3813_s3 = scalar_lea.vmem %s705_s24, 768  ;;  %p3821_p0 = scmp.lt.s32.totalorder %s705_s24, %s705_s24 }
  0xb2   : > { %p3814_p12 = scmp.ne.s32.totalorder %s705_s24, %s3813_s3  ;;  %p3822_p1 = scmp.lt.s32.totalorder %s3813_s3, %s3813_s3 }
  0xb4   : > { %p3816_p11 = pnand %p3814_p12, %p4163_p10  ;;  %p3823_p3 = por %p3822_p1, %p3821_p0 }
  0xb6   : > { %p3817_p13 = pneg %p3816_p11 }
  0xb8   : > { %p3824_p2 = pnand %p3823_p3, %p3817_p13 }
  0xba   : > { %3827 = shalt.err (!%p3824_p2)
}
  0xbb   : > { %s5834_s8 = smov 8   ;;  %s3985_s4 = smov [#allocation22]  }
  0xbc   : > { %3357 = dma.hbm_to_vmem [thread:$0]  (!%p4157_p9), %s5756_s12, 768, %s705_s24, [#allocation18], %s5831_s6, %s5831_s6, %s5834_s8  }
  0xbd   : > { %s729_s2 = sshll.u32 %s3985_s4, 4  ;;  %s3986_s7 = smov [#allocation25]   ;;  %s730_s2 = int_to_ptr.vmem [resolvable:$true] %s729_s2 }
  0xbe   : > { %s753_s1 = sshll.u32 %s3986_s7, 4  ;;  %s3839_s30 = scalar_lea.vmem %s730_s2, 128  ;;  %s754_s1 = int_to_ptr.vmem [resolvable:$true] %s753_s1 }
  0xbf   : > { %p3840_p4 = scmp.ne.s32.totalorder %s730_s2, %s3839_s30  ;;  %p3847_p5 = scmp.lt.s32.totalorder %s730_s2, %s730_s2 }
  0xc0   : > { %p3848_p8 = scmp.lt.s32.totalorder %s3839_s30, %s3839_s30 }
  0xc1   : > { %p3842_p6 = pnand %p3840_p4, %p4163_p10 }
  0xc2   : > { %p3849_p12 = por %p3848_p8, %p3847_p5 }
  0xc3   : > { %p3843_p7 = pneg %p3842_p6 }
  0xc5   : > { %p3850_p11 = pnand %p3849_p12, %p3843_p7 }
  0xc7   : > { %3853 = shalt.err (!%p3850_p11)
}
  0xc8   : > { %3363 = dma.hbm_to_vmem [thread:$0]  (!%p4157_p9), %s5758_s14, 128, %s730_s2, [#allocation21]  }
  0xc9   : > { %s3865_s24 = scalar_lea.vmem %s754_s1, 256  ;;  %p3873_p3 = scmp.lt.s32.totalorder %s754_s1, %s754_s1 }
  0xca   : > { %p3866_p13 = scmp.ne.s32.totalorder %s754_s1, %s3865_s24  ;;  %p3874_p2 = scmp.lt.s32.totalorder %s3865_s24, %s3865_s24 }
  0xcc   : > { %p3868_p0 = pnand %p3866_p13, %p4163_p10  ;;  %p3875_p4 = por %p3874_p2, %p3873_p3 }
  0xce   : > { %p3869_p1 = pneg %p3868_p0 }
  0xd0   : > { %p3876_p6 = pnand %p3875_p4, %p3869_p1 }
  0xd2   : > { %3879 = shalt.err (!%p3876_p6)
}
  0xd3   : > { %3369 = dma.hbm_to_vmem [thread:$0]  (!%p4157_p9), %s5761_s17, 256, %s754_s1, [#allocation24], %s5831_s6, %s5831_s6, %s5834_s8  }
  0xd4   : > { %s3987_s5 = smov [#allocation26]  }
  0xd5   : > { %s770_s4 = sshll.u32 %s3987_s5, 4  ;;  %s771_s4 = int_to_ptr.vmem [resolvable:$true] %s770_s4 }
  0xd6   : > { %s3891_s2 = scalar_lea.vmem %s771_s4, 64  ;;  %p3899_p12 = scmp.lt.s32.totalorder %s771_s4, %s771_s4 }
  0xd7   : > { %p3892_p7 = scmp.ne.s32.totalorder %s771_s4, %s3891_s2  ;;  %p3900_p11 = scmp.lt.s32.totalorder %s3891_s2, %s3891_s2 }
  0xd9   : > { %p3894_p5 = pnand %p3892_p7, %p4163_p10  ;;  %p3901_p13 = por %p3900_p11, %p3899_p12 }
  0xdb   : > { %p3895_p8 = pneg %p3894_p5 }
  0xdd   : > { %p3902_p0 = pnand %p3901_p13, %p3895_p8 }
  0xdf   : > { %3905 = shalt.err (!%p3902_p0)
}
  0xe0   : > { %3372 = dma.hbm_to_vmem [thread:$0]  (!%p4157_p9), %s5763_s19, 64, %s771_s4, [#allocation27]  }
  0xe1   : > { %p5835_p1 = scmp.ne.s32.totalorder %s5822_s27, 0 }
  0xe3   : > { %801 = sbr.rel (%p5835_p1) target bundleno = 2016 (0x7e0), region = 112 }
  0xe8   : > { %p5836_p3 = scmp.eq.s32.totalorder %s4132_s25, 0 }
  0xea   : > { %3919 = dma.done.wait (%p5836_p3), [#allocation4], 192   ;;  %p5837_p10 = pmov %p5836_p3 }
  0xeb   : > { %p5838_p2 = pmov %p5836_p3 }
  0xec   : > { %3921 = vsyncadd (%p5837_p10), [#allocation4], 4294967104 }
  0xed   : > { %3923 = dma.done.wait (%p5838_p2), [#allocation6], 7296   ;;  %p5839_p4 = pmov %p5838_p2 }
  0xee   : > { %p5840_p6 = pmov %p5838_p2 }
  0xef   : > { %3925 = vsyncadd (%p5839_p4), [#allocation6], 4294960000 }
  0xf0   : > { %3927 = dma.done.wait (%p5840_p6), [#allocation9], 1152   ;;  %p5841_p9 = pmov %p5838_p2 }
  0xf1   : > { %p5842_p7 = pmov %p5838_p2 }
  0xf2   : > { %3929 = vsyncadd (%p5841_p9), [#allocation9], 4294966144 }
  0xf3   : > { %3931 = dma.done.wait (%p5842_p7), [#allocation12], 14592   ;;  %p5843_p5 = pmov %p5838_p2 }
  0xf4   : > { %p5844_p8 = pmov %p5838_p2 }
  0xf5   : > { %3933 = vsyncadd (%p5843_p5), [#allocation12], 4294952704 }
  0xf6   : > { %3935 = dma.done.wait (%p5844_p8), [#allocation15], 800   ;;  %p5845_p12 = pmov %p5838_p2 }
  0xf7   : > { %p5846_p11 = pmov %p5838_p2 }
  0xf8   : > { %3937 = vsyncadd (%p5845_p12), [#allocation15], 4294966496 }
  0xf9   : > { %3939 = dma.done.wait (%p5846_p11), [#allocation18], 1536   ;;  %p5847_p13 = pmov %p5838_p2 }
  0xfa   : > { %p5848_p0 = pmov %p5838_p2 }
  0xfb   : > { %3941 = vsyncadd (%p5847_p13), [#allocation18], 4294965760 }
  0xfc   : > { %3943 = dma.done.wait (%p5848_p0), [#allocation21], 192   ;;  %p5849_p1 = pmov %p5848_p0 }
  0xfd   : > { %p5850_p3 = pmov %p5848_p0 }
  0xfe   : > { %3945 = vsyncadd (%p5849_p1), [#allocation21], 4294967104 }
  0xff   : > { %3947 = dma.done.wait (%p5850_p3), [#allocation24], 384   ;;  %p5851_p10 = pmov %p5848_p0 }
 0x100   : > { %p5852_p2 = pmov %p5848_p0 }
 0x101   : > { %3949 = vsyncadd (%p5851_p10), [#allocation24], 4294966912 }
 0x102   : > { %3951 = dma.done.wait (%p5852_p2), [#allocation27], 64   ;;  %p5853_p4 = pmov %p5848_p0 }
 0x103   : > { %s3158_s27 = sshll.u32 %s4132_s25, 1  ;;  %v5779_v0 = vmov 0   ;;  %s5854_s8 = sld [smem:[#allocation71_spill]]  ;;  %vm972_vm0 = vcmask 1043456   ;;  %v939_v5 = vld [vmem:[#allocation5] sm:$0xff]  ;;  %v3464_v7 = vld [vmem:[#allocation3] sm:$0xff]  }
 0x104   : > { %3953 = vsyncadd (%p5853_p4), [#allocation27], 4294967232  ;;  %p925_p6 = scmp.lt.s32.totalorder %s3158_s27, 3  ;;  %1011 = vmatprep.mubr.bf16.mxu0 %v5779_v0  ;;  %3463 = vset.pattern.permute.xlu1 %v5779_v0  ;;  %vm965_vm1 = vcmask 64512   ;;  %v1356_v8 = vld [vmem:[#allocation8 + $0x10] sm:$0xff]  ;;  %v941_v9 = vld [vmem:[#allocation5 + $0x10] sm:$0xff] }
 0x105   : > { %3462 = vset.pattern.permute.xlu0 %v5779_v0  ;;  %944 = vperm.xlu1 %3463, %v939_v5   ;;  %v940_v10 = vld [vmem:[#allocation5 + $0x8] sm:$0xff]  ;;  %v1355_v12 = vld [vmem:[#allocation8 + $0x8] sm:$0xff]  ;;  %v3465_v13 = vld [vmem:[#allocation3 + $0x8] ss:$0 sps:$4 sm:$0xff]   ;;  %s3989_s23 = smov 112   ;;  %s3990_s0 = smov 17  }
 0x106   : > { %s5920_s27 = smov (!%p925_p6, %s3158_s27), 3  ;;  %954 = vperm.xlu0 %3462, %v941_v9   ;;  %v1354_v11 = vld [vmem:[#allocation8] sm:$0xff]  ;;  %v1445_v14 = vld [vmem:[#allocation10 + $0x20] sm:$0xff]  ;;  %v1444_v16 = vld [vmem:[#allocation10 + $0x18] sm:$0xff]  ;;  %s3991_s24 = smov 16   ;;  %vm3998_vm10 = vmmov 0  }
 0x107   : > { %s3159_s29 = sshll.u32 %s5920_s27, 3  ;;  %v1446_v15 = vld [vmem:[#allocation10 + $0x28] sm:$0xff]  ;;  %v1470_v17 = vld [vmem:[#allocation11 + $0x28] sm:$0xff]  ;;  %v1386_v18 = vld [vmem:[#allocation10 + $0x10] sm:$0xff]  ;;  %s3992_s3 = smov 15   ;;  %vm2211_vm11 = vcmask 392192  }
 0x108   : > { %v1469_v19 = vld [vmem:[#allocation11 + $0x20] sm:$0xff]  ;;  %v1385_v20 = vld [vmem:[#allocation10 + $0x8] sm:$0xff]  ;;  %v1384_v22 = vld [vmem:[#allocation10] sm:$0xff]  ;;  %s3993_s28 = smov 1   ;;  %s3994_s5 = smov 127   ;;  %vm2298_vm12 = vcmask 15360  }
 0x109   : > { %s928_s1 = scalar_lea.vmem %s5854_s8, %s3159_s29  ;;  %1369 = vperm.xlu1 %3463, %v1356_v8   ;;  %v1468_v21 = vld [vmem:[#allocation11 + $0x18] sm:$0xff]  ;;  %v1410_v23 = vld [vmem:[#allocation11 + $0x10] sm:$0xff]  ;;  %v1408_v24 = vld [vmem:[#allocation11] sm:$0xff]  ;;  %s3995_s4 = smov 113   ;;  %vm2317_vm13 = vcmask 1041408  }
 0x10a   : > { %v933_v1 = vld [vmem:[%s928_s1 + $0x8] sm:$0xff]  ;;  %v932_v2 = vld [vmem:[%s928_s1] sm:$0xff]  ;;  %949 = vperm.xlu0 %3462, %v940_v10   ;;  %v2129_v27 = vld [vmem:[#allocation14 + $0x28] sm:$0xff]  ;;  %s3996_s2 = smov 111   ;;  %s5913_s8 = sld [smem:[#allocation42_spill]] }
 0x10b   : > { %v4354_v3 = vpack.c.bf16 %v933_v1, %v933_v1  ;;  %v934_v4 = vpack.c.bf16 %v932_v2, %v932_v2  ;;  %v1409_v25 = vld [vmem:[#allocation11 + $0x8] sm:$0xff]  ;;  %v2128_v26 = vld [vmem:[#allocation14 + $0x20] sm:$0xff]  ;;  %v2126_v28 = vld [vmem:[#allocation14 + $0x10] sm:$0xff] }
 0x10c   : > { %v2127_v29 = vld [vmem:[#allocation14 + $0x18] sm:$0xff] }
 0x10d   : > { %5855 = vst [vmem:[#allocation43_spill] sm:$0xff] %v4354_v3  ;;  %3162 = vmatprep.subr.msk.bf16.mxu0 %vm972_vm0, %v4354_v3  ;;  %v4359_v6 = vsel %vm972_vm0, %v934_v4, 0  ;;  %1359 = vperm.xlu1 %3463, %v1354_v11  }
 0x10e   : > { %5856 = vst [vmem:[#allocation44_spill] sm:$0xff] %v4359_v6  ;;  %994 = vmatpush1.bf16.msra.mxu0 %v4359_v6  ;;  %1364 = vperm.xlu0 %3462, %v1355_v12  }
 0x110   : > { %p5914_p9 = scmp.ne.s32.totalorder %s5913_s8, 0 }
 0x111   : > { %3163 = vmatmul.mubr.msk.bf16.vlgmr.msra.gmra.mxu0 %vm965_vm1, %v3464_v7  ;;  %1454 = vperm.xlu1 %3463, %v1445_v14   ;;  %s3219_s1 = sshll.u32 (%p5914_p9), %s4132_s25, 4 }
 0x112   : > { %1021 = vmatprep.mubr.bf16.mxu0 %v5779_v0  ;;  %1459 = vperm.xlu0 %3462, %v1446_v15  }
 0x115   : > { %1449 = vperm.xlu1 %3463, %v1444_v16  }
 0x116   : > { %1483 = vperm.xlu0 %3462, %v1470_v17  }
 0x119   : > { %3164 = vmatmul.mubr.msk.bf16.gmra.mxu0 %vm965_vm1, %v3465_v13  ;;  %1399 = vperm.xlu1 %3463, %v1386_v18  }
 0x11a   : > { %2542 = vmatprep.mubr.bf16.mxu0 %v5779_v0  ;;  %1478 = vperm.xlu0 %3462, %v1469_v19  }
 0x11d   : > { %1394 = vperm.xlu1 %3463, %v1385_v20  }
 0x11e   : > { %1473 = vperm.xlu0 %3462, %v1468_v21  }
 0x121   : > { %1389 = vperm.xlu1 %3463, %v1384_v22  }
 0x122   : > { %1423 = vperm.xlu0 %3462, %v1410_v23  }
 0x125   : > { %1413 = vperm.xlu1 %3463, %v1408_v24  }
 0x126   : > { %1418 = vperm.xlu0 %3462, %v1409_v25  }
 0x129   : > { %2152 = vperm.xlu1 %3463, %v2128_v26  }
 0x12a   : > { %2157 = vperm.xlu0 %3462, %v2129_v27  }
 0x12d   : > { %2142 = vperm.xlu1 %3463, %v2126_v28   ;;  %v1048_v28 = vlaneseq }
 0x12e   : > { %2147 = vperm.xlu0 %3462, %v2127_v29  }
 0x180   : > { %v945_v30 = vpop.permute.xlu1 %944 }
 0x181   : > { %v955_v44 = vpop.permute.xlu0 %954 }
 0x184   : > { %v4388_v43 = vpop.permute.xlu1 %1369 }
 0x185   : > { %v950_v46 = vpop.permute.xlu0 %949 }
 0x188   : > { %v4398_v45 = vpop.permute.xlu1 %1359 }
 0x189   : > { %v4455_v61 = vpop.permute.xlu0 %1364 }
 0x18c   : > { %v4404_v48 = vpop.permute.xlu1 %1454 }
 0x18d   : > { %v4467_v63 = vpop.permute.xlu0 %1459 }
 0x190   : > { %v4416_v51 = vpop.permute.xlu1 %1449 }
 0x191   : > { %v4473_v1 = vpop.permute.xlu0 %1483 }
 0x194   : > { %v4424_v53 = vpop.permute.xlu1 %1399 }
 0x195   : > { %v4484_v4 = vpop.permute.xlu0 %1478 }
 0x198   : > { %v4434_v54 = vpop.permute.xlu1 %1394 }
 0x199   : > { %v4493_v9 = vpop.permute.xlu0 %1473 }
 0x19c   : > { %v1390_v55 = vpop.permute.xlu1 %1389 }
 0x19d   : > { %v4505_v11 = vpop.permute.xlu0 %1423 }
 0x1a0   : > { %v1414_v57 = vpop.permute.xlu1 %1413 }
 0x1a1   : > { %v1419_v12 = vpop.permute.xlu0 %1418 }
 0x1a4   : > { %v4515_v13 = vpop.permute.xlu1 %2152 }
 0x1a5   : > { %v4517_v14 = vpop.permute.xlu0 %2157 }
 0x1a6   : > { %5857 = vst [vmem:[#allocation45_spill] sm:$0xff] %v4517_v14 }
 0x1a8   : > { %v4527_v15 = vpop.permute.xlu1 %2142 }
 0x1a9   : > { %5858 = vst [vmem:[#allocation46_spill] sm:$0xff] %v4527_v15  ;;  %v4529_v16 = vpop.permute.xlu0 %2147  ;;  %v1620_v15 = vld [vmem:[#allocation13 + $0x98] sm:$0xff] }
 0x1aa   : > { %5859 = vst [vmem:[#allocation47_spill] sm:$0xff] %v4529_v16 }
 0x1d1   : > { %v1013_v31 = vpop.f32.mrf.mxu0 }
 0x1d2   : > { %v1014_v32 = vadd.f32 %v1013_v31, %v945_v30 }
 0x1d3   : > { %v1015_v33 = vpop.f32.mrf.mxu0 }
 0x1d4   : > { %v4366_v34 = vmax.f32 %v1014_v32, 0.0  ;;  %v1016_v35 = vadd.f32 %v1015_v33, %v945_v30  ;;  %v4561_v32 = vand.u32 127, %v1048_v28 }
 0x1d5   : > { %v1017_v36 = vpop.f32.mrf.mxu0 }
 0x1d6   : > { %1278 = vrot.lane.b32.xlu0 %v4366_v34, %s3989_s23  ;;  %1036 = vrot.lane.b32.xlu1 %v4366_v34, %s3990_s0  ;;  %v4372_v38 = vmax.f32 %v1016_v35, 0.0  ;;  %v1018_v47 = vadd.f32 %v1017_v36, %v950_v46  ;;  %v1402_v56 = vmul.f32 %v1390_v55, %v4366_v34  ;;  %vm1081_vm2 = vcmp.lt.s32.totalorder %v4561_v32, 16 }
 0x1d7   : > { %v1019_v37 = vpop.f32.mrf.mxu0  ;;  %vm1050_vm3 = vcmp.lt.s32.totalorder %v4561_v32, 17  ;;  %vm1119_vm4 = vcmp.lt.s32.totalorder %v4561_v32, 15  ;;  %vm1157_vm5 = vcmp.lt.s32.totalorder %v4561_v32, 1  ;;  %vm1214_vm6 = vcmp.lt.s32.totalorder %v4561_v32, 127 }
 0x1d8   : > { %v4410_v49 = vmax.f32 %v1018_v47, 0.0  ;;  %v1020_v50 = vadd.f32 %v1019_v37, %v950_v46  ;;  %v1426_v58 = vadd.f32 %v1414_v57, %v1402_v56  ;;  %v1403_v2 = vmul.f32 %v1390_v55, %v4372_v38  ;;  %v1128_v47 = vld [vmem:[#allocation7 + $0x68] sm:$0xff] }
 0x1d9   : > { %v1023_v39 = vpop.f32.mrf.mxu0  ;;  %vm1252_vm7 = vcmp.lt.s32.totalorder %v4561_v32, 113  ;;  %vm1290_vm8 = vcmp.lt.s32.totalorder %v4561_v32, 112  ;;  %vm1328_vm9 = vcmp.lt.s32.totalorder %v4561_v32, 111 }
 0x1da   : > { %1042 = vrot.lane.b32.xlu0 %v4372_v38, %s3990_s0  ;;  %1069 = vrot.lane.b32.xlu1 %v4366_v34, %s3991_s24  ;;  %v4418_v52 = vmax.f32 %v1020_v50, 0.0  ;;  %v1024_v59 = vadd.f32 %v1023_v39, %v955_v44  ;;  %v4453_v60 = vmax.f32 %v1426_v58, 0.0  ;;  %v1427_v5 = vadd.f32 %v1414_v57, %v1403_v2  ;;  %v1090_v39 = vld [vmem:[#allocation7 + $0x38] sm:$0xff]  ;;  %v1127_v57 = vld [vmem:[#allocation7 + $0x60] sm:$0xff] }
 0x1db   : > { %v4378_v40 = vpop.f32.mrf.mxu0  ;;  %v1404_v17 = vmul.f32 %v4434_v54, %v4410_v49 }
 0x1dc   : > { %v4461_v62 = vmax.f32 %v1024_v59, 0.0  ;;  %v1026_v7 = vadd.f32 %v4378_v40, %v955_v44  ;;  %v4491_v8 = vmax.f32 %v1427_v5, 0.0  ;;  %v1405_v23 = vmul.f32 %v4434_v54, %v4418_v52  ;;  %v1058_v44 = vld [vmem:[#allocation7 + $0x8] sm:$0xff]  ;;  %v1057_v54 = vld [vmem:[#allocation7] sm:$0xff] }
 0x1dd   : > { %v1027_v41 = vpop.f32.mrf.mxu0  ;;  %v1428_v20 = vadd.f32 %v1419_v12, %v1404_v17 }
 0x1de   : > { %1075 = vrot.lane.b32.xlu0 %v4372_v38, %s3991_s24  ;;  %1107 = vrot.lane.b32.xlu1 %v4366_v34, %s3992_s3  ;;  %v4499_v10 = vmax.f32 %v1026_v7, 0.0  ;;  %v1429_v27 = vadd.f32 %v1419_v12, %v1405_v23  ;;  %v1089_v41 = vld [vmem:[#allocation7 + $0x30] sm:$0xff]  ;;  %v1166_v7 = vld [vmem:[#allocation7 + $0x98] sm:$0xff] }
 0x1df   : > { %v1028_v42 = vpop.f32.mrf.mxu0  ;;  %v4549_v24 = vmax.f32 %v1428_v20, 0.0 }
 0x1e0   : > { %v4559_v31 = vmax.f32 %v1429_v27, 0.0 }
 0x1e2   : > { %1113 = vrot.lane.b32.xlu0 %v4372_v38, %s3992_s3  ;;  %1145 = vrot.lane.b32.xlu1 %v4366_v34, %s3993_s28 }
 0x1e6   : > { %1151 = vrot.lane.b32.xlu0 %v4372_v38, %s3993_s28  ;;  %1202 = vrot.lane.b32.xlu1 %v4366_v34, %s3994_s5 }
 0x1ea   : > { %1208 = vrot.lane.b32.xlu0 %v4372_v38, %s3994_s5  ;;  %1240 = vrot.lane.b32.xlu1 %v4366_v34, %s3995_s4 }
 0x1ee   : > { %1246 = vrot.lane.b32.xlu0 %v4372_v38, %s3995_s4  ;;  %1316 = vrot.lane.b32.xlu1 %v4366_v34, %s3996_s2 }
 0x1f2   : > { %1322 = vrot.lane.b32.xlu0 %v4372_v38, %s3996_s2  ;;  %1284 = vrot.lane.b32.xlu1 %v4372_v38, %s3989_s23 }
 0x1f6   : > { %1318 = vrot.lane.b32.xlu0 %v4410_v49, %s3996_s2  ;;  %1038 = vrot.lane.b32.xlu1 %v4410_v49, %s3990_s0 }
 0x1fa   : > { %1044 = vrot.lane.b32.xlu0 %v4418_v52, %s3990_s0  ;;  %1071 = vrot.lane.b32.xlu1 %v4410_v49, %s3991_s24 }
 0x1fe   : > { %1077 = vrot.lane.b32.xlu0 %v4418_v52, %s3991_s24  ;;  %1109 = vrot.lane.b32.xlu1 %v4410_v49, %s3992_s3 }
 0x202   : > { %1115 = vrot.lane.b32.xlu0 %v4418_v52, %s3992_s3  ;;  %1147 = vrot.lane.b32.xlu1 %v4410_v49, %s3993_s28 }
 0x206   : > { %1153 = vrot.lane.b32.xlu0 %v4418_v52, %s3993_s28  ;;  %1204 = vrot.lane.b32.xlu1 %v4410_v49, %s3994_s5 }
 0x20a   : > { %1210 = vrot.lane.b32.xlu0 %v4418_v52, %s3994_s5  ;;  %1242 = vrot.lane.b32.xlu1 %v4410_v49, %s3995_s4 }
 0x20e   : > { %1248 = vrot.lane.b32.xlu0 %v4418_v52, %s3995_s4  ;;  %1280 = vrot.lane.b32.xlu1 %v4410_v49, %s3989_s23 }
 0x212   : > { %1286 = vrot.lane.b32.xlu0 %v4418_v52, %s3989_s23  ;;  %1324 = vrot.lane.b32.xlu1 %v4418_v52, %s3996_s2 }
 0x216   : > { %1905 = vrot.lane.b32.xlu1 %v4453_v60, %s3995_s4  ;;  %1516 = vrot.lane.b32.xlu0 %v4453_v60, %s3990_s0 }
 0x21a   : > { %1040 = vrot.lane.b32.xlu1 %v4461_v62, %s3990_s0  ;;  %1576 = vrot.lane.b32.xlu0 %v4453_v60, %s3991_s24 }
 0x21e   : > { %1073 = vrot.lane.b32.xlu1 %v4461_v62, %s3991_s24  ;;  %1649 = vrot.lane.b32.xlu0 %v4453_v60, %s3992_s3 }
 0x222   : > { %1111 = vrot.lane.b32.xlu1 %v4461_v62, %s3992_s3  ;;  %1722 = vrot.lane.b32.xlu0 %v4453_v60, %s3993_s28 }
 0x226   : > { %1149 = vrot.lane.b32.xlu1 %v4461_v62, %s3993_s28  ;;  %1832 = vrot.lane.b32.xlu0 %v4453_v60, %s3994_s5 }
 0x22a   : > { %1206 = vrot.lane.b32.xlu1 %v4461_v62, %s3994_s5  ;;  %1978 = vrot.lane.b32.xlu0 %v4453_v60, %s3989_s23 }
 0x22e   : > { %1244 = vrot.lane.b32.xlu1 %v4461_v62, %s3995_s4  ;;  %1917 = vrot.lane.b32.xlu0 %v4491_v8, %s3995_s4 }
 0x232   : > { %1282 = vrot.lane.b32.xlu1 %v4461_v62, %s3989_s23  ;;  %1046 = vrot.lane.b32.xlu0 %v4499_v10, %s3990_s0 }
 0x236   : > { %1320 = vrot.lane.b32.xlu1 %v4461_v62, %s3996_s2  ;;  %1079 = vrot.lane.b32.xlu0 %v4499_v10, %s3991_s24 }
 0x23a   : > { %1528 = vrot.lane.b32.xlu1 %v4491_v8, %s3990_s0  ;;  %1117 = vrot.lane.b32.xlu0 %v4499_v10, %s3992_s3 }
 0x23e   : > { %1588 = vrot.lane.b32.xlu1 %v4491_v8, %s3991_s24  ;;  %1155 = vrot.lane.b32.xlu0 %v4499_v10, %s3993_s28 }
 0x242   : > { %1661 = vrot.lane.b32.xlu1 %v4491_v8, %s3992_s3  ;;  %1212 = vrot.lane.b32.xlu0 %v4499_v10, %s3994_s5 }
 0x246   : > { %1734 = vrot.lane.b32.xlu1 %v4491_v8, %s3993_s28  ;;  %1250 = vrot.lane.b32.xlu0 %v4499_v10, %s3995_s4 }
 0x248   : > { %v4537_v18 = vpop.permute.xlu0 %1278  ;;  %v1037_v19 = vpop.permute.xlu1 %1036 }
 0x24a   : > { %1844 = vrot.lane.b32.xlu1 %v4491_v8, %s3994_s5  ;;  %1288 = vrot.lane.b32.xlu0 %v4499_v10, %s3989_s23 }
 0x24c   : > { %v1043_v21 = vpop.permute.xlu0 %1042  ;;  %v1070_v22 = vpop.permute.xlu1 %1069 }
 0x24d   : > { %v1051_v46 = vsel %vm1050_vm3, %v1037_v19, %v1043_v21  ;;  %v1054_v55 = vsel %vm1050_vm3, %v1043_v21, %v1037_v19 }
 0x24e   : > { %1990 = vrot.lane.b32.xlu1 %v4491_v8, %s3989_s23  ;;  %1326 = vrot.lane.b32.xlu0 %v4499_v10, %s3996_s2  ;;  %v1064_v17 = vmul.f32 %v1058_v44, %v1051_v46  ;;  %v1063_v19 = vmul.f32 %v1057_v54, %v1054_v55  ;;  %v1184_v44 = vld [vmem:[#allocation7 + $0xc0] sm:$0xff]  ;;  %v1223_v55 = vld [vmem:[#allocation7 + $0xf8] sm:$0xff] }
 0x250   : > { %v1076_v25 = vpop.permute.xlu0 %1075  ;;  %v1108_v26 = vpop.permute.xlu1 %1107 }
 0x251   : > { %v1082_v40 = vsel %vm1081_vm2, %v1070_v22, %v1076_v25  ;;  %v1085_v42 = vsel %vm1081_vm2, %v1076_v25, %v1070_v22  ;;  %v1165_v22 = vld [vmem:[#allocation7 + $0x90] sm:$0xff] }
 0x252   : > { %1834 = vrot.lane.b32.xlu1 %v4549_v24, %s3994_s5  ;;  %1518 = vrot.lane.b32.xlu0 %v4549_v24, %s3990_s0  ;;  %v1096_v56 = vmul.f32 %v1090_v39, %v1082_v40  ;;  %v1095_v5 = vmul.f32 %v1089_v41, %v1085_v42 }
 0x254   : > { %v1114_v29 = vpop.permute.xlu0 %1113  ;;  %v1146_v30 = vpop.permute.xlu1 %1145  ;;  %v1102_v25 = vadd.f32 %v1096_v56, %v1064_v17  ;;  %v1101_v39 = vadd.f32 %v1095_v5, %v1063_v19 }
 0x255   : > { %v1120_v50 = vsel %vm1119_vm4, %v1108_v26, %v1114_v29  ;;  %v1123_v58 = vsel %vm1119_vm4, %v1114_v29, %v1108_v26  ;;  %v1406_v29 = vmul.f32 %v4424_v53, %v4461_v62 }
 0x256   : > { %1980 = vrot.lane.b32.xlu1 %v4549_v24, %s3989_s23  ;;  %1578 = vrot.lane.b32.xlu0 %v4549_v24, %s3991_s24  ;;  %v1134_v20 = vmul.f32 %v1128_v47, %v1120_v50  ;;  %v1133_v21 = vmul.f32 %v1127_v57, %v1123_v58  ;;  %v1222_v58 = vld [vmem:[#allocation7 + $0xf0] sm:$0xff] }
 0x257   : > { %v1430_v50 = vadd.f32 %v4505_v11, %v1406_v29 }
 0x258   : > { %v1152_v33 = vpop.permute.xlu0 %1151  ;;  %v1203_v35 = vpop.permute.xlu1 %1202  ;;  %v1140_v41 = vadd.f32 %v1134_v20, %v1102_v25 }
 0x259   : > { %v1158_v12 = vsel %vm1157_vm5, %v1146_v30, %v1152_v33  ;;  %v1161_v23 = vsel %vm1157_vm5, %v1152_v33, %v1146_v30  ;;  %v1139_v30 = vadd.f32 %v1133_v21, %v1101_v39  ;;  %v1185_v33 = vld [vmem:[#allocation7 + $0xc8] sm:$0xff]  ;;  %v4633_v19 = vmax.f32 %v1430_v50, 0.0 }
 0x25a   : > { %1530 = vrot.lane.b32.xlu1 %v4559_v31, %s3990_s0  ;;  %1651 = vrot.lane.b32.xlu0 %v4549_v24, %s3992_s3  ;;  %v1172_v26 = vmul.f32 %v1166_v7, %v1158_v12  ;;  %v1171_v40 = vmul.f32 %v1165_v22, %v1161_v23  ;;  %v1191_v57 = vmul.f32 %v1185_v33, %v4372_v38  ;;  %v1261_v12 = vld [vmem:[#allocation7 + $0x128] sm:$0xff] }
 0x25b   : > { %v1190_v7 = vmul.f32 %v1184_v44, %v4366_v34  ;;  %v1407_v38 = vmul.f32 %v4424_v53, %v4499_v10  ;;  %v1298_v53 = vld [vmem:[#allocation7 + $0x150] sm:$0xff] }
 0x25c   : > { %v1209_v36 = vpop.permute.xlu0 %1208  ;;  %v4570_v37 = vpop.permute.xlu1 %1240  ;;  %v1178_v42 = vadd.f32 %v1172_v26, %v1140_v41  ;;  %v1177_v54 = vadd.f32 %v1171_v40, %v1139_v30  ;;  %v1299_v26 = vld [vmem:[#allocation7 + $0x158] sm:$0xff] }
 0x25d   : > { %v1218_v56 = vsel %vm1214_vm6, %v1209_v36, %v1203_v35  ;;  %v1215_v5 = vsel %vm1214_vm6, %v1203_v35, %v1209_v36  ;;  %v1260_v36 = vld [vmem:[#allocation7 + $0x120] sm:$0xff] }
 0x25e   : > { %1590 = vrot.lane.b32.xlu1 %v4559_v31, %s3991_s24  ;;  %1724 = vrot.lane.b32.xlu0 %v4549_v24, %s3993_s28  ;;  %v1197_v20 = vadd.f32 %v1191_v57, %v1178_v42  ;;  %v1229_v35 = vmul.f32 %v1223_v55, %v1218_v56  ;;  %v1196_v21 = vadd.f32 %v1190_v7, %v1177_v54  ;;  %v1336_v56 = vld [vmem:[#allocation7 + $0x180] sm:$0xff] }
 0x25f   : > { %v1228_v25 = vmul.f32 %v1222_v58, %v1215_v5  ;;  %v1431_v42 = vadd.f32 %v4505_v11, %v1407_v38 }
 0x260   : > { %v1247_v59 = vpop.permute.xlu0 %1246  ;;  %v4589_v2 = vpop.permute.xlu1 %1316 }
 0x261   : > { %v1256_v17 = vsel %vm1252_vm7, %v1247_v59, %v4570_v37  ;;  %v1253_v22 = vsel %vm1252_vm7, %v4570_v37, %v1247_v59  ;;  %v1235_v59 = vadd.f32 %v1229_v35, %v1197_v20  ;;  %v1234_v44 = vadd.f32 %v1228_v25, %v1196_v21 }
 0x262   : > { %1663 = vrot.lane.b32.xlu1 %v4559_v31, %s3992_s3  ;;  %1907 = vrot.lane.b32.xlu0 %v4549_v24, %s3995_s4  ;;  %v1267_v39 = vmul.f32 %v1261_v12, %v1256_v17  ;;  %v1266_v37 = vmul.f32 %v1260_v36, %v1253_v22  ;;  %v4659_v7 = vmax.f32 %v1431_v42, 0.0  ;;  %v1059_v42 = vld [vmem:[#allocation7 + $0x10] sm:$0xff] }
 0x264   : > { %v4599_v27 = vpop.permute.xlu0 %1322  ;;  %v1285_v28 = vpop.permute.xlu1 %1284  ;;  %v1273_v54 = vadd.f32 %v1267_v39, %v1235_v59  ;;  %v1091_v39 = vld [vmem:[#allocation7 + $0x40] sm:$0xff]  ;;  %v1130_v59 = vld [vmem:[#allocation7 + $0x78] sm:$0xff] }
 0x265   : > { %v1294_v29 = vsel %vm1290_vm8, %v1285_v28, %v4537_v18  ;;  %v1291_v40 = vsel %vm1290_vm8, %v4537_v18, %v1285_v28  ;;  %v1272_v18 = vadd.f32 %v1266_v37, %v1234_v44  ;;  %v1337_v28 = vld [vmem:[#allocation7 + $0x188] sm:$0xff]  ;;  %v1332_v55 = vsel %vm1328_vm9, %v4599_v27, %v4589_v2  ;;  %v1129_v44 = vld [vmem:[#allocation7 + $0x70] sm:$0xff] }
 0x266   : > { %1736 = vrot.lane.b32.xlu1 %v4559_v31, %s3993_s28  ;;  %1846 = vrot.lane.b32.xlu0 %v4559_v31, %s3994_s5  ;;  %v1305_v41 = vmul.f32 %v1299_v26, %v1294_v29  ;;  %v1304_v50 = vmul.f32 %v1298_v53, %v1291_v40  ;;  %v1329_v11 = vsel %vm1328_vm9, %v4589_v2, %v4599_v27  ;;  %v1092_v26 = vld [vmem:[#allocation7 + $0x48] sm:$0xff]  ;;  %v1060_v40 = vld [vmem:[#allocation7 + $0x18] sm:$0xff] }
 0x267   : > { %v1343_v17 = vmul.f32 %v1337_v28, %v1332_v55  ;;  %v1342_v38 = vmul.f32 %v1336_v56, %v1329_v11  ;;  %v1168_v56 = vld [vmem:[#allocation7 + $0xa8] sm:$0xff] }
 0x268   : > { %v4609_v46 = vpop.permute.xlu0 %1318  ;;  %v4611_v47 = vpop.permute.xlu1 %1038  ;;  %v1311_v57 = vadd.f32 %v1305_v41, %v1273_v54  ;;  %v1310_v12 = vadd.f32 %v1304_v50, %v1272_v18 }
 0x26a   : > { %1919 = vrot.lane.b32.xlu1 %v4559_v31, %s3995_s4  ;;  %1992 = vrot.lane.b32.xlu0 %v4559_v31, %s3989_s23  ;;  %v1349_v20 = vadd.f32 %v1343_v17, %v1311_v57  ;;  %v1348_v22 = vadd.f32 %v1342_v38, %v1310_v12  ;;  %v1167_v17 = vld [vmem:[#allocation7 + $0xa0] sm:$0xff] }
 0x26c   : > { %v1045_v23 = vpop.permute.xlu0 %1044  ;;  %v1072_v34 = vpop.permute.xlu1 %1071  ;;  %v1373_v2 = vadd.f32 %v4398_v45, %v1349_v20  ;;  %v1372_v25 = vadd.f32 %v4398_v45, %v1348_v22 }
 0x26d   : > { %v1052_v37 = vsel %vm1050_vm3, %v4611_v47, %v1045_v23 }
 0x26e   : > { %1909 = vrot.lane.b32.xlu1 %v4633_v19, %s3995_s4  ;;  %1520 = vrot.lane.b32.xlu0 %v4633_v19, %s3990_s0  ;;  %v1379_v41 = vmax.f32 %v1373_v2, 0.0  ;;  %v1378_v28 = vmax.f32 %v1372_v25, 0.0  ;;  %v1066_v57 = vmul.f32 %v1060_v40, %v1052_v37  ;;  %v1186_v37 = vld [vmem:[#allocation7 + $0xd0] sm:$0xff] }
 0x270   : > { %v1078_v30 = vpop.permute.xlu0 %1077  ;;  %v1110_v33 = vpop.permute.xlu1 %1109  ;;  %v1462_v25 = vmul.f32 %v4416_v51, %v1378_v28  ;;  %v1192_v28 = vmul.f32 %v1186_v37, %v4410_v49  ;;  %v1338_v37 = vld [vmem:[#allocation7 + $0x190] sm:$0xff] }
 0x271   : > { %v1083_v29 = vsel %vm1081_vm2, %v1072_v34, %v1078_v30  ;;  %v1086_v53 = vsel %vm1081_vm2, %v1078_v30, %v1072_v34  ;;  %v1055_v34 = vsel %vm1050_vm3, %v1045_v23, %v4611_v47 }
 0x272   : > { %2055 = vrot.lane.b32.xlu1 %v4633_v19, %s3996_s2  ;;  %1580 = vrot.lane.b32.xlu0 %v4633_v19, %s3991_s24  ;;  %v1098_v30 = vmul.f32 %v1092_v26, %v1083_v29  ;;  %v1097_v55 = vmul.f32 %v1091_v39, %v1086_v53  ;;  %v1065_v47 = vmul.f32 %v1059_v42, %v1055_v34  ;;  %v1225_v42 = vld [vmem:[#allocation7 + $0x108] sm:$0xff] }
 0x274   : > { %v1116_v58 = vpop.permute.xlu0 %1115  ;;  %v1148_v5 = vpop.permute.xlu1 %1147  ;;  %v1103_v26 = vadd.f32 %v1097_v55, %v1065_v47  ;;  %v1263_v55 = vld [vmem:[#allocation7 + $0x138] sm:$0xff]  ;;  %v1301_v47 = vld [vmem:[#allocation7 + $0x168] sm:$0xff] }
 0x275   : > { %v1121_v45 = vsel %vm1119_vm4, %v1110_v33, %v1116_v58  ;;  %v1124_v50 = vsel %vm1119_vm4, %v1116_v58, %v1110_v33  ;;  %v1463_v33 = vmul.f32 %v4416_v51, %v1379_v41  ;;  %v1104_v58 = vadd.f32 %v1098_v30, %v1066_v57  ;;  %v1262_v57 = vld [vmem:[#allocation7 + $0x130] sm:$0xff] }
 0x276   : > { %1532 = vrot.lane.b32.xlu1 %v4659_v7, %s3990_s0  ;;  %1653 = vrot.lane.b32.xlu0 %v4633_v19, %s3992_s3  ;;  %v1136_v12 = vmul.f32 %v1130_v59, %v1121_v45  ;;  %v1135_v23 = vmul.f32 %v1129_v44, %v1124_v50  ;;  %v1486_v51 = vadd.f32 %v4493_v9, %v1462_v25  ;;  %v1224_v44 = vld [vmem:[#allocation7 + $0x100] sm:$0xff] }
 0x277   : > { %v1487_v53 = vadd.f32 %v4493_v9, %v1463_v33 }
 0x278   : > { %v1154_v35 = vpop.permute.xlu0 %1153  ;;  %v4665_v36 = vpop.permute.xlu1 %1204  ;;  %v1142_v39 = vadd.f32 %v1136_v12, %v1104_v58  ;;  %v4737_v12 = vmax.f32 %v1486_v51, 0.0  ;;  %v1300_v58 = vld [vmem:[#allocation7 + $0x160] sm:$0xff] }
 0x279   : > { %v1159_v11 = vsel %vm1157_vm5, %v1148_v5, %v1154_v35  ;;  %v1162_v38 = vsel %vm1157_vm5, %v1154_v35, %v1148_v5  ;;  %v1141_v5 = vadd.f32 %v1135_v23, %v1103_v26  ;;  %v1187_v35 = vld [vmem:[#allocation7 + $0xd8] sm:$0xff] }
 0x27a   : > { %1592 = vrot.lane.b32.xlu1 %v4659_v7, %s3991_s24  ;;  %1726 = vrot.lane.b32.xlu0 %v4633_v19, %s3993_s28  ;;  %v1174_v20 = vmul.f32 %v1168_v56, %v1159_v11  ;;  %v1173_v29 = vmul.f32 %v1167_v17, %v1162_v38  ;;  %v1193_v30 = vmul.f32 %v1187_v35, %v4418_v52  ;;  %v4728_v56 = vmax.f32 %v1487_v53, 0.0 }
 0x27c   : > { %v1211_v27 = vpop.permute.xlu0 %1210  ;;  %v4672_v21 = vpop.permute.xlu1 %1242  ;;  %v1180_v40 = vadd.f32 %v1174_v20, %v1142_v39  ;;  %v1179_v41 = vadd.f32 %v1173_v29, %v1141_v5 }
 0x27d   : > { %v1219_v34 = vsel %vm1214_vm6, %v1211_v27, %v4665_v36  ;;  %v1216_v50 = vsel %vm1214_vm6, %v4665_v36, %v1211_v27 }
 0x27e   : > { %1665 = vrot.lane.b32.xlu1 %v4659_v7, %s3992_s3  ;;  %1836 = vrot.lane.b32.xlu0 %v4633_v19, %s3994_s5  ;;  %v1199_v52 = vadd.f32 %v1193_v30, %v1180_v40  ;;  %v1231_v11 = vmul.f32 %v1225_v42, %v1219_v34  ;;  %v1198_v17 = vadd.f32 %v1192_v28, %v1179_v41 }
 0x27f   : > { %v1230_v38 = vmul.f32 %v1224_v44, %v1216_v50 }
 0x280   : > { %v1249_v54 = vpop.permute.xlu0 %1248  ;;  %v1281_v18 = vpop.permute.xlu1 %1280 }
 0x281   : > { %v1257_v9 = vsel %vm1252_vm7, %v1249_v54, %v4672_v21  ;;  %v1254_v36 = vsel %vm1252_vm7, %v4672_v21, %v1249_v54  ;;  %v1237_v54 = vadd.f32 %v1231_v11, %v1199_v52  ;;  %v1236_v39 = vadd.f32 %v1230_v38, %v1198_v17 }
 0x282   : > { %1738 = vrot.lane.b32.xlu1 %v4659_v7, %s3993_s28  ;;  %1982 = vrot.lane.b32.xlu0 %v4633_v19, %s3989_s23  ;;  %v1269_v33 = vmul.f32 %v1263_v55, %v1257_v9  ;;  %v1268_v21 = vmul.f32 %v1262_v57, %v1254_v36 }
 0x284   : > { %v1287_v22 = vpop.permute.xlu0 %1286  ;;  %v1325_v2 = vpop.permute.xlu1 %1324  ;;  %v1275_v35 = vadd.f32 %v1269_v33, %v1237_v54  ;;  %v1274_v53 = vadd.f32 %v1268_v21, %v1236_v39  ;;  %v1094_v39 = vld [vmem:[#allocation7 + $0x58] sm:$0xff] }
 0x285   : > { %v1295_v23 = vsel %vm1290_vm8, %v1287_v22, %v1281_v18  ;;  %v1292_v20 = vsel %vm1290_vm8, %v1281_v18, %v1287_v22  ;;  %v1339_v18 = vld [vmem:[#allocation7 + $0x198] sm:$0xff]  ;;  %v1333_v22 = vsel %vm1328_vm9, %v1325_v2, %v4609_v46  ;;  %v1330_v51 = vsel %vm1328_vm9, %v4609_v46, %v1325_v2 }
 0x286   : > { %1848 = vrot.lane.b32.xlu1 %v4659_v7, %s3994_s5  ;;  %1921 = vrot.lane.b32.xlu0 %v4659_v7, %s3995_s4  ;;  %v1307_v25 = vmul.f32 %v1301_v47, %v1295_v23  ;;  %v1306_v5 = vmul.f32 %v1300_v58, %v1292_v20  ;;  %v1345_v30 = vmul.f32 %v1339_v18, %v1333_v22  ;;  %v1061_v22 = vld [vmem:[#allocation7 + $0x20] sm:$0xff] }
 0x287   : > { %v1344_v44 = vmul.f32 %v1338_v37, %v1330_v51 }
 0x288   : > { %v4708_v59 = vpop.permute.xlu1 %1905  ;;  %v4710_v45 = vpop.permute.xlu0 %1516  ;;  %v1313_v40 = vadd.f32 %v1307_v25, %v1275_v35  ;;  %v1312_v34 = vadd.f32 %v1306_v5, %v1274_v53  ;;  %v1093_v25 = vld [vmem:[#allocation7 + $0x50] sm:$0xff] }
 0x289   : > { %5860 = vst [vmem:[#allocation48_spill] sm:$0xff] %v4708_v59 }
 0x28a   : > { %1994 = vrot.lane.b32.xlu1 %v4659_v7, %s3989_s23  ;;  %2067 = vrot.lane.b32.xlu0 %v4659_v7, %s3996_s2  ;;  %v1351_v50 = vadd.f32 %v1345_v30, %v1313_v40  ;;  %v1350_v9 = vadd.f32 %v1344_v44, %v1312_v34  ;;  %v1062_v40 = vld [vmem:[#allocation7 + $0x28] sm:$0xff]  ;;  %v1131_v34 = vld [vmem:[#allocation7 + $0x80] sm:$0xff] }
 0x28b   : > { %v1132_v30 = vld [vmem:[#allocation7 + $0x88] sm:$0xff] }
 0x28c   : > { %v4733_v27 = vpop.permute.xlu1 %1040  ;;  %v4735_v49 = vpop.permute.xlu0 %1576  ;;  %v1375_v46 = vadd.f32 %v4455_v61, %v1351_v50  ;;  %v1374_v11 = vadd.f32 %v4455_v61, %v1350_v9 }
 0x28e   : > { %1534 = vrot.lane.b32.xlu1 %v4728_v56, %s3990_s0  ;;  %1522 = vrot.lane.b32.xlu0 %v4737_v12, %s3990_s0  ;;  %v1381_v57 = vmax.f32 %v1375_v46, 0.0  ;;  %v1380_v38 = vmax.f32 %v1374_v11, 0.0 }
 0x290   : > { %v1074_v26 = vpop.permute.xlu1 %1073  ;;  %v4747_v29 = vpop.permute.xlu0 %1649  ;;  %v1465_v61 = vmul.f32 %v4404_v48, %v1381_v57  ;;  %v1464_v33 = vmul.f32 %v4404_v48, %v1380_v38  ;;  %v1170_v38 = vld [vmem:[#allocation7 + $0xb8] sm:$0xff] }
 0x292   : > { %1594 = vrot.lane.b32.xlu1 %v4728_v56, %s3991_s24  ;;  %1582 = vrot.lane.b32.xlu0 %v4737_v12, %s3991_s24  ;;  %v1489_v58 = vadd.f32 %v4484_v4, %v1465_v61  ;;  %v1488_v54 = vadd.f32 %v4484_v4, %v1464_v33 }
 0x294   : > { %v1112_v41 = vpop.permute.xlu1 %1111  ;;  %v4759_v42 = vpop.permute.xlu0 %1722  ;;  %v4805_v48 = vmax.f32 %v1489_v58, 0.0  ;;  %v4813_v4 = vmax.f32 %v1488_v54, 0.0 }
 0x296   : > { %1667 = vrot.lane.b32.xlu1 %v4728_v56, %s3992_s3  ;;  %1655 = vrot.lane.b32.xlu0 %v4737_v12, %s3992_s3 }
 0x298   : > { %v1150_v28 = vpop.permute.xlu1 %1149  ;;  %v4765_v55 = vpop.permute.xlu0 %1832 }
 0x299   : > { %5861 = vst [vmem:[#allocation49_spill] sm:$0xff] %v4765_v55 }
 0x29a   : > { %1740 = vrot.lane.b32.xlu1 %v4728_v56, %s3993_s28  ;;  %1728 = vrot.lane.b32.xlu0 %v4737_v12, %s3993_s28 }
 0x29c   : > { %v4772_v2 = vpop.permute.xlu1 %1206  ;;  %v4774_v52 = vpop.permute.xlu0 %1978 }
 0x29d   : > { %5862 = vst [vmem:[#allocation50_spill] sm:$0xff] %v4774_v52 }
 0x29e   : > { %1850 = vrot.lane.b32.xlu1 %v4728_v56, %s3994_s5  ;;  %1838 = vrot.lane.b32.xlu0 %v4737_v12, %s3994_s5 }
 0x2a0   : > { %v4781_v36 = vpop.permute.xlu1 %1244  ;;  %v4783_v17 = vpop.permute.xlu0 %1917 }
 0x2a1   : > { %5863 = vst [vmem:[#allocation51_spill] sm:$0xff] %v4783_v17  ;;  %v1619_v17 = vld [vmem:[#allocation13 + $0x90] sm:$0xff] }
 0x2a2   : > { %1923 = vrot.lane.b32.xlu1 %v4728_v56, %s3995_s4  ;;  %1911 = vrot.lane.b32.xlu0 %v4737_v12, %s3995_s4 }
 0x2a4   : > { %v4790_v47 = vpop.permute.xlu1 %1282  ;;  %v1047_v23 = vpop.permute.xlu0 %1046 }
 0x2a5   : > { %v1053_v37 = vsel %vm1050_vm3, %v4733_v27, %v1047_v23  ;;  %v1056_v51 = vsel %vm1050_vm3, %v1047_v23, %v4733_v27  ;;  %v1169_v27 = vld [vmem:[#allocation7 + $0xb0] sm:$0xff] }
 0x2a6   : > { %1984 = vrot.lane.b32.xlu1 %v4737_v12, %s3989_s23  ;;  %1996 = vrot.lane.b32.xlu0 %v4728_v56, %s3989_s23  ;;  %v1067_v46 = vmul.f32 %v1061_v22, %v1056_v51  ;;  %v1068_v11 = vmul.f32 %v1062_v40, %v1053_v37  ;;  %v1188_v40 = vld [vmem:[#allocation7 + $0xe0] sm:$0xff]  ;;  %v1189_v37 = vld [vmem:[#allocation7 + $0xe8] sm:$0xff] }
 0x2a8   : > { %v4798_v20 = vpop.permute.xlu1 %1320  ;;  %v1080_v21 = vpop.permute.xlu0 %1079 }
 0x2a9   : > { %v1084_v5 = vsel %vm1081_vm2, %v1074_v26, %v1080_v21  ;;  %v1087_v35 = vsel %vm1081_vm2, %v1080_v21, %v1074_v26 }
 0x2aa   : > { %2069 = vrot.lane.b32.xlu1 %v4728_v56, %s3996_s2  ;;  %2057 = vrot.lane.b32.xlu0 %v4737_v12, %s3996_s2  ;;  %v1099_v50 = vmul.f32 %v1093_v25, %v1087_v35  ;;  %v1100_v9 = vmul.f32 %v1094_v39, %v1084_v5 }
 0x2ac   : > { %v4811_v53 = vpop.permute.xlu1 %1528  ;;  %v1118_v18 = vpop.permute.xlu0 %1117  ;;  %v1105_v21 = vadd.f32 %v1099_v50, %v1067_v46  ;;  %v1106_v54 = vadd.f32 %v1100_v9, %v1068_v11  ;;  %v1194_v46 = vmul.f32 %v1188_v40, %v4461_v62  ;;  %v1195_v11 = vmul.f32 %v1189_v37, %v4499_v10 }
 0x2ad   : > { %v1122_v26 = vsel %vm1119_vm4, %v1112_v41, %v1118_v18  ;;  %v1125_v44 = vsel %vm1119_vm4, %v1118_v18, %v1112_v41 }
 0x2ae   : > { %1536 = vrot.lane.b32.xlu1 %v4805_v48, %s3990_s0  ;;  %1524 = vrot.lane.b32.xlu0 %v4813_v4, %s3990_s0  ;;  %v1137_v23 = vmul.f32 %v1131_v34, %v1125_v44  ;;  %v1138_v33 = vmul.f32 %v1132_v30, %v1122_v26  ;;  %v1226_v34 = vld [vmem:[#allocation7 + $0x110] sm:$0xff]  ;;  %v1227_v30 = vld [vmem:[#allocation7 + $0x118] sm:$0xff] }
 0x2b0   : > { %v4829_v57 = vpop.permute.xlu1 %1588  ;;  %v1156_v61 = vpop.permute.xlu0 %1155  ;;  %v1143_v18 = vadd.f32 %v1137_v23, %v1105_v21  ;;  %v1144_v22 = vadd.f32 %v1138_v33, %v1106_v54 }
 0x2b1   : > { %v1160_v41 = vsel %vm1157_vm5, %v1150_v28, %v1156_v61  ;;  %v1163_v58 = vsel %vm1157_vm5, %v1156_v61, %v1150_v28 }
 0x2b2   : > { %1596 = vrot.lane.b32.xlu1 %v4805_v48, %s3991_s24  ;;  %v1175_v25 = vmul.f32 %v1169_v27, %v1163_v58  ;;  %v1176_v39 = vmul.f32 %v1170_v38, %v1160_v41  ;;  %1584 = vrot.lane.b32.xlu0 %v4813_v4, %s3991_s24  ;;  %v1264_v27 = vld [vmem:[#allocation7 + $0x140] sm:$0xff]  ;;  %v1265_v38 = vld [vmem:[#allocation7 + $0x148] sm:$0xff] }
 0x2b4   : > { %v4839_v5 = vpop.permute.xlu1 %1661  ;;  %v1213_v35 = vpop.permute.xlu0 %1212  ;;  %v1181_v28 = vadd.f32 %v1175_v25, %v1143_v18  ;;  %v1182_v51 = vadd.f32 %v1176_v39, %v1144_v22  ;;  %v1302_v25 = vld [vmem:[#allocation7 + $0x170] sm:$0xff]  ;;  %v1303_v39 = vld [vmem:[#allocation7 + $0x178] sm:$0xff] }
 0x2b5   : > { %v1217_v26 = vsel %vm1214_vm6, %v4772_v2, %v1213_v35  ;;  %v1220_v44 = vsel %vm1214_vm6, %v1213_v35, %v4772_v2 }
 0x2b6   : > { %1669 = vrot.lane.b32.xlu1 %v4805_v48, %s3992_s3  ;;  %1657 = vrot.lane.b32.xlu0 %v4813_v4, %s3992_s3  ;;  %v1200_v2 = vadd.f32 %v1194_v46, %v1181_v28  ;;  %v1201_v33 = vadd.f32 %v1195_v11, %v1182_v51  ;;  %v1232_v41 = vmul.f32 %v1226_v34, %v1217_v26  ;;  %v1340_v51 = vld [vmem:[#allocation7 + $0x1a0] sm:$0xff]  ;;  %v1341_v34 = vld [vmem:[#allocation7 + $0x1a8] sm:$0xff] }
 0x2b7   : > { %v1233_v58 = vmul.f32 %v1227_v30, %v1220_v44 }
 0x2b8   : > { %v4851_v50 = vpop.permute.xlu1 %1734  ;;  %v1251_v9 = vpop.permute.xlu0 %1250 }
 0x2b9   : > { %v1255_v61 = vsel %vm1252_vm7, %v4781_v36, %v1251_v9  ;;  %v1258_v23 = vsel %vm1252_vm7, %v1251_v9, %v4781_v36  ;;  %v1238_v36 = vadd.f32 %v1232_v41, %v1200_v2  ;;  %v1239_v35 = vadd.f32 %v1233_v58, %v1201_v33 }
 0x2ba   : > { %1742 = vrot.lane.b32.xlu1 %v4805_v48, %s3993_s28  ;;  %1730 = vrot.lane.b32.xlu0 %v4813_v4, %s3993_s28  ;;  %v1270_v21 = vmul.f32 %v1264_v27, %v1255_v61  ;;  %v1271_v54 = vmul.f32 %v1265_v38, %v1258_v23 }
 0x2bc   : > { %v4865_v62 = vpop.permute.xlu1 %1844  ;;  %v1289_v10 = vpop.permute.xlu0 %1288  ;;  %v1276_v26 = vadd.f32 %v1270_v21, %v1238_v36  ;;  %v1277_v44 = vadd.f32 %v1271_v54, %v1239_v35 }
 0x2bd   : > { %5864 = vst [vmem:[#allocation52_spill] sm:$0xff] %v4865_v62  ;;  %v1293_v18 = vsel %vm1290_vm8, %v4790_v47, %v1289_v10  ;;  %v1296_v22 = vsel %vm1290_vm8, %v1289_v10, %v4790_v47  ;;  %v1692_v62 = vld [vmem:[#allocation13 + $0xf0] sm:$0xff] }
 0x2be   : > { %1852 = vrot.lane.b32.xlu1 %v4805_v48, %s3994_s5  ;;  %1840 = vrot.lane.b32.xlu0 %v4813_v4, %s3994_s5  ;;  %v1308_v40 = vmul.f32 %v1302_v25, %v1293_v18  ;;  %v1309_v37 = vmul.f32 %v1303_v39, %v1296_v22 }
 0x2c0   : > { %v4877_v28 = vpop.permute.xlu1 %1990  ;;  %v1327_v30 = vpop.permute.xlu0 %1326  ;;  %v1314_v46 = vadd.f32 %v1308_v40, %v1276_v26  ;;  %v1315_v11 = vadd.f32 %v1309_v37, %v1277_v44 }
 0x2c1   : > { %5865 = vst [vmem:[#allocation53_spill] sm:$0xff] %v4877_v28  ;;  %v1331_v9 = vsel %vm1328_vm9, %v4798_v20, %v1327_v30  ;;  %v1334_v47 = vsel %vm1328_vm9, %v1327_v30, %v4798_v20 }
 0x2c2   : > { %1925 = vrot.lane.b32.xlu1 %v4805_v48, %s3995_s4  ;;  %v1346_v27 = vmul.f32 %v1340_v51, %v1331_v9  ;;  %v1347_v38 = vmul.f32 %v1341_v34, %v1334_v47  ;;  %1913 = vrot.lane.b32.xlu0 %v4813_v4, %s3995_s4 }
 0x2c4   : > { %v4889_v61 = vpop.permute.xlu1 %1834  ;;  %v4891_v23 = vpop.permute.xlu0 %1518  ;;  %v1352_v2 = vadd.f32 %v1346_v27, %v1314_v46  ;;  %v1353_v33 = vadd.f32 %v1347_v38, %v1315_v11 }
 0x2c5   : > { %5866 = vst [vmem:[#allocation54_spill] sm:$0xff] %v4889_v61 }
 0x2c6   : > { %1998 = vrot.lane.b32.xlu1 %v4805_v48, %s3989_s23  ;;  %v1376_v20 = vadd.f32 %v4388_v43, %v1352_v2  ;;  %v1377_v41 = vadd.f32 %v4388_v43, %v1353_v33  ;;  %1986 = vrot.lane.b32.xlu0 %v4813_v4, %s3989_s23 }
 0x2c8   : > { %v4899_v58 = vpop.permute.xlu1 %1980  ;;  %v4901_v10 = vpop.permute.xlu0 %1578  ;;  %v1382_v21 = vmax.f32 %v1376_v20, 0.0  ;;  %v1383_v54 = vmax.f32 %v1377_v41, 0.0 }
 0x2c9   : > { %5867 = vst [vmem:[#allocation55_spill] sm:$0xff] %v4899_v58 }
 0x2ca   : > { %2059 = vrot.lane.b32.xlu1 %v4813_v4, %s3996_s2  ;;  %v1466_v25 = vmul.f32 %v4467_v63, %v1382_v21  ;;  %v1467_v39 = vmul.f32 %v4467_v63, %v1383_v54  ;;  %2071 = vrot.lane.b32.xlu0 %v4805_v48, %s3996_s2  ;;  %v2125_v21 = vld [vmem:[#allocation14 + $0x8] sm:$0xff] }
 0x2cc   : > { %v4909_v43 = vpop.permute.xlu1 %1530  ;;  %v4911_v36 = vpop.permute.xlu0 %1651  ;;  %v1490_v35 = vadd.f32 %v4473_v1, %v1466_v25  ;;  %v1491_v18 = vadd.f32 %v4473_v1, %v1467_v39  ;;  %v2124_v39 = vld [vmem:[#allocation14] sm:$0xff] }
 0x2ce   : > { %v4915_v22 = vmax.f32 %v1490_v35, 0.0  ;;  %v4917_v40 = vmax.f32 %v1491_v18, 0.0 }
 0x2d0   : > { %5868 = vst [vmem:[#allocation56_spill] sm:$0xff] %v4915_v22  ;;  %5869 = vst [vmem:[#allocation57_spill] sm:$0xff] %v4917_v40  ;;  %v4919_v37 = vpop.permute.xlu1 %1590  ;;  %v4921_v51 = vpop.permute.xlu0 %1724  ;;  %1538 = vrot.lane.b32.xlu1 %v4917_v40, %s3990_s0  ;;  %1526 = vrot.lane.b32.xlu0 %v4915_v22, %s3990_s0 }
 0x2d1   : > { %5870 = vst [vmem:[#allocation58_spill] sm:$0xff] %v4921_v51 }
 0x2d4   : > { %v4927_v63 = vpop.permute.xlu1 %1663  ;;  %v4929_v34 = vpop.permute.xlu0 %1907  ;;  %1598 = vrot.lane.b32.xlu1 %v4917_v40, %s3991_s24  ;;  %1586 = vrot.lane.b32.xlu0 %v4915_v22, %s3991_s24 }
 0x2d5   : > { %5871 = vst [vmem:[#allocation59_spill] sm:$0xff] %v4929_v34 }
 0x2d8   : > { %v4935_v1 = vpop.permute.xlu1 %1736  ;;  %v4937_v30 = vpop.permute.xlu0 %1846  ;;  %1671 = vrot.lane.b32.xlu1 %v4917_v40, %s3992_s3  ;;  %1659 = vrot.lane.b32.xlu0 %v4915_v22, %s3992_s3 }
 0x2d9   : > { %5872 = vst [vmem:[#allocation60_spill] sm:$0xff] %v4937_v30 }
 0x2dc   : > { %v4943_v26 = vpop.permute.xlu1 %1919  ;;  %v4945_v44 = vpop.permute.xlu0 %1992  ;;  %1744 = vrot.lane.b32.xlu1 %v4917_v40, %s3993_s28  ;;  %1732 = vrot.lane.b32.xlu0 %v4915_v22, %s3993_s28 }
 0x2dd   : > { %5873 = vst [vmem:[#allocation61_spill] sm:$0xff] %v4943_v26  ;;  %5874 = vst [vmem:[#allocation62_spill] sm:$0xff] %v4945_v44  ;;  %v1559_v44 = vld [vmem:[#allocation13 + $0x38] sm:$0xff] }
 0x2e0   : > { %v4951_v9 = vpop.permute.xlu1 %1909  ;;  %v4953_v47 = vpop.permute.xlu0 %1520  ;;  %1854 = vrot.lane.b32.xlu1 %v4917_v40, %s3994_s5  ;;  %1842 = vrot.lane.b32.xlu0 %v4915_v22, %s3994_s5 }
 0x2e1   : > { %5875 = vst [vmem:[#allocation63_spill] sm:$0xff] %v4951_v9  ;;  %v1766_v9 = vld [vmem:[#allocation13 + $0x158] sm:$0xff] }
 0x2e4   : > { %v4959_v46 = vpop.permute.xlu1 %2055  ;;  %v4961_v11 = vpop.permute.xlu0 %1580  ;;  %1927 = vrot.lane.b32.xlu1 %v4917_v40, %s3995_s4  ;;  %1915 = vrot.lane.b32.xlu0 %v4915_v22, %s3995_s4 }
 0x2e5   : > { %5876 = vst [vmem:[#allocation64_spill] sm:$0xff] %v4959_v46  ;;  %v1693_v46 = vld [vmem:[#allocation13 + $0xf8] sm:$0xff] }
 0x2e8   : > { %v4967_v27 = vpop.permute.xlu1 %1532  ;;  %v4969_v38 = vpop.permute.xlu0 %1653  ;;  %2000 = vrot.lane.b32.xlu1 %v4917_v40, %s3989_s23  ;;  %1988 = vrot.lane.b32.xlu0 %v4915_v22, %s3989_s23 }
 0x2ec   : > { %v4975_v2 = vpop.permute.xlu1 %1592  ;;  %v4977_v33 = vpop.permute.xlu0 %1726  ;;  %2073 = vrot.lane.b32.xlu1 %v4917_v40, %s3996_s2  ;;  %2061 = vrot.lane.b32.xlu0 %v4915_v22, %s3996_s2  ;;  %v1765_v22 = vld [vmem:[#allocation13 + $0x150] sm:$0xff] }
 0x2f0   : > { %v4983_v20 = vpop.permute.xlu1 %1665  ;;  %v4985_v41 = vpop.permute.xlu0 %1836  ;;  %2065 = vrot.lane.b32.xlu1 %v4559_v31, %s3996_s2  ;;  %2053 = vrot.lane.b32.xlu0 %v4549_v24, %s3996_s2 }
 0x2f4   : > { %v4991_v54 = vpop.permute.xlu1 %1738  ;;  %v4993_v25 = vpop.permute.xlu0 %1982  ;;  %2051 = vrot.lane.b32.xlu1 %v4453_v60, %s3996_s2  ;;  %2137 = vperm.xlu0 %3462, %v2125_v21  }
 0x2f5   : > { %5877 = vst [vmem:[#allocation65_spill] sm:$0xff] %v4993_v25 }
 0x2f8   : > { %v4997_v35 = vpop.permute.xlu1 %1848  ;;  %v4999_v18 = vpop.permute.xlu0 %1921  ;;  %2132 = vperm.xlu1 %3463, %v2124_v39   ;;  %2063 = vrot.lane.b32.xlu0 %v4491_v8, %s3996_s2  ;;  %v1558_v39 = vld [vmem:[#allocation13 + $0x30] sm:$0xff] }
 0x2f9   : > { %5878 = vst [vmem:[#allocation66_spill] sm:$0xff] %v4999_v18 }
 0x2fc   : > { %v5003_v0 = vpop.permute.xlu1 %1994  ;;  %v5005_v6 = vpop.permute.xlu0 %2067 }
 0x2fd   : > { %5879 = vst [vmem:[#allocation67_spill] sm:$0xff] %v5003_v0  ;;  %5880 = vst [vmem:[#allocation68_spill] sm:$0xff] %v5005_v6 }
 0x300   : > { %v1535_v3 = vpop.permute.xlu1 %1534  ;;  %v1523_v52 = vpop.permute.xlu0 %1522 }
 0x301   : > { %v1543_v16 = vsel %vm1050_vm3, %v1523_v52, %v1535_v3  ;;  %v1549_v14 = vsel %vm1050_vm3, %v1535_v3, %v1523_v52 }
 0x302   : > { %v1571_v30 = vmul.f32 %v1559_v44, %v1543_v16 }
 0x304   : > { %v1595_v28 = vpop.permute.xlu1 %1594  ;;  %v1583_v59 = vpop.permute.xlu0 %1582 }
 0x305   : > { %v1603_v21 = vsel %vm1081_vm2, %v1583_v59, %v1595_v28  ;;  %v1609_v58 = vsel %vm1081_vm2, %v1595_v28, %v1583_v59  ;;  %v1570_v28 = vmul.f32 %v1558_v39, %v1549_v14 }
 0x306   : > { %v1631_v6 = vmul.f32 %v1619_v17, %v1609_v58  ;;  %v1632_v34 = vmul.f32 %v1620_v15, %v1603_v21  ;;  %v1802_v58 = vld [vmem:[#allocation13 + $0x1b0] sm:$0xff]  ;;  %v1803_v21 = vld [vmem:[#allocation13 + $0x1b8] sm:$0xff] }
 0x308   : > { %v1668_v55 = vpop.permute.xlu1 %1667  ;;  %v1656_v26 = vpop.permute.xlu0 %1655  ;;  %v1643_v3 = vadd.f32 %v1631_v6, %v1570_v28  ;;  %v1644_v52 = vadd.f32 %v1632_v34, %v1571_v30  ;;  %v1815_v6 = vmul.f32 %v1803_v21, %v4728_v56  ;;  %v1814_v30 = vmul.f32 %v1802_v58, %v4737_v12  ;;  %v1949_v28 = vld [vmem:[#allocation13 + $0x278] sm:$0xff]  ;;  %v2021_v21 = vld [vmem:[#allocation13 + $0x2d0] sm:$0xff] }
 0x309   : > { %v1676_v61 = vsel %vm1119_vm4, %v1656_v26, %v1668_v55  ;;  %v1682_v59 = vsel %vm1119_vm4, %v1668_v55, %v1656_v26  ;;  %v1876_v26 = vld [vmem:[#allocation13 + $0x218] sm:$0xff] }
 0x30a   : > { %v1704_v25 = vmul.f32 %v1692_v62, %v1682_v59  ;;  %v1705_v0 = vmul.f32 %v1693_v46, %v1676_v61  ;;  %v1875_v61 = vld [vmem:[#allocation13 + $0x210] sm:$0xff] }
 0x30b   : > { %v1948_v59 = vld [vmem:[#allocation13 + $0x270] sm:$0xff] }
 0x30c   : > { %v1741_v40 = vpop.permute.xlu1 %1740  ;;  %v1729_v18 = vpop.permute.xlu0 %1728  ;;  %v1716_v51 = vadd.f32 %v1704_v25, %v1643_v3  ;;  %v1717_v55 = vadd.f32 %v1705_v0, %v1644_v52 }
 0x30d   : > { %v1749_v15 = vsel %vm1157_vm5, %v1729_v18, %v1741_v40  ;;  %v1755_v17 = vsel %vm1157_vm5, %v1741_v40, %v1729_v18 }
 0x30e   : > { %v1777_v14 = vmul.f32 %v1765_v22, %v1755_v17  ;;  %v1778_v16 = vmul.f32 %v1766_v9, %v1749_v15 }
 0x310   : > { %v1851_v62 = vpop.permute.xlu1 %1850  ;;  %v1789_v44 = vadd.f32 %v1777_v14, %v1716_v51  ;;  %v1790_v46 = vadd.f32 %v1778_v16, %v1717_v55  ;;  %v1839_v34 = vpop.permute.xlu0 %1838  ;;  %v2022_v55 = vld [vmem:[#allocation13 + $0x2d8] sm:$0xff] }
 0x311   : > { %v1859_v39 = vsel %vm1214_vm6, %v1839_v34, %v1851_v62  ;;  %v1865_v40 = vsel %vm1214_vm6, %v1851_v62, %v1839_v34  ;;  %v2094_v34 = vld [vmem:[#allocation13 + $0x330] sm:$0xff] }
 0x312   : > { %v1827_v25 = vadd.f32 %v1815_v6, %v1790_v46  ;;  %v1826_v0 = vadd.f32 %v1814_v30, %v1789_v44  ;;  %v1887_v22 = vmul.f32 %v1875_v61, %v1859_v39  ;;  %v1888_v9 = vmul.f32 %v1876_v26, %v1865_v40  ;;  %v2095_v30 = vld [vmem:[#allocation13 + $0x338] sm:$0xff] }
 0x314   : > { %v1924_v18 = vpop.permute.xlu1 %1923  ;;  %v1899_v51 = vadd.f32 %v1887_v22, %v1826_v0  ;;  %v1900_v3 = vadd.f32 %v1888_v9, %v1827_v25  ;;  %v1912_v52 = vpop.permute.xlu0 %1911 }
 0x315   : > { %v1932_v56 = vsel %vm1252_vm7, %v1912_v52, %v1924_v18  ;;  %v1938_v12 = vsel %vm1252_vm7, %v1924_v18, %v1912_v52 }
 0x316   : > { %v1960_v15 = vmul.f32 %v1948_v59, %v1932_v56  ;;  %v1961_v17 = vmul.f32 %v1949_v28, %v1938_v12  ;;  %v1621_v12 = vld [vmem:[#allocation13 + $0xa0] sm:$0xff] }
 0x318   : > { %v1985_v58 = vpop.permute.xlu1 %1984  ;;  %v1972_v14 = vadd.f32 %v1960_v15, %v1899_v51  ;;  %v1973_v16 = vadd.f32 %v1961_v17, %v1900_v3  ;;  %v1997_v62 = vpop.permute.xlu0 %1996  ;;  %v1622_v15 = vld [vmem:[#allocation13 + $0xa8] sm:$0xff] }
 0x319   : > { %v2005_v61 = vsel %vm1290_vm8, %v1985_v58, %v1997_v62  ;;  %v2011_v26 = vsel %vm1290_vm8, %v1997_v62, %v1985_v58 }
 0x31a   : > { %v2033_v44 = vmul.f32 %v2021_v21, %v2005_v61  ;;  %v2034_v46 = vmul.f32 %v2022_v55, %v2011_v26  ;;  %v1560_v55 = vld [vmem:[#allocation13 + $0x40] sm:$0xff] }
 0x31b   : > { %v1694_v26 = vld [vmem:[#allocation13 + $0x100] sm:$0xff] }
 0x31c   : > { %v2070_v6 = vpop.permute.xlu1 %2069  ;;  %v2045_v39 = vadd.f32 %v2033_v44, %v1972_v14  ;;  %v2046_v40 = vadd.f32 %v2034_v46, %v1973_v16  ;;  %v2058_v25 = vpop.permute.xlu0 %2057  ;;  %v1561_v16 = vld [vmem:[#allocation13 + $0x48] sm:$0xff] }
 0x31d   : > { %v2078_v0 = vsel %vm1328_vm9, %v2058_v25, %v2070_v6  ;;  %v2084_v22 = vsel %vm1328_vm9, %v2070_v6, %v2058_v25  ;;  %v1695_v44 = vld [vmem:[#allocation13 + $0x108] sm:$0xff] }
 0x31e   : > { %v2106_v9 = vmul.f32 %v2094_v34, %v2078_v0  ;;  %v2107_v18 = vmul.f32 %v2095_v30, %v2084_v22  ;;  %v1768_v25 = vld [vmem:[#allocation13 + $0x168] sm:$0xff] }
 0x320   : > { %v1537_v59 = vpop.permute.xlu1 %1536  ;;  %v5041_v28 = vadd.f32 %v2106_v9, %v2045_v39  ;;  %v5043_v51 = vadd.f32 %v2107_v18, %v2046_v40  ;;  %v1525_v3 = vpop.permute.xlu0 %1524  ;;  %v1767_v40 = vld [vmem:[#allocation13 + $0x160] sm:$0xff] }
 0x321   : > { %v1544_v62 = vsel %vm1050_vm3, %v1525_v3, %v1537_v59  ;;  %v1550_v61 = vsel %vm1050_vm3, %v1537_v59, %v1525_v3 }
 0x322   : > { %5881 = vst [vmem:[#allocation69_spill] sm:$0xff] %v5041_v28  ;;  %5882 = vst [vmem:[#allocation70_spill] sm:$0xff] %v5043_v51  ;;  %v1572_v0 = vmul.f32 %v1560_v55, %v1550_v61  ;;  %v1573_v22 = vmul.f32 %v1561_v16, %v1544_v62  ;;  %v1805_v55 = vld [vmem:[#allocation13 + $0x1c8] sm:$0xff]  ;;  %v1877_v61 = vld [vmem:[#allocation13 + $0x220] sm:$0xff] }
 0x324   : > { %v1597_v52 = vpop.permute.xlu1 %1596  ;;  %v1585_v56 = vpop.permute.xlu0 %1584 }
 0x325   : > { %v1604_v17 = vsel %vm1081_vm2, %v1585_v56, %v1597_v52  ;;  %v1610_v58 = vsel %vm1081_vm2, %v1597_v52, %v1585_v56 }
 0x326   : > { %v1633_v34 = vmul.f32 %v1621_v12, %v1610_v58  ;;  %v1634_v30 = vmul.f32 %v1622_v15, %v1604_v17 }
 0x328   : > { %v1670_v21 = vpop.permute.xlu1 %1669  ;;  %v1658_v14 = vpop.permute.xlu0 %1657  ;;  %v1645_v56 = vadd.f32 %v1633_v34, %v1572_v0  ;;  %v1646_v51 = vadd.f32 %v1634_v30, %v1573_v22  ;;  %v1552_v34 = vld [vmem:[#allocation13] sm:$0xff]  ;;  %v1540_v22 = vsel %vm1050_vm3, %v4710_v45, %v4811_v53 }
 0x329   : > { %v1677_v46 = vsel %vm1119_vm4, %v1658_v14, %v1670_v21  ;;  %v1683_v6 = vsel %vm1119_vm4, %v1670_v21, %v1658_v14  ;;  %v1804_v14 = vld [vmem:[#allocation13 + $0x1c0] sm:$0xff] }
 0x32a   : > { %v1706_v9 = vmul.f32 %v1694_v26, %v1683_v6  ;;  %v1707_v18 = vmul.f32 %v1695_v44, %v1677_v46  ;;  %v1878_v26 = vld [vmem:[#allocation13 + $0x228] sm:$0xff]  ;;  %v1613_v30 = vld [vmem:[#allocation13 + $0x60] sm:$0xff] }
 0x32c   : > { %v1743_v39 = vpop.permute.xlu1 %1742  ;;  %v1731_v52 = vpop.permute.xlu0 %1730  ;;  %v1718_v15 = vadd.f32 %v1706_v9, %v1645_v56  ;;  %v1719_v17 = vadd.f32 %v1707_v18, %v1646_v51  ;;  %v1546_v51 = vsel %vm1050_vm3, %v4811_v53, %v4710_v45  ;;  %v1614_v9 = vld [vmem:[#allocation13 + $0x68] sm:$0xff]  ;;  %v1600_v18 = vsel %vm1081_vm2, %v4735_v49, %v4829_v57 }
 0x32d   : > { %v1750_v59 = vsel %vm1157_vm5, %v1731_v52, %v1743_v39  ;;  %v1756_v3 = vsel %vm1157_vm5, %v1743_v39, %v1731_v52  ;;  %v1796_v39 = vld [vmem:[#allocation13 + $0x180] sm:$0xff]  ;;  %v1564_v45 = vmul.f32 %v1552_v34, %v1546_v51 }
 0x32e   : > { %v1779_v28 = vmul.f32 %v1767_v40, %v1756_v3  ;;  %v1780_v21 = vmul.f32 %v1768_v25, %v1750_v59  ;;  %v1816_v40 = vmul.f32 %v1804_v14, %v4813_v4  ;;  %v1817_v25 = vmul.f32 %v1805_v55, %v4805_v48  ;;  %v1950_v52 = vld [vmem:[#allocation13 + $0x280] sm:$0xff]  ;;  %v1951_v59 = vld [vmem:[#allocation13 + $0x288] sm:$0xff] }
 0x32f   : > { %v1553_v4 = vld [vmem:[#allocation13 + $0x8] sm:$0xff]  ;;  %v1626_v14 = vmul.f32 %v1614_v9, %v1600_v18  ;;  %v1686_v55 = vld [vmem:[#allocation13 + $0xc0] sm:$0xff] }
 0x330   : > { %v1853_v12 = vpop.permute.xlu1 %1852  ;;  %v1841_v58 = vpop.permute.xlu0 %1840  ;;  %v1791_v16 = vadd.f32 %v1779_v28, %v1718_v15  ;;  %v1792_v62 = vadd.f32 %v1780_v21, %v1719_v17  ;;  %v1606_v28 = vsel %vm1081_vm2, %v4829_v57, %v4735_v49  ;;  %v5088_v17 = vmul.f32 %v1796_v39, %v4453_v60  ;;  %v2023_v49 = vld [vmem:[#allocation13 + $0x2e0] sm:$0xff]  ;;  %v2024_v57 = vld [vmem:[#allocation13 + $0x2e8] sm:$0xff] }
 0x331   : > { %v1860_v44 = vsel %vm1214_vm6, %v1841_v58, %v1853_v12  ;;  %v1866_v46 = vsel %vm1214_vm6, %v1853_v12, %v1841_v58  ;;  %v1625_v53 = vmul.f32 %v1613_v30, %v1606_v28  ;;  %v1673_v60 = vsel %vm1119_vm4, %v4747_v29, %v4839_v5 }
 0x332   : > { %v1828_v56 = vadd.f32 %v1816_v40, %v1791_v16  ;;  %v1829_v21 = vadd.f32 %v1817_v25, %v1792_v62  ;;  %v1889_v12 = vmul.f32 %v1877_v61, %v1860_v44  ;;  %v1890_v15 = vmul.f32 %v1878_v26, %v1866_v46  ;;  %v1798_v16 = vld [vmem:[#allocation13 + $0x190] sm:$0xff]  ;;  %v1687_v46 = vld [vmem:[#allocation13 + $0xc8] sm:$0xff] }
 0x333   : > { %v1565_v44 = vmul.f32 %v1553_v4, %v1540_v22  ;;  %v1637_v25 = vadd.f32 %v1625_v53, %v1564_v45  ;;  %v5106_v18 = vmul.f32 %v1798_v16, %v4549_v24  ;;  %v1800_v4 = vld [vmem:[#allocation13 + $0x1a0] sm:$0xff]  ;;  %v1752_v24 = vsel %vm1157_vm5, %v4851_v50, %v4759_v42 }
 0x334   : > { %v1926_v6 = vpop.permute.xlu1 %1925  ;;  %v1914_v0 = vpop.permute.xlu0 %1913  ;;  %v1901_v30 = vadd.f32 %v1889_v12, %v1828_v56  ;;  %v1902_v28 = vadd.f32 %v1890_v15, %v1829_v21  ;;  %v1759_v15 = vld [vmem:[#allocation13 + $0x120] sm:$0xff] }
 0x335   : > { %v1933_v3 = vsel %vm1252_vm7, %v1914_v0, %v1926_v6  ;;  %v1939_v48 = vsel %vm1252_vm7, %v1926_v6, %v1914_v0  ;;  %v1679_v6 = vsel %vm1119_vm4, %v4839_v5, %v4747_v29  ;;  %v1797_v0 = vld [vmem:[#allocation13 + $0x188] sm:$0xff]  ;;  %v2096_v29 = vld [vmem:[#allocation13 + $0x340] sm:$0xff] }
 0x336   : > { %v1962_v62 = vmul.f32 %v1950_v52, %v1933_v3  ;;  %v1963_v61 = vmul.f32 %v1951_v59, %v1939_v48  ;;  %v1698_v9 = vmul.f32 %v1686_v55, %v1679_v6  ;;  %v5103_v22 = vmul.f32 %v1797_v0, %v4491_v8  ;;  %v2097_v5 = vld [vmem:[#allocation13 + $0x348] sm:$0xff]  ;;  %v1799_v48 = vld [vmem:[#allocation13 + $0x198] sm:$0xff] }
 0x337   : > { %v1638_v59 = vadd.f32 %v1626_v14, %v1565_v44  ;;  %v1699_v3 = vmul.f32 %v1687_v46, %v1673_v60  ;;  %v1746_v8 = vsel %vm1157_vm5, %v4759_v42, %v4851_v50  ;;  %v5121_v16 = vmul.f32 %v1799_v48, %v4559_v31 }
 0x338   : > { %v1999_v58 = vpop.permute.xlu1 %1998  ;;  %v1987_v26 = vpop.permute.xlu0 %1986  ;;  %v1974_v56 = vadd.f32 %v1962_v62, %v1901_v30  ;;  %v1975_v21 = vadd.f32 %v1963_v61, %v1902_v28  ;;  %v1710_v0 = vadd.f32 %v1698_v9, %v1637_v25  ;;  %v5124_v62 = vmul.f32 %v1800_v4, %v4633_v19  ;;  %v1557_v30 = vld [vmem:[#allocation13 + $0x28] sm:$0xff] }
 0x339   : > { %v2006_v34 = vsel %vm1290_vm8, %v1987_v26, %v1999_v58  ;;  %v2012_v51 = vsel %vm1290_vm8, %v1999_v58, %v1987_v26  ;;  %v1801_v58 = vld [vmem:[#allocation13 + $0x1a8] sm:$0xff]  ;;  %v1711_v50 = vadd.f32 %v1699_v3, %v1638_v59  ;;  %v1771_v61 = vmul.f32 %v1759_v15, %v1752_v24  ;;  %v1555_v59 = vld [vmem:[#allocation13 + $0x18] sm:$0xff] }
 0x33a   : > { %v2035_v39 = vmul.f32 %v2023_v49, %v2006_v34  ;;  %v2036_v40 = vmul.f32 %v2024_v57, %v2012_v51  ;;  %v1760_v49 = vld [vmem:[#allocation13 + $0x128] sm:$0xff]  ;;  %v5127_v42 = vmul.f32 %v1801_v58, %v4659_v7  ;;  %v1542_v60 = vsel %vm1050_vm3, %v4953_v47, %v4967_v27  ;;  %v1617_v34 = vld [vmem:[#allocation13 + $0x80] sm:$0xff] }
 0x33b   : > { %v1772_v46 = vmul.f32 %v1760_v49, %v1746_v8  ;;  %v1618_v51 = vld [vmem:[#allocation13 + $0x88] sm:$0xff]  ;;  %v1602_v31 = vsel %vm1081_vm2, %v4961_v11, %v4975_v2  ;;  %v1608_v19 = vsel %vm1081_vm2, %v4975_v2, %v4961_v11  ;;  %v1556_v7 = vld [vmem:[#allocation13 + $0x20] sm:$0xff]  ;;  %v1548_v28 = vsel %vm1050_vm3, %v4967_v27, %v4953_v47 }
 0x33c   : > { %v2060_v52 = vpop.permute.xlu1 %2059  ;;  %v2072_v12 = vpop.permute.xlu0 %2071  ;;  %v2047_v57 = vadd.f32 %v2035_v39, %v1974_v56  ;;  %v2048_v14 = vadd.f32 %v2036_v40, %v1975_v21  ;;  %v1690_v39 = vld [vmem:[#allocation13 + $0xe0] sm:$0xff]  ;;  %v1681_v40 = vsel %vm1119_vm4, %v4983_v20, %v4969_v38  ;;  %v1541_v2 = vsel %vm1050_vm3, %v4891_v23, %v4909_v43 }
 0x33d   : > { %v2079_v45 = vsel %vm1328_vm9, %v2060_v52, %v2072_v12  ;;  %v2085_v53 = vsel %vm1328_vm9, %v2072_v12, %v2060_v52  ;;  %v1547_v47 = vsel %vm1050_vm3, %v4909_v43, %v4891_v23  ;;  %v1601_v27 = vsel %vm1081_vm2, %v4901_v10, %v4919_v37  ;;  %v1615_v23 = vld [vmem:[#allocation13 + $0x70] sm:$0xff]  ;;  %v1616_v43 = vld [vmem:[#allocation13 + $0x78] sm:$0xff] }
 0x33e   : > { %v2108_v55 = vmul.f32 %v2096_v29, %v2079_v45  ;;  %v2109_v6 = vmul.f32 %v2097_v5, %v2085_v53  ;;  %v1691_v29 = vld [vmem:[#allocation13 + $0xe8] sm:$0xff]  ;;  %v1554_v5 = vld [vmem:[#allocation13 + $0x10] sm:$0xff]  ;;  %v1629_v3 = vmul.f32 %v1617_v34, %v1608_v19  ;;  %v1630_v48 = vmul.f32 %v1618_v51, %v1602_v31  ;;  %v1624_v51 = vld [vmem:[#allocation13 + $0xb8] sm:$0xff] }
 0x33f   : > { %v1607_v56 = vsel %vm1081_vm2, %v4919_v37, %v4901_v10  ;;  %v1568_v21 = vmul.f32 %v1556_v7, %v1548_v28  ;;  %v1569_v12 = vmul.f32 %v1557_v30, %v1542_v60  ;;  %v1702_v15 = vmul.f32 %v1690_v39, %v1681_v40  ;;  %v1562_v28 = vld [vmem:[#allocation13 + $0x50] sm:$0xff] }
 0x340   : > { %v2120_v26 = vadd.f32 %v2108_v55, %v2047_v57  ;;  %v2121_v44 = vadd.f32 %v2109_v6, %v2048_v14  ;;  %v1748_v24 = vsel %vm1157_vm5, %v4977_v33, %v4991_v54  ;;  %v1754_v45 = vsel %vm1157_vm5, %v4991_v54, %v4977_v33  ;;  %v1623_v54 = vld [vmem:[#allocation13 + $0xb0] sm:$0xff] }
 0x341   : > { %v5189_v37 = vadd.f32 %v1771_v61, %v1710_v0  ;;  %v5191_v57 = vadd.f32 %v1772_v46, %v1711_v50  ;;  %v1566_v14 = vmul.f32 %v1554_v5, %v1547_v47  ;;  %v1567_v55 = vmul.f32 %v1555_v59, %v1541_v2  ;;  %v1688_v61 = vld [vmem:[#allocation13 + $0xd0] sm:$0xff]  ;;  %v1689_v50 = vld [vmem:[#allocation13 + $0xd8] sm:$0xff] }
 0x342   : > { %v1539_v25 = vpop.permute.xlu1 %1538  ;;  %v1527_v9 = vpop.permute.xlu0 %1526  ;;  %v5150_v52 = vadd.f32 %v4515_v13, %v2120_v26  ;;  %v5153_v11 = vadd.f32 %v4515_v13, %v2121_v44  ;;  %v1675_v13 = vsel %vm1119_vm4, %v4969_v38, %v4983_v20  ;;  %v1763_v38 = vld [vmem:[#allocation13 + $0x140] sm:$0xff]  ;;  %v1764_v20 = vld [vmem:[#allocation13 + $0x148] sm:$0xff]  ;;  %v1627_v6 = vmul.f32 %v1615_v23, %v1607_v56  ;;  %v1563_v2 = vld [vmem:[#allocation13 + $0x58] sm:$0xff] }
 0x343   : > { %v1703_v8 = vmul.f32 %v1691_v29, %v1675_v13  ;;  %v1628_v26 = vmul.f32 %v1616_v43, %v1601_v27  ;;  %v1641_v44 = vadd.f32 %v1629_v3, %v1568_v21  ;;  %v1642_v60 = vadd.f32 %v1630_v48, %v1569_v12  ;;  %v1696_v29 = vld [vmem:[#allocation13 + $0x110] sm:$0xff]  ;;  %v1697_v13 = vld [vmem:[#allocation13 + $0x118] sm:$0xff] }
 0x344   : > { %v2180_v4 = vmax.f32 %v5150_v52, 0.0  ;;  %v2181_v58 = vmax.f32 %v5153_v11, 0.0  ;;  %v1775_v34 = vmul.f32 %v1763_v38, %v1754_v45  ;;  %v1776_v33 = vmul.f32 %v1764_v20, %v1748_v24  ;;  %v1769_v12 = vld [vmem:[#allocation13 + $0x170] sm:$0xff]  ;;  %v1873_v45 = vld [vmem:[#allocation13 + $0x200] sm:$0xff] }
 0x345   : > { %v1674_v46 = vsel %vm1119_vm4, %v4911_v36, %v4927_v63  ;;  %v1680_v19 = vsel %vm1119_vm4, %v4927_v63, %v4911_v36  ;;  %v1714_v7 = vadd.f32 %v1702_v15, %v1641_v44  ;;  %v1715_v30 = vadd.f32 %v1703_v8, %v1642_v60  ;;  %v1770_v15 = vld [vmem:[#allocation13 + $0x178] sm:$0xff] }
 0x346   : > { %v1599_v53 = vpop.permute.xlu1 %1598  ;;  %v1587_v49 = vpop.permute.xlu0 %1586  ;;  %v2196_v10 = vadd.f32 %v2181_v58, %v2180_v4  ;;  %v1545_v47 = vsel %vm1050_vm3, %v1527_v9, %v1539_v25  ;;  %v1551_v27 = vsel %vm1050_vm3, %v1539_v25, %v1527_v9  ;;  %v1639_v63 = vadd.f32 %v1627_v6, %v1566_v14 }
 0x347   : > { %v1605_v31 = vsel %vm1081_vm2, %v1587_v49, %v1599_v53  ;;  %v1611_v0 = vsel %vm1081_vm2, %v1599_v53, %v1587_v49  ;;  %v1640_v59 = vadd.f32 %v1628_v26, %v1567_v55  ;;  %v1700_v23 = vmul.f32 %v1688_v61, %v1680_v19  ;;  %v1874_v53 = vld [vmem:[#allocation13 + $0x208] sm:$0xff]  ;;  %v1762_v61 = vld [vmem:[#allocation13 + $0x138] sm:$0xff] }
 0x348   : > { %2197 = vadd.xlane.f32.xlu1 %v2196_v10  ;;  %v1635_v3 = vmul.f32 %v1623_v54, %v1611_v0  ;;  %v1636_v48 = vmul.f32 %v1624_v51, %v1605_v31  ;;  %v1701_v43 = vmul.f32 %v1689_v50, %v1674_v46  ;;  %v1787_v56 = vadd.f32 %v1775_v34, %v1714_v7  ;;  %v1806_v34 = vld [vmem:[#allocation13 + $0x1d0] sm:$0xff] }
 0x349   : > { %v1788_v21 = vadd.f32 %v1776_v33, %v1715_v30  ;;  %v1574_v8 = vmul.f32 %v1562_v28, %v1551_v27  ;;  %v1575_v25 = vmul.f32 %v1563_v2, %v1545_v47  ;;  %v1858_v49 = vsel %vm1214_vm6, %v4985_v41, %v4997_v35  ;;  %v1807_v33 = vld [vmem:[#allocation13 + $0x1d8] sm:$0xff]  ;;  %v1761_v0 = vld [vmem:[#allocation13 + $0x130] sm:$0xff] }
 0x34a   : > { %v1672_v39 = vpop.permute.xlu1 %1671  ;;  %v1660_v40 = vpop.permute.xlu0 %1659  ;;  %v1864_v10 = vsel %vm1214_vm6, %v4997_v35, %v4985_v41  ;;  %v5883_v54 = vld [vmem:[#allocation58_spill] sm:$0xff]  ;;  %v1824_v35 = vadd.f32 %v5124_v62, %v1787_v56  ;;  %v1885_v50 = vmul.f32 %v1873_v45, %v1858_v49  ;;  %v5885_v47 = vld [vmem:[#allocation63_spill] sm:$0xff]  ;;  %v5886_v62 = vld [vmem:[#allocation56_spill] sm:$0xff] }
 0x34b   : > { %v1678_v5 = vsel %vm1119_vm4, %v1660_v40, %v1672_v39  ;;  %v1684_v36 = vsel %vm1119_vm4, %v1672_v39, %v1660_v40  ;;  %v1647_v6 = vadd.f32 %v1635_v3, %v1574_v8  ;;  %v1648_v26 = vadd.f32 %v1636_v48, %v1575_v25  ;;  %v1946_v39 = vld [vmem:[#allocation13 + $0x260] sm:$0xff]  ;;  %v1947_v40 = vld [vmem:[#allocation13 + $0x268] sm:$0xff]  ;;  %v5884_v2 = vld [vmem:[#allocation66_spill] sm:$0xff] }
 0x34c   : > { %v1708_v9 = vmul.f32 %v1696_v29, %v1684_v36  ;;  %v1709_v38 = vmul.f32 %v1697_v13, %v1678_v5  ;;  %v1747_v51 = vsel %vm1157_vm5, %v5883_v54, %v4935_v1  ;;  %v1753_v41 = vsel %vm1157_vm5, %v4935_v1, %v5883_v54  ;;  %v5887_v29 = vld [vmem:[#allocation57_spill] sm:$0xff] }
 0x34d   : > { %v1825_v31 = vadd.f32 %v5127_v42, %v1788_v21  ;;  %v1886_v46 = vmul.f32 %v1874_v53, %v1864_v10  ;;  %v1931_v27 = vsel %vm1252_vm7, %v5885_v47, %v5884_v2  ;;  %v1937_v1 = vsel %vm1252_vm7, %v5884_v2, %v5885_v47  ;;  %v1952_v49 = vld [vmem:[#allocation13 + $0x290] sm:$0xff]  ;;  %v1953_v10 = vld [vmem:[#allocation13 + $0x298] sm:$0xff] }
 0x34e   : > { %v1745_v20 = vpop.permute.xlu1 %1744  ;;  %v1733_v24 = vpop.permute.xlu0 %1732  ;;  %v1720_v19 = vadd.f32 %v1708_v9, %v1647_v6  ;;  %v1721_v7 = vadd.f32 %v1709_v38, %v1648_v26  ;;  %v1818_v42 = vmul.f32 %v1806_v34, %v5886_v62  ;;  %v1819_v13 = vmul.f32 %v1807_v33, %v5887_v29  ;;  %v2019_v6 = vld [vmem:[#allocation13 + $0x2c0] sm:$0xff]  ;;  %v2020_v26 = vld [vmem:[#allocation13 + $0x2c8] sm:$0xff] }
 0x34f   : > { %v1751_v14 = vsel %vm1157_vm5, %v1733_v24, %v1745_v20  ;;  %v1757_v55 = vsel %vm1157_vm5, %v1745_v20, %v1733_v24  ;;  %v1712_v5 = vadd.f32 %v1700_v23, %v1639_v63  ;;  %v1713_v36 = vadd.f32 %v1701_v43, %v1640_v59  ;;  %v5888_v63 = vld [vmem:[#allocation67_spill] sm:$0xff]  ;;  %v5889_v59 = vld [vmem:[#allocation65_spill] sm:$0xff] }
 0x350   : > { %v1781_v44 = vmul.f32 %v1769_v12, %v1757_v55  ;;  %v1782_v60 = vmul.f32 %v1770_v15, %v1751_v14  ;;  %v1773_v56 = vmul.f32 %v1761_v0, %v1753_v41  ;;  %v1774_v21 = vmul.f32 %v1762_v61, %v1747_v51  ;;  %v1879_v12 = vld [vmem:[#allocation13 + $0x230] sm:$0xff]  ;;  %v1880_v15 = vld [vmem:[#allocation13 + $0x238] sm:$0xff]  ;;  %v5890_v41 = vld [vmem:[#allocation60_spill] sm:$0xff] }
 0x351   : > { %v1897_v9 = vadd.f32 %v1885_v50, %v1824_v35  ;;  %v1898_v38 = vadd.f32 %v1886_v46, %v1825_v31  ;;  %v1958_v20 = vmul.f32 %v1946_v39, %v1931_v27  ;;  %v1959_v24 = vmul.f32 %v1947_v40, %v1937_v1  ;;  %v5891_v35 = vld [vmem:[#allocation54_spill] sm:$0xff] }
 0x352   : > { %v1855_v30 = vpop.permute.xlu1 %1854  ;;  %v1843_v28 = vpop.permute.xlu0 %1842  ;;  %v1793_v3 = vadd.f32 %v1781_v44, %v1720_v19  ;;  %v1794_v48 = vadd.f32 %v1782_v60, %v1721_v7  ;;  %v2004_v23 = vsel %vm1290_vm8, %v5889_v59, %v5888_v63  ;;  %v2010_v43 = vsel %vm1290_vm8, %v5888_v63, %v5889_v59  ;;  %v2025_v61 = vld [vmem:[#allocation13 + $0x2f0] sm:$0xff]  ;;  %v2026_v50 = vld [vmem:[#allocation13 + $0x2f8] sm:$0xff] }
 0x353   : > { %v1861_v8 = vsel %vm1214_vm6, %v1843_v28, %v1855_v30  ;;  %v1867_v25 = vsel %vm1214_vm6, %v1855_v30, %v1843_v28  ;;  %v1785_v54 = vadd.f32 %v1773_v56, %v1712_v5  ;;  %v1786_v51 = vadd.f32 %v1774_v21, %v1713_v36  ;;  %v1871_v46 = vld [vmem:[#allocation13 + $0x1f0] sm:$0xff]  ;;  %v5893_v56 = vld [vmem:[#allocation59_spill] sm:$0xff] }
 0x354   : > { %v1830_v44 = vadd.f32 %v1818_v42, %v1793_v3  ;;  %v1831_v60 = vadd.f32 %v1819_v13, %v1794_v48  ;;  %v1891_v34 = vmul.f32 %v1879_v12, %v1861_v8  ;;  %v1892_v33 = vmul.f32 %v1880_v15, %v1867_v25  ;;  %v5892_v48 = vld [vmem:[#allocation61_spill] sm:$0xff]  ;;  %v2099_v15 = vld [vmem:[#allocation13 + $0x358] sm:$0xff]  ;;  %v2092_v25 = vld [vmem:[#allocation13 + $0x320] sm:$0xff] }
 0x355   : > { %v1857_v31 = vsel %vm1214_vm6, %v5891_v35, %v5890_v41  ;;  %v1863_v0 = vsel %vm1214_vm6, %v5890_v41, %v5891_v35  ;;  %v1970_v19 = vadd.f32 %v1958_v20, %v1897_v9  ;;  %v1971_v7 = vadd.f32 %v1959_v24, %v1898_v38  ;;  %v2098_v12 = vld [vmem:[#allocation13 + $0x350] sm:$0xff]  ;;  %v1872_v8 = vld [vmem:[#allocation13 + $0x1f8] sm:$0xff]  ;;  %v2093_v9 = vld [vmem:[#allocation13 + $0x328] sm:$0xff] }
 0x356   : > { %v1928_v45 = vpop.permute.xlu1 %1927  ;;  %v1916_v53 = vpop.permute.xlu0 %1915  ;;  %v2031_v2 = vmul.f32 %v2019_v6, %v2004_v23  ;;  %v2032_v47 = vmul.f32 %v2020_v26, %v2010_v43  ;;  %v1903_v62 = vadd.f32 %v1891_v34, %v1830_v44  ;;  %v1904_v42 = vadd.f32 %v1892_v33, %v1831_v60  ;;  %v5894_v38 = vld [vmem:[#allocation68_spill] sm:$0xff]  ;;  %v5897_v60 = vld [vmem:[#allocation49_spill] sm:$0xff]  ;;  %v1945_v35 = vld [vmem:[#allocation13 + $0x258] sm:$0xff] }
 0x357   : > { %v1934_v14 = vsel %vm1252_vm7, %v1916_v53, %v1928_v45  ;;  %v1940_v55 = vsel %vm1252_vm7, %v1928_v45, %v1916_v53  ;;  %v1822_v5 = vadd.f32 %v5106_v18, %v1785_v54  ;;  %v1823_v36 = vadd.f32 %v5121_v16, %v1786_v51  ;;  %v5895_v20 = vld [vmem:[#allocation64_spill] sm:$0xff] }
 0x358   : > { %v1964_v30 = vmul.f32 %v1952_v49, %v1934_v14  ;;  %v1965_v28 = vmul.f32 %v1953_v10, %v1940_v55  ;;  %v1883_v3 = vmul.f32 %v1871_v46, %v1857_v31  ;;  %v1930_v21 = vsel %vm1252_vm7, %v5893_v56, %v5892_v48  ;;  %v1944_v10 = vld [vmem:[#allocation13 + $0x250] sm:$0xff]  ;;  %v5896_v44 = vld [vmem:[#allocation52_spill] sm:$0xff] }
 0x359   : > { %v2077_v24 = vsel %vm1328_vm9, %v5895_v20, %v5894_v38  ;;  %v2083_v18 = vsel %vm1328_vm9, %v5894_v38, %v5895_v20  ;;  %v2043_v59 = vadd.f32 %v2031_v2, %v1970_v19  ;;  %v2044_v23 = vadd.f32 %v2032_v47, %v1971_v7  ;;  %v5899_v47 = vld [vmem:[#allocation69_spill] sm:$0xff]  ;;  %v2091_v20 = vld [vmem:[#allocation13 + $0x318] sm:$0xff] }
 0x35a   : > { %v2001_v39 = vpop.permute.xlu1 %2000  ;;  %v1989_v40 = vpop.permute.xlu0 %1988  ;;  %v1976_v16 = vadd.f32 %v1964_v30, %v1903_v62  ;;  %v1977_v45 = vadd.f32 %v1965_v28, %v1904_v42  ;;  %v1856_v34 = vsel %vm1214_vm6, %v5897_v60, %v5896_v44  ;;  %v1884_v33 = vmul.f32 %v1872_v8, %v1863_v0  ;;  %v5901_v62 = vld [vmem:[#allocation70_spill] sm:$0xff] }
 0x35b   : > { %v2007_v27 = vsel %vm1290_vm8, %v1989_v40, %v2001_v39  ;;  %v2013_v1 = vsel %vm1290_vm8, %v2001_v39, %v1989_v40  ;;  %v2104_v54 = vmul.f32 %v2092_v25, %v2077_v24  ;;  %v2105_v51 = vmul.f32 %v2093_v9, %v2083_v18  ;;  %v5898_v40 = vld [vmem:[#allocation45_spill] sm:$0xff]  ;;  %v2018_v9 = vld [vmem:[#allocation13 + $0x2b8] sm:$0xff] }
 0x35c   : > { %v2037_v29 = vmul.f32 %v2025_v61, %v2007_v27  ;;  %v2038_v13 = vmul.f32 %v2026_v50, %v2013_v1  ;;  %v1895_v41 = vadd.f32 %v1883_v3, %v1822_v5  ;;  %v1936_v31 = vsel %vm1252_vm7, %v5892_v48, %v5893_v56  ;;  %v5900_v27 = vld [vmem:[#allocation47_spill] sm:$0xff]  ;;  %v2090_v38 = vld [vmem:[#allocation13 + $0x310] sm:$0xff] }
 0x35d   : > { %v1896_v46 = vadd.f32 %v1884_v33, %v1823_v36  ;;  %v1956_v19 = vmul.f32 %v1944_v10, %v1930_v21  ;;  %v2116_v7 = vadd.f32 %v2104_v54, %v2043_v59  ;;  %v2117_v30 = vadd.f32 %v2105_v51, %v2044_v23  ;;  %v5902_v36 = vld [vmem:[#allocation62_spill] sm:$0xff]  ;;  %v5903_v3 = vld [vmem:[#allocation55_spill] sm:$0xff]  ;;  %v1870_v21 = vld [vmem:[#allocation13 + $0x1e8] sm:$0xff] }
 0x35e   : > { %v2074_v53 = vpop.permute.xlu1 %2073  ;;  %v2062_v63 = vpop.permute.xlu0 %2061  ;;  %v2049_v14 = vadd.f32 %v2037_v29, %v1976_v16  ;;  %v2050_v55 = vadd.f32 %v2038_v13, %v1977_v45  ;;  %v5307_v1 = vadd.f32 %v5900_v27, %v5899_v47  ;;  %v5311_v42 = vadd.f32 %v5900_v27, %v5901_v62  ;;  %v1869_v56 = vld [vmem:[#allocation13 + $0x1e0] sm:$0xff]  ;;  %v5904_v16 = vld [vmem:[#allocation46_spill] sm:$0xff] }
 0x35f   : > { %v2080_v43 = vsel %vm1328_vm9, %v2062_v63, %v2074_v53  ;;  %v2086_v49 = vsel %vm1328_vm9, %v2074_v53, %v2062_v63  ;;  %v1820_v29 = vadd.f32 %v5088_v17, %v5189_v37  ;;  %v1862_v13 = vsel %vm1214_vm6, %v5896_v44, %v5897_v60  ;;  %v5905_v44 = vld [vmem:[#allocation51_spill] sm:$0xff]  ;;  %v5906_v60 = vld [vmem:[#allocation48_spill] sm:$0xff] }
 0x360   : > { %v2110_v6 = vmul.f32 %v2098_v12, %v2080_v43  ;;  %v2111_v26 = vmul.f32 %v2099_v15, %v2086_v49  ;;  %v1957_v5 = vmul.f32 %v1945_v35, %v1936_v31  ;;  %v2003_v48 = vsel %vm1290_vm8, %v5903_v3, %v5902_v36  ;;  %v2017_v15 = vld [vmem:[#allocation13 + $0x2b0] sm:$0xff] }
 0x361   : > { %v1968_v12 = vadd.f32 %v1956_v19, %v1895_v41  ;;  %v2009_v17 = vsel %vm1290_vm8, %v5902_v36, %v5903_v3  ;;  %v5334_v45 = vadd.f32 %v5904_v16, %v2116_v7  ;;  %v2178_v63 = vmax.f32 %v5307_v1, 0.0  ;;  %v1942_v41 = vld [vmem:[#allocation13 + $0x240] sm:$0xff]  ;;  %v2016_v19 = vld [vmem:[#allocation13 + $0x2a8] sm:$0xff] }
 0x362   : > { %v2122_v61 = vadd.f32 %v2110_v6, %v2049_v14  ;;  %v2123_v50 = vadd.f32 %v2111_v26, %v2050_v55  ;;  %v2066_v28 = vpop.permute.xlu1 %2065  ;;  %v2054_v39 = vpop.permute.xlu0 %2053  ;;  %v1969_v25 = vadd.f32 %v1957_v5, %v1896_v46  ;;  %v2179_v59 = vmax.f32 %v5311_v42, 0.0  ;;  %v2015_v46 = vld [vmem:[#allocation13 + $0x2a0] sm:$0xff]  ;;  %v5907_v7 = vld [vmem:[#allocation53_spill] sm:$0xff] }
 0x363   : > { %v2076_v24 = vsel %vm1328_vm9, %v2054_v39, %v2066_v28  ;;  %v2082_v18 = vsel %vm1328_vm9, %v2066_v28, %v2054_v39  ;;  %v5343_v23 = vadd.f32 %v5904_v16, %v2117_v30  ;;  %v1821_v43 = vadd.f32 %v5103_v22, %v5191_v57  ;;  %v1943_v22 = vld [vmem:[#allocation13 + $0x248] sm:$0xff]  ;;  %v5908_v30 = vld [vmem:[#allocation50_spill] sm:$0xff] }
 0x364   : > { %v5300_v2 = vadd.f32 %v5898_v40, %v2122_v61  ;;  %v5303_v0 = vadd.f32 %v5898_v40, %v2123_v50  ;;  %v1881_v49 = vmul.f32 %v1869_v56, %v1856_v34  ;;  %v1882_v10 = vmul.f32 %v1870_v21, %v1862_v13 }
 0x365   : > { %v2029_v14 = vmul.f32 %v2017_v15, %v2003_v48  ;;  %v2030_v55 = vmul.f32 %v2018_v9, %v2009_v17  ;;  %v2102_v6 = vmul.f32 %v2090_v38, %v2076_v24  ;;  %v2103_v26 = vmul.f32 %v2091_v20, %v2082_v18  ;;  %v2088_v17 = vld [vmem:[#allocation13 + $0x300] sm:$0xff] }
 0x366   : > { %v2182_v37 = vmax.f32 %v5300_v2, 0.0  ;;  %v2183_v8 = vmax.f32 %v5303_v0, 0.0  ;;  %v1929_v33 = vsel %vm1252_vm7, %v5906_v60, %v5905_v44  ;;  %v1935_v54 = vsel %vm1252_vm7, %v5905_v44, %v5906_v60  ;;  %v2052_v9 = vpop.permute.xlu1 %2051 }
 0x367   : > { %v2041_v51 = vadd.f32 %v2029_v14, %v1968_v12  ;;  %v2193_v57 = vadd.f32 %v2179_v59, %v2178_v63  ;;  %v2042_v34 = vadd.f32 %v2030_v55, %v1969_v25  ;;  %v2176_v35 = vmax.f32 %v5334_v45, 0.0  ;;  %v2089_v25 = vld [vmem:[#allocation13 + $0x308] sm:$0xff] }
 0x368   : > { %v2199_v53 = vadd.f32 %v2183_v8, %v2182_v37  ;;  %v2177_v31 = vmax.f32 %v5343_v23, 0.0  ;;  %v1893_v61 = vadd.f32 %v1881_v49, %v1820_v29  ;;  %v1894_v50 = vadd.f32 %v1882_v10, %v1821_v43  ;;  %v5909_v23 = vld [vmem:[#allocation43_spill] sm:$0xff] }
 0x369   : > { %v2002_v28 = vsel %vm1290_vm8, %v5908_v30, %v5907_v7  ;;  %v2008_v39 = vsel %vm1290_vm8, %v5907_v7, %v5908_v30  ;;  %v2114_v40 = vadd.f32 %v2102_v6, %v2041_v51  ;;  %v2115_v47 = vadd.f32 %v2103_v26, %v2042_v34 }
 0x36a   : > { %2200 = vadd.xlane.f32.xlu0 %v2199_v53  ;;  %v1954_v27 = vmul.f32 %v1942_v41, %v1929_v33  ;;  %v1955_v62 = vmul.f32 %v1943_v22, %v1935_v54  ;;  %v2190_v36 = vadd.f32 %v2177_v31, %v2176_v35  ;;  %v2027_v56 = vmul.f32 %v2015_v46, %v2002_v28 }
 0x36b   : > { %v2028_v21 = vmul.f32 %v2016_v19, %v2008_v39  ;;  %v3997_v10 = vmov 0.0   ;;  %v2209_v39 = vld [vmem:[#allocation16] sm:$0x3] }
 0x36c   : > { %v1966_v3 = vadd.f32 %v1954_v27, %v1893_v61  ;;  %v1967_v48 = vadd.f32 %v1955_v62, %v1894_v50  ;;  %3234 = vmatprep.subr.mxu1 %v3997_v10  ;;  %3246 = vmatprep.mubr.msk.f32.mxu1 %vm3998_vm10, %v3997_v10 }
 0x36e   : > { %2194 = vadd.xlane.f32.xlu0 %v2193_v57  ;;  %v2039_v16 = vadd.f32 %v2027_v56, %v1966_v3  ;;  %v2040_v53 = vadd.f32 %v2028_v21, %v1967_v48  ;;  %v2287_v3 = vld [vmem:[#allocation17 + $0x8] sm:$0xff]  ;;  %v2288_v48 = vld [vmem:[#allocation17 + $0x10] sm:$0xff]  ;;  %v2289_v56 = vld [vmem:[#allocation17 + $0x18] sm:$0xff] }
 0x36f   : > { %v2138_v13 = vpop.permute.xlu0 %2137  ;;  %v2290_v21 = vld [vmem:[#allocation17 + $0x20] sm:$0xff] }
 0x370   : > { %v5369_v29 = vadd.f32 %v2138_v13, %v2114_v40  ;;  %v5371_v5 = vadd.f32 %v2138_v13, %v2115_v47  ;;  %v2286_v40 = vld [vmem:[#allocation17] sm:$0xff] }
 0x371   : > { %v2210_v47 = vld [vmem:[%s5754_s10] sm:$0x3] }
 0x372   : > { %v2174_v12 = vmax.f32 %v5369_v29, 0.0  ;;  %v2175_v15 = vmax.f32 %v5371_v5, 0.0  ;;  %2191 = vadd.xlane.f32.xlu0 %v2190_v36  ;;  %v2703_v29 = vld [vmem:[#allocation26] sm:$0xf] }
 0x373   : > { %v2064_v38 = vpop.permute.xlu0 %2063  ;;  %v2133_v6 = vpop.permute.xlu1 %2132 }
 0x374   : > { %v2075_v20 = vsel %vm1328_vm9, %v2052_v9, %v2064_v38  ;;  %v2081_v24 = vsel %vm1328_vm9, %v2064_v38, %v2052_v9  ;;  %v2187_v18 = vadd.f32 %v2175_v15, %v2174_v12  ;;  %v2292_v9 = vld [vmem:[#allocation19] sm:$0xff] }
 0x375   : > { %v2100_v43 = vmul.f32 %v2088_v17, %v2075_v20  ;;  %v2101_v49 = vmul.f32 %v2089_v25, %v2081_v24  ;;  %v2291_v17 = vld [vmem:[#allocation17 + $0x28] sm:$0xff] }
 0x376   : > { %2188 = vadd.xlane.f32.xlu1 %v2187_v18  ;;  %v2295_v20 = vld [vmem:[#allocation19 + $0x18] sm:$0xff] }
 0x377   : > { %v2112_v14 = vadd.f32 %v2100_v43, %v2039_v16  ;;  %v2113_v55 = vadd.f32 %v2101_v49, %v2040_v53  ;;  %v2294_v16 = vld [vmem:[#allocation19 + $0x10] sm:$0xff]  ;;  %v2297_v49 = vld [vmem:[#allocation19 + $0x28] sm:$0xff] }
 0x379   : > { %v5387_v26 = vadd.f32 %v2133_v6, %v2112_v14  ;;  %v5389_v44 = vadd.f32 %v2133_v6, %v2113_v55  ;;  %v2293_v14 = vld [vmem:[#allocation19 + $0x8] sm:$0xff] }
 0x37b   : > { %v2172_v60 = vmax.f32 %v5387_v26, 0.0  ;;  %v2173_v33 = vmax.f32 %v5389_v44, 0.0 }
 0x37d   : > { %v2184_v54 = vadd.f32 %v2173_v33, %v2172_v60 }
 0x37f   : > { %2185 = vadd.xlane.f32.xlu0 %v2184_v54  ;;  %v2296_v54 = vld [vmem:[#allocation19 + $0x20] sm:$0xff] }
 0x3d1   : > { %v2198_v51 = vpop.xlane.xlu1 %2197 }
 0x3d2   : > { %v2207_v57 = vmul.f32 0.00390625, %v2198_v51 }
 0x3f3   : > { %v2201_v41 = vpop.xlane.xlu0 %2200 }
 0x3f4   : > { %v2208_v22 = vmul.f32 0.00390625, %v2201_v41 }
 0x3f6   : > { %3235 = vmatpush3.msra.mxu1 %v2208_v22 }
 0x3f7   : > { %3236 = vmatprep.subr.mxu1 %v3997_v10  ;;  %v2195_v34 = vpop.xlane.xlu0 %2194 }
 0x3f8   : > { %v2206_v61 = vmul.f32 0.00390625, %v2195_v34  ;;  %3237 = vmatpush3.msra.mxu1 %v2207_v57 }
 0x3f9   : > { %3238 = vmatprep.subr.mxu1 %v3997_v10 }
 0x3fa   : > { %3239 = vmatpush3.msra.mxu1 %v2206_v61 }
 0x3fb   : > { %v2192_v50 = vpop.xlane.xlu0 %2191  ;;  %3240 = vmatprep.subr.mxu1 %v3997_v10 }
 0x3fc   : > { %v2205_v46 = vmul.f32 0.00390625, %v2192_v50 }
 0x3fe   : > { %3241 = vmatpush3.msra.mxu1 %v2205_v46 }
 0x3ff   : > { %v2189_v19 = vpop.xlane.xlu1 %2188  ;;  %3242 = vmatprep.subr.mxu1 %v3997_v10 }
 0x400   : > { %v2204_v7 = vmul.f32 0.00390625, %v2189_v19 }
 0x402   : > { %3243 = vmatpush3.msra.mxu1 %v2204_v7 }
 0x403   : > { %3244 = vmatprep.subr.mxu1 %v3997_v10 }
 0x408   : > { %v2186_v30 = vpop.xlane.xlu0 %2185 }
 0x409   : > { %v2203_v28 = vmul.f32 0.00390625, %v2186_v30 }
 0x40b   : > { %3245 = vmatpush3.msra.mxu1 %v2203_v28 }
 0x40c   : > { %3247 = vmatmul.mubr.msk.f32.vlgmr.msra.gmra.mxu1 %vm2211_vm11, %v2209_v39 }
 0x40d   : > { %3251 = vmatprep.mubr.msk.f32.mxu1 %vm2298_vm12, %v2286_v40 }
 0x4cc   : > { %v2281_v27 = vpop.f32.mrf.mxu1 }
 0x4cd   : > { %v2282_v62 = vadd.f32 %v2281_v27, %v2210_v47 }
 0x4ce   : > { %v3248_v13 = vpop.f32.mrf.mxu1 }
 0x4cf   : > { %v2285_v36 = vmax.f32 %v2282_v62, 0.0 }
 0x4d1   : > { %3249 = vmatprep.subr.msk.mxu1 %vm2317_vm13, %v2285_v36 }
 0x4d2   : > { %3250 = vmatpush3.msk.msra.mxu1 %vm2317_vm13, %v2285_v36 }
 0x4d3   : > { %3252 = vmatmul.mubr.msk.f32.vlgmr.msra.gmra.mxu1 %vm2298_vm12, %v2287_v3 }
 0x4d4   : > { %3254 = vmatprep.mubr.msk.f32.mxu1 %vm2298_vm12, %v2288_v48 }
 0x4d7   : > { %3255 = vmatmul.mubr.msk.f32.gmra.mxu1 %vm2298_vm12, %v2289_v56 }
 0x4d8   : > { %3257 = vmatprep.mubr.msk.f32.mxu1 %vm2298_vm12, %v2290_v21 }
 0x4db   : > { %3258 = vmatmul.mubr.msk.f32.gmra.mxu1 %vm2298_vm12, %v2291_v17 }
 0x593   : > { %v3253_v25 = vpop.f32.mrf.mxu1 }
 0x594   : > { %v2393_v34 = vadd.f32 %v3253_v25, %v2293_v14 }
 0x595   : > { %v2387_v38 = vpop.f32.mrf.mxu1 }
 0x596   : > { %v2388_v24 = vadd.f32 %v2387_v38, %v2292_v9  ;;  %v3174_v19 = vmul.f32 -1.442695, %v2393_v34  ;;  %v2501_v38 = vld [vmem:[#allocation22] sm:$0xff] }
 0x597   : > { %v3256_v18 = vpop.f32.mrf.mxu1 }
 0x598   : > { %v2403_v53 = vadd.f32 %v3256_v18, %v2295_v20  ;;  %v3173_v55 = vmul.f32 -1.442695, %v2388_v24  ;;  %v2661_v24 = vld [vmem:[#allocation23] sm:$0xff]  ;;  %v2704_v18 = vld [vmem:[%s5764_s20] sm:$0xff] }
 0x599   : > { %v2397_v43 = vpop.f32.mrf.mxu1 }
 0x59a   : > { %v2398_v10 = vadd.f32 %v2397_v43, %v2294_v16  ;;  %v3176_v22 = vmul.f32 -1.442695, %v2403_v53  ;;  %v2687_v16 = vld [vmem:[#allocation25 + $0x8] sm:$0xff]  ;;  %v2671_v53 = vld [vmem:[#allocation25] sm:$0xff] }
 0x59b   : > { %v3259_v6 = vpop.f32.mrf.mxu1 }
 0x59c   : > { %v3175_v51 = vmul.f32 -1.442695, %v2398_v10  ;;  %v2413_v41 = vadd.f32 %v3259_v6, %v2297_v49 }
 0x59d   : > { %v2407_v57 = vpop.f32.mrf.mxu1 }
 0x59e   : > { %3466 = vpow2.f32 %v3175_v51  ;;  %v3178_v61 = vmul.f32 -1.442695, %v2413_v41  ;;  %v2408_v50 = vadd.f32 %v2407_v57, %v2296_v54 }
 0x59f   : > { %3468 = vpow2.f32 %v3173_v55 }
 0x5a0   : > { %3470 = vpow2.f32 %v3178_v61  ;;  %v3177_v46 = vmul.f32 -1.442695, %v2408_v50 }
 0x5a1   : > { %3472 = vpow2.f32 %v3176_v22 }
 0x5a2   : > { %3474 = vpow2.f32 %v3177_v46 }
 0x5a3   : > { %3476 = vpow2.f32 %v3174_v19 }
 0x5ab   : > { %v3467_v7 = vpop.eup %3466 }
 0x5ac   : > { %v3469_v30 = vpop.eup %3468  ;;  %v2436_v28 = vadd.f32 1.0, %v3467_v7 }
 0x5ad   : > { %v3471_v39 = vpop.eup %3470  ;;  %v2434_v62 = vadd.f32 1.0, %v3469_v30 }
 0x5ae   : > { %v3473_v40 = vpop.eup %3472  ;;  %3478 = vrcp.f32 %v2436_v28  ;;  %v2439_v47 = vadd.f32 1.0, %v3471_v39 }
 0x5af   : > { %v3475_v27 = vpop.eup %3474  ;;  %v2437_v36 = vadd.f32 1.0, %v3473_v40 }
 0x5b0   : > { %3480 = vrcp.f32 %v2439_v47  ;;  %v2438_v13 = vadd.f32 1.0, %v3475_v27  ;;  %v3477_v3 = vpop.eup %3476 }
 0x5b1   : > { %v2435_v48 = vadd.f32 1.0, %v3477_v3 }
 0x5b2   : > { %3482 = vrcp.f32 %v2438_v13  ;;  %v2864_v13 = vld [vmem:[%s5766_s22] sm:$0xff] }
 0x5b3   : > { %3484 = vrcp.f32 %v2434_v62  ;;  %v2679_v62 = vld [vmem:[%s5762_s18] sm:$0xff] }
 0x5b4   : > { %3486 = vrcp.f32 %v2437_v36  ;;  %v2695_v36 = vld [vmem:[%s5762_s18 + $0x8] sm:$0xff] }
 0x5b5   : > { %3488 = vrcp.f32 %v2435_v48 }
 0x5bb   : > { %v3479_v56 = vpop.eup %3478 }
 0x5bc   : > { %2464 = vperm.xlu1 %3463, %v3479_v56  }
 0x5bd   : > { %v3481_v21 = vpop.eup %3480 }
 0x5be   : > { %2479 = vperm.xlu0 %3462, %v3481_v21  }
 0x5bf   : > { %v3483_v17 = vpop.eup %3482 }
 0x5c0   : > { %2474 = vperm.xlu1 %3463, %v3483_v17   ;;  %v3485_v25 = vpop.eup %3484 }
 0x5c1   : > { %v3487_v9 = vpop.eup %3486 }
 0x5c2   : > { %2454 = vperm.xlu0 %3462, %v3485_v25   ;;  %v3489_v20 = vpop.eup %3488 }
 0x5c4   : > { %2469 = vperm.xlu1 %3463, %v3487_v9  }
 0x5c6   : > { %2504 = vperm.xlu0 %3462, %v2501_v38  }
 0x5c8   : > { %2459 = vperm.xlu1 %3463, %v3489_v20   ;;  %v3180_v20 = vld [vmem:[%s5759_s15 + $0x10] sm:$0xff] }
 0x5ca   : > { %2664 = vperm.xlu0 %3462, %v2661_v24   ;;  %v3181_v24 = vld [vmem:[%s5759_s15 + $0x18] sm:$0xff] }
 0x5cc   : > { %2707 = vperm.xlu1 %3463, %v2704_v18  }
 0x5ce   : > { %2690 = vperm.xlu0 %3462, %v2687_v16  }
 0x5d0   : > { %2674 = vperm.xlu1 %3463, %v2671_v53   ;;  %v2559_v53 = vld [vmem:[%s5759_s15] sm:$0xff] }
 0x637   : > { %v2465_v43 = vpop.permute.xlu1 %2464 }
 0x638   : > { %v2486_v57 = vmul.f32 %v2465_v43, %v2176_v35  ;;  %v2487_v34 = vmul.f32 %v2465_v43, %v2177_v31  ;;  %v5910_v35 = vld [vmem:[#allocation44_spill] sm:$0xff]  ;;  %v5911_v31 = vmov 0  }
 0x639   : > { %v2480_v49 = vpop.permute.xlu0 %2479 }
 0x63a   : > { %v2492_v14 = vmul.f32 %v2480_v49, %v2182_v37  ;;  %v2493_v55 = vmul.f32 %v2480_v49, %v2183_v8  ;;  %v2560_v49 = vld [vmem:[%s5759_s15 + $0x8] sm:$0xff] }
 0x63b   : > { %v2475_v10 = vpop.permute.xlu1 %2474 }
 0x63c   : > { %v2490_v6 = vmul.f32 %v2475_v10, %v2180_v4  ;;  %v2491_v54 = vmul.f32 %v2475_v10, %v2181_v58 }
 0x63d   : > { %v2455_v52 = vpop.permute.xlu0 %2454 }
 0x63e   : > { %v2498_v51 = vpack.c.bf16 %v2492_v14, %v2490_v6  ;;  %v2499_v41 = vpack.c.bf16 %v2493_v55, %v2491_v54  ;;  %v2482_v37 = vmul.f32 %v2455_v52, %v2172_v60  ;;  %v2483_v8 = vmul.f32 %v2455_v52, %v2173_v33  ;;  %v3182_v55 = vld [vmem:[%s5759_s15 + $0x20] sm:$0xff]  ;;  %v3183_v6 = vld [vmem:[%s5759_s15 + $0x28] sm:$0xff] }
 0x63f   : > { %v2470_v22 = vpop.permute.xlu1 %2469 }
 0x640   : > { %v2488_v2 = vmul.f32 %v2470_v22, %v2178_v63  ;;  %v2489_v0 = vmul.f32 %v2470_v22, %v2179_v59  ;;  %2520 = vmatprep.subr.bf16.mxu0 %v2499_v41  ;;  %v2500_v59 = vld [vmem:[#allocation20] sm:$0xf] }
 0x641   : > { %2521 = vmatpush1.bf16.msra.mxu0 %v2498_v51  ;;  %v2505_v5 = vpop.permute.xlu0 %2504 }
 0x642   : > { %v2496_v11 = vpack.c.bf16 %v2488_v2, %v2486_v57  ;;  %v2497_v4 = vpack.c.bf16 %v2489_v0, %v2487_v34  ;;  %v3184_v34 = vld [vmem:[%s5759_s15 + $0x30] sm:$0xff]  ;;  %v3185_v2 = vld [vmem:[%s5759_s15 + $0x38] sm:$0xff] }
 0x643   : > { %v2460_v58 = vpop.permute.xlu1 %2459 }
 0x644   : > { %v2484_v45 = vmul.f32 %v2460_v58, %v2174_v12  ;;  %v2485_v1 = vmul.f32 %v2460_v58, %v2175_v15  ;;  %2522 = vmatprep.subr.bf16.mxu0 %v2497_v4 }
 0x645   : > { %2523 = vmatpush1.bf16.msra.mxu0 %v2496_v11  ;;  %v5521_v3 = vpop.permute.xlu0 %2664 }
 0x646   : > { %v2494_v42 = vpack.c.bf16 %v2484_v45, %v2482_v37  ;;  %v2495_v63 = vpack.c.bf16 %v2485_v1, %v2483_v8 }
 0x647   : > { %v2708_v28 = vpop.permute.xlu1 %2707 }
 0x648   : > { %2524 = vmatprep.subr.bf16.mxu0 %v2495_v63 }
 0x649   : > { %2525 = vmatpush1.bf16.msra.mxu0 %v2494_v42  ;;  %v5523_v48 = vpop.permute.xlu0 %2690 }
 0x64a   : > { %3196 = vmatprep.subr.msk.bf16.mxu0 %vm972_vm0, %v5909_v23 }
 0x64b   : > { %v5525_v56 = vpop.permute.xlu1 %2674 }
 0x64c   : > { %3179 = vmatmul.mubr.msk.bf16.vlgmr.msra.gmra.mxu0 %vm2211_vm11, %v2500_v59 }
 0x64d   : > { %2728 = vmatpush1.bf16.msra.mxu0 %v5910_v35  ;;  %2745 = vmatprep.mubr.bf16.mxu0 %v5911_v31 }
 0x654   : > { %3197 = vmatmul.mubr.msk.bf16.vlgmr.msra.gmra.mxu0 %vm965_vm1, %v2703_v29  ;;  %v3186_v29 = vld [vmem:[%s5759_s15 + $0x40] sm:$0xff] }
 0x70c   : > { %v2544_v12 = vpop.f32.mrf.mxu0 }
 0x70d   : > { %v2545_v15 = vadd.f32 %v2544_v12, %v2505_v5 }
 0x70e   : > { %v2546_v26 = vpop.f32.mrf.mxu0 }
 0x70f   : > { %v5440_v44 = vmax.f32 %v2545_v15, 0.0  ;;  %v2547_v60 = vadd.f32 %v2546_v26, %v2505_v5  ;;  %v3187_v5 = vld [vmem:[%s5759_s15 + $0x48] sm:$0xff] }
 0x710   : > { %v2548_v33 = vpop.f32.mrf.mxu0 }
 0x711   : > { %v5442_v61 = vmax.f32 %v2547_v60, 0.0  ;;  %2553 = vrot.lane.b32.xlu0 %v5440_v44, %s3990_s0  ;;  %v3188_v60 = vld [vmem:[%s5759_s15 + $0x50] sm:$0xff]  ;;  %v3189_v33 = vld [vmem:[%s5759_s15 + $0x58] sm:$0xff] }
 0x712   : > { %v2549_v50 = vpop.f32.mrf.mxu0 }
 0x713   : > { %2555 = vrot.lane.b32.xlu1 %v5442_v61, %s3990_s0 }
 0x714   : > { %v2747_v46 = vpop.f32.mrf.mxu0 }
 0x715   : > { %2563 = vrot.lane.b32.xlu0 %v5440_v44, %s3991_s24  ;;  %v2748_v39 = vadd.f32 %v2747_v46, %v2708_v28 }
 0x716   : > { %v2749_v19 = vpop.f32.mrf.mxu0 }
 0x717   : > { %2565 = vrot.lane.b32.xlu1 %v5442_v61, %s3991_s24  ;;  %v5474_v40 = vmax.f32 %v2748_v39, 0.0  ;;  %v2750_v47 = vadd.f32 %v2749_v19, %v2708_v28  ;;  %v2605_v19 = vmul.f32 %v3186_v29, %v5440_v44  ;;  %v3190_v28 = vld [vmem:[%s5759_s15 + $0x60] sm:$0xff]  ;;  %v3191_v39 = vld [vmem:[%s5759_s15 + $0x68] sm:$0xff] }
 0x718   : > { %v2751_v7 = vpop.f32.mrf.mxu0 }
 0x719   : > { %2576 = vrot.lane.b32.xlu0 %v5440_v44, %s3992_s3  ;;  %v5490_v27 = vmax.f32 %v2750_v47, 0.0  ;;  %v2606_v7 = vmul.f32 %v3187_v5, %v5442_v61 }
 0x71a   : > { %v2752_v30 = vpop.f32.mrf.mxu0 }
 0x71b   : > { %2578 = vrot.lane.b32.xlu1 %v5442_v61, %s3992_s3 }
 0x71d   : > { %2589 = vrot.lane.b32.xlu0 %v5440_v44, %s3993_s28 }
 0x71f   : > { %2591 = vrot.lane.b32.xlu1 %v5442_v61, %s3993_s28 }
 0x721   : > { %2609 = vrot.lane.b32.xlu0 %v5440_v44, %s3994_s5 }
 0x723   : > { %2611 = vrot.lane.b32.xlu1 %v5442_v61, %s3994_s5 }
 0x725   : > { %2622 = vrot.lane.b32.xlu0 %v5440_v44, %s3995_s4 }
 0x727   : > { %2624 = vrot.lane.b32.xlu1 %v5442_v61, %s3995_s4 }
 0x729   : > { %2635 = vrot.lane.b32.xlu0 %v5440_v44, %s3989_s23 }
 0x72b   : > { %2637 = vrot.lane.b32.xlu1 %v5442_v61, %s3989_s23 }
 0x72d   : > { %2648 = vrot.lane.b32.xlu0 %v5440_v44, %s3996_s2 }
 0x72f   : > { %2650 = vrot.lane.b32.xlu1 %v5442_v61, %s3996_s2 }
 0x731   : > { %2756 = vrot.lane.b32.xlu0 %v5474_v40, %s3990_s0 }
 0x733   : > { %2825 = vrot.lane.b32.xlu1 %v5474_v40, %s3995_s4 }
 0x735   : > { %2766 = vrot.lane.b32.xlu0 %v5474_v40, %s3991_s24 }
 0x737   : > { %2838 = vrot.lane.b32.xlu1 %v5474_v40, %s3989_s23 }
 0x739   : > { %2779 = vrot.lane.b32.xlu0 %v5474_v40, %s3992_s3 }
 0x73b   : > { %2851 = vrot.lane.b32.xlu1 %v5474_v40, %s3996_s2 }
 0x73d   : > { %2792 = vrot.lane.b32.xlu0 %v5474_v40, %s3993_s28 }
 0x73f   : > { %2758 = vrot.lane.b32.xlu1 %v5490_v27, %s3990_s0 }
 0x741   : > { %2812 = vrot.lane.b32.xlu0 %v5474_v40, %s3994_s5 }
 0x743   : > { %2768 = vrot.lane.b32.xlu1 %v5490_v27, %s3991_s24  ;;  %s5915_s24 = sld [smem:[#allocation80_spill]] (%p5914_p9) }
 0x745   : > { %2827 = vrot.lane.b32.xlu0 %v5490_v27, %s3995_s4  ;;  %s5912_s4 = sld [smem:[#allocation38_spill]] }
 0x747   : > { %2781 = vrot.lane.b32.xlu1 %v5490_v27, %s3992_s3 }
 0x749   : > { %2840 = vrot.lane.b32.xlu0 %v5490_v27, %s3989_s23  ;;  %s2891_s3 = scalar_lea.vmem (%p5914_p9), %s5915_s24, %s3219_s1 }
 0x74b   : > { %2794 = vrot.lane.b32.xlu1 %v5490_v27, %s3993_s28  ;;  %s921_s29 = sand.u32 1, %s5912_s4  }
 0x74c   : > { %s3157_s26 = sshll.u32 %s921_s29, 5 }
 0x74d   : > { %2853 = vrot.lane.b32.xlu0 %v5490_v27, %s3996_s2  ;;  %s923_s6 = scalar_lea.vmem [#allocation28], %s3157_s26 }
 0x74f   : > { %2814 = vrot.lane.b32.xlu1 %v5490_v27, %s3994_s5 }
 0x751   : > { %2682 = vperm.xlu0 %3462, %v2679_v62  }
 0x753   : > { %2867 = vperm.xlu1 %3463, %v2864_v13  }
 0x757   : > { %2698 = vperm.xlu1 %3463, %v2695_v36  }
 0x783   : > { %v2554_v21 = vpop.permute.xlu0 %2553 }
 0x785   : > { %v2556_v17 = vpop.permute.xlu1 %2555 }
 0x786   : > { %v2557_v10 = vsel %vm1050_vm3, %v2554_v21, %v2556_v17  ;;  %v2558_v14 = vsel %vm1050_vm3, %v2556_v17, %v2554_v21 }
 0x787   : > { %v2564_v25 = vpop.permute.xlu0 %2563  ;;  %v2561_v0 = vmul.f32 %v2559_v53, %v2558_v14  ;;  %v2562_v52 = vmul.f32 %v2560_v49, %v2557_v10 }
 0x789   : > { %v2566_v9 = vpop.permute.xlu1 %2565 }
 0x78a   : > { %v2567_v18 = vsel %vm1081_vm2, %v2564_v25, %v2566_v9  ;;  %v2568_v16 = vsel %vm1081_vm2, %v2566_v9, %v2564_v25  ;;  %v3192_v9 = vld [vmem:[%s5759_s15 + $0x70] sm:$0xff] }
 0x78b   : > { %v2577_v38 = vpop.permute.xlu0 %2576  ;;  %v2572_v41 = vmul.f32 %v3180_v20, %v2568_v16  ;;  %v2573_v22 = vmul.f32 %v3181_v24, %v2567_v18 }
 0x78d   : > { %v2579_v43 = vpop.permute.xlu1 %2578  ;;  %v2574_v45 = vadd.f32 %v2572_v41, %v2561_v0  ;;  %v2575_v1 = vadd.f32 %v2573_v22, %v2562_v52 }
 0x78e   : > { %v2580_v54 = vsel %vm1119_vm4, %v2577_v38, %v2579_v43  ;;  %v2581_v51 = vsel %vm1119_vm4, %v2579_v43, %v2577_v38  ;;  %v3193_v38 = vld [vmem:[%s5759_s15 + $0x78] sm:$0xff] }
 0x78f   : > { %v2590_v57 = vpop.permute.xlu0 %2589  ;;  %v2585_v11 = vmul.f32 %v3182_v55, %v2581_v51  ;;  %v2586_v4 = vmul.f32 %v3183_v6, %v2580_v54  ;;  %v3194_v6 = vld [vmem:[%s5759_s15 + $0x80] sm:$0xff]  ;;  %v3195_v54 = vld [vmem:[%s5759_s15 + $0x88] sm:$0xff] }
 0x791   : > { %v2592_v58 = vpop.permute.xlu1 %2591  ;;  %v2587_v23 = vadd.f32 %v2585_v11, %v2574_v45  ;;  %v2588_v35 = vadd.f32 %v2586_v4, %v2575_v1 }
 0x792   : > { %v2593_v37 = vsel %vm1157_vm5, %v2590_v57, %v2592_v58  ;;  %v2594_v8 = vsel %vm1157_vm5, %v2592_v58, %v2590_v57 }
 0x793   : > { %v2598_v42 = vmul.f32 %v3184_v34, %v2594_v8  ;;  %v2599_v63 = vmul.f32 %v3185_v2, %v2593_v37  ;;  %v2610_v59 = vpop.permute.xlu0 %2609 }
 0x795   : > { %v2612_v31 = vpop.permute.xlu1 %2611  ;;  %v2600_v12 = vadd.f32 %v2598_v42, %v2587_v23  ;;  %v2601_v15 = vadd.f32 %v2599_v63, %v2588_v35 }
 0x796   : > { %v2613_v50 = vsel %vm1214_vm6, %v2610_v59, %v2612_v31  ;;  %v2614_v46 = vsel %vm1214_vm6, %v2612_v31, %v2610_v59 }
 0x797   : > { %v2623_v26 = vpop.permute.xlu0 %2622  ;;  %v2607_v13 = vadd.f32 %v2605_v19, %v2600_v12  ;;  %v2608_v36 = vadd.f32 %v2606_v7, %v2601_v15  ;;  %v2618_v21 = vmul.f32 %v3188_v60, %v2613_v50  ;;  %v2619_v17 = vmul.f32 %v3189_v33, %v2614_v46  ;;  %v3199_v33 = vld [vmem:[%s5765_s21 + $0x18] sm:$0xff]  ;;  %v2762_v46 = vld [vmem:[%s5765_s21] sm:$0xff]  ;;  %v2763_v19 = vld [vmem:[%s5765_s21 + $0x8] sm:$0xff] }
 0x799   : > { %v2625_v30 = vpop.permute.xlu1 %2624  ;;  %v2620_v43 = vadd.f32 %v2618_v21, %v2607_v13  ;;  %v2621_v49 = vadd.f32 %v2619_v17, %v2608_v36 }
 0x79a   : > { %v2626_v47 = vsel %vm1252_vm7, %v2623_v26, %v2625_v30  ;;  %v2627_v62 = vsel %vm1252_vm7, %v2625_v30, %v2623_v26 }
 0x79b   : > { %v2636_v25 = vpop.permute.xlu0 %2635  ;;  %v2631_v20 = vmul.f32 %v3190_v28, %v2626_v47  ;;  %v2632_v24 = vmul.f32 %v3191_v39, %v2627_v62  ;;  %v3200_v28 = vld [vmem:[%s5765_s21 + $0x20] sm:$0xff]  ;;  %v3201_v39 = vld [vmem:[%s5765_s21 + $0x28] sm:$0xff] }
 0x79d   : > { %v2638_v18 = vpop.permute.xlu1 %2637  ;;  %v2633_v51 = vadd.f32 %v2631_v20, %v2620_v43  ;;  %v2634_v41 = vadd.f32 %v2632_v24, %v2621_v49  ;;  %v3202_v24 = vld [vmem:[%s5765_s21 + $0x30] sm:$0xff] }
 0x79e   : > { %v2639_v16 = vsel %vm1290_vm8, %v2636_v25, %v2638_v18  ;;  %v2640_v53 = vsel %vm1290_vm8, %v2638_v18, %v2636_v25  ;;  %v3203_v18 = vld [vmem:[%s5765_s21 + $0x38] sm:$0xff] }
 0x79f   : > { %v2644_v10 = vmul.f32 %v3192_v9, %v2639_v16  ;;  %v2645_v14 = vmul.f32 %v3193_v38, %v2640_v53  ;;  %v2649_v55 = vpop.permute.xlu0 %2648 }
 0x7a1   : > { %v2651_v22 = vpop.permute.xlu1 %2650  ;;  %v2646_v2 = vadd.f32 %v2644_v10, %v2633_v51  ;;  %v2647_v0 = vadd.f32 %v2645_v14, %v2634_v41  ;;  %v3204_v14 = vld [vmem:[%s5765_s21 + $0x40] sm:$0xff] }
 0x7a2   : > { %v2652_v57 = vsel %vm1328_vm9, %v2649_v55, %v2651_v22  ;;  %v2653_v34 = vsel %vm1328_vm9, %v2651_v22, %v2649_v55  ;;  %v3205_v55 = vld [vmem:[%s5765_s21 + $0x48] sm:$0xff] }
 0x7a3   : > { %v2657_v52 = vmul.f32 %v3194_v6, %v2652_v57  ;;  %v2658_v11 = vmul.f32 %v3195_v54, %v2653_v34  ;;  %v2757_v4 = vpop.permute.xlu0 %2756  ;;  %v3206_v57 = vld [vmem:[%s5765_s21 + $0x50] sm:$0xff]  ;;  %v3207_v34 = vld [vmem:[%s5765_s21 + $0x58] sm:$0xff] }
 0x7a5   : > { %v2659_v58 = vadd.f32 %v2657_v52, %v2646_v2  ;;  %v2660_v37 = vadd.f32 %v2658_v11, %v2647_v0  ;;  %v2826_v8 = vpop.permute.xlu1 %2825  ;;  %v2808_v52 = vmul.f32 %v3204_v14, %v5474_v40  ;;  %v2809_v11 = vmul.f32 %v3205_v55, %v5490_v27 }
 0x7a7   : > { %v2767_v45 = vpop.permute.xlu0 %2766  ;;  %v2667_v1 = vadd.f32 %v5521_v3, %v2659_v58  ;;  %v2668_v42 = vadd.f32 %v5521_v3, %v2660_v37  ;;  %v3198_v3 = vld [vmem:[%s5765_s21 + $0x10] sm:$0xff]  ;;  %v3208_v58 = vld [vmem:[%s5765_s21 + $0x60] sm:$0xff]  ;;  %v3209_v37 = vld [vmem:[%s5765_s21 + $0x68] sm:$0xff] }
 0x7a9   : > { %v5617_v63 = vpop.permute.xlu1 %2838  ;;  %v2669_v59 = vmax.f32 %v2667_v1, 0.0  ;;  %v2670_v23 = vmax.f32 %v2668_v42, 0.0 }
 0x7ab   : > { %v2780_v35 = vpop.permute.xlu0 %2779  ;;  %v5620_v31 = vmul.f32 %v5523_v48, %v2669_v59  ;;  %v5623_v29 = vmul.f32 %v5523_v48, %v2670_v23 }
 0x7ad   : > { %v5625_v5 = vpop.permute.xlu1 %2851 }
 0x7af   : > { %v2793_v12 = vpop.permute.xlu0 %2792 }
 0x7b1   : > { %v2759_v15 = vpop.permute.xlu1 %2758 }
 0x7b2   : > { %v2760_v7 = vsel %vm1050_vm3, %v2757_v4, %v2759_v15  ;;  %v2761_v30 = vsel %vm1050_vm3, %v2759_v15, %v2757_v4 }
 0x7b3   : > { %v2813_v26 = vpop.permute.xlu0 %2812  ;;  %v2764_v25 = vmul.f32 %v2762_v46, %v2761_v30  ;;  %v2765_v9 = vmul.f32 %v2763_v19, %v2760_v7 }
 0x7b5   : > { %v2769_v60 = vpop.permute.xlu1 %2768 }
 0x7b6   : > { %v2770_v50 = vsel %vm1081_vm2, %v2767_v45, %v2769_v60  ;;  %v2771_v48 = vsel %vm1081_vm2, %v2769_v60, %v2767_v45  ;;  %v3210_v60 = vld [vmem:[%s5765_s21 + $0x70] sm:$0xff] }
 0x7b7   : > { %v2775_v47 = vmul.f32 %v3198_v3, %v2771_v48  ;;  %v2776_v62 = vmul.f32 %v3199_v33, %v2770_v50  ;;  %v2828_v13 = vpop.permute.xlu0 %2827  ;;  %v3211_v3 = vld [vmem:[%s5765_s21 + $0x78] sm:$0xff] }
 0x7b8   : > { %v2829_v45 = vsel %vm1252_vm7, %v2826_v8, %v2828_v13  ;;  %v2830_v1 = vsel %vm1252_vm7, %v2828_v13, %v2826_v8 }
 0x7b9   : > { %v2782_v36 = vpop.permute.xlu1 %2781  ;;  %v2777_v16 = vadd.f32 %v2775_v47, %v2764_v25  ;;  %v2778_v53 = vadd.f32 %v2776_v62, %v2765_v9  ;;  %v2834_v33 = vmul.f32 %v3208_v58, %v2829_v45  ;;  %v2835_v50 = vmul.f32 %v3209_v37, %v2830_v1  ;;  %v3212_v47 = vld [vmem:[%s5765_s21 + $0x80] sm:$0xff]  ;;  %v3213_v62 = vld [vmem:[%s5765_s21 + $0x88] sm:$0xff] }
 0x7ba   : > { %v2783_v21 = vsel %vm1119_vm4, %v2780_v35, %v2782_v36  ;;  %v2784_v17 = vsel %vm1119_vm4, %v2782_v36, %v2780_v35  ;;  %v2677_v9 = vmul.f32 %v5525_v56, %v5440_v44 }
 0x7bb   : > { %v2788_v38 = vmul.f32 %v3200_v28, %v2784_v17  ;;  %v2789_v20 = vmul.f32 %v3201_v39, %v2783_v21  ;;  %v2841_v51 = vpop.permute.xlu0 %2840 }
 0x7bc   : > { %v2842_v8 = vsel %vm1290_vm8, %v5617_v63, %v2841_v51 }
 0x7bd   : > { %v2795_v43 = vpop.permute.xlu1 %2794  ;;  %v2790_v6 = vadd.f32 %v2788_v38, %v2777_v16  ;;  %v2791_v54 = vadd.f32 %v2789_v20, %v2778_v53  ;;  %v2847_v7 = vmul.f32 %v3210_v60, %v2842_v8  ;;  %v2678_v38 = vmul.f32 %v5525_v56, %v5442_v61 }
 0x7be   : > { %v2796_v49 = vsel %vm1157_vm5, %v2793_v12, %v2795_v43  ;;  %v2797_v10 = vsel %vm1157_vm5, %v2795_v43, %v2793_v12 }
 0x7bf   : > { %v2801_v41 = vmul.f32 %v3202_v24, %v2797_v10  ;;  %v2802_v22 = vmul.f32 %v3203_v18, %v2796_v49  ;;  %v2854_v48 = vpop.permute.xlu0 %2853 }
 0x7c0   : > { %v2856_v13 = vsel %vm1328_vm9, %v2854_v48, %v5625_v5 }
 0x7c1   : > { %v2803_v2 = vadd.f32 %v2801_v41, %v2790_v6  ;;  %v2804_v0 = vadd.f32 %v2802_v22, %v2791_v54  ;;  %v2815_v4 = vpop.permute.xlu1 %2814  ;;  %v2861_v25 = vmul.f32 %v3213_v62, %v2856_v13 }
 0x7c2   : > { %v2816_v42 = vsel %vm1214_vm6, %v2813_v26, %v2815_v4  ;;  %v2817_v59 = vsel %vm1214_vm6, %v2815_v4, %v2813_v26  ;;  %v2843_v26 = vsel %vm1290_vm8, %v2841_v51, %v5617_v63  ;;  %v2855_v63 = vsel %vm1328_vm9, %v5625_v5, %v2854_v48 }
 0x7c3   : > { %v2810_v23 = vadd.f32 %v2808_v52, %v2803_v2  ;;  %v2811_v35 = vadd.f32 %v2809_v11, %v2804_v0  ;;  %v2821_v12 = vmul.f32 %v3206_v57, %v2816_v42  ;;  %v2822_v15 = vmul.f32 %v3207_v34, %v2817_v59 }
 0x7c4   : > { %v2848_v30 = vmul.f32 %v3211_v3, %v2843_v26  ;;  %v2860_v17 = vmul.f32 %v3212_v47, %v2855_v63 }
 0x7c5   : > { %v2823_v46 = vadd.f32 %v2821_v12, %v2810_v23  ;;  %v2824_v19 = vadd.f32 %v2822_v15, %v2811_v35 }
 0x7c7   : > { %v2836_v28 = vadd.f32 %v2834_v33, %v2823_v46  ;;  %v2837_v39 = vadd.f32 %v2835_v50, %v2824_v19 }
 0x7c9   : > { %v2849_v36 = vadd.f32 %v2847_v7, %v2836_v28  ;;  %v2850_v21 = vadd.f32 %v2848_v30, %v2837_v39 }
 0x7cb   : > { %v2862_v16 = vadd.f32 %v2860_v17, %v2849_v36  ;;  %v2863_v53 = vadd.f32 %v2861_v25, %v2850_v21 }
 0x7cc   : > { %v2683_v20 = vpop.permute.xlu0 %2682 }
 0x7cd   : > { %v2685_v24 = vadd.f32 %v2683_v20, %v2677_v9  ;;  %v2686_v18 = vadd.f32 %v2683_v20, %v2678_v38 }
 0x7ce   : > { %v2868_v43 = vpop.permute.xlu1 %2867 }
 0x7cf   : > { %v2874_v32 = vadd.f32 %v5474_v40, %v2685_v24  ;;  %v2875_v5 = vadd.f32 %v5490_v27, %v2686_v18  ;;  %v2870_v49 = vadd.f32 %v2868_v43, %v2862_v16  ;;  %v2871_v10 = vadd.f32 %v2868_v43, %v2863_v53 }
 0x7d1   : > { %2878 = vst [vmem:[%s923_s6] sm:$0xff] %v2874_v32  ;;  %2879 = vst [vmem:[%s923_s6 + $0x8] sm:$0xff] %v2875_v5  ;;  %v2872_v44 = vmax.f32 %v2870_v49, 0.0  ;;  %v2873_v55 = vmax.f32 %v2871_v10, 0.0 }
 0x7d2   : > { %v2699_v14 = vpop.permute.xlu1 %2698 }
 0x7d3   : > { %v2701_v61 = vadd.f32 %v2699_v14, %v5620_v31  ;;  %v2702_v56 = vadd.f32 %v2699_v14, %v5623_v29  ;;  %2888 = sbr.rel (!%p5914_p9) target bundleno = 2016 (0x7e0), region = 180 }
 0x7d5   : > { %v2876_v6 = vadd.f32 %v2872_v44, %v2701_v61  ;;  %v2877_v54 = vadd.f32 %v2873_v55, %v2702_v56 }
 0x7d7   : > { %2880 = vst [vmem:[%s923_s6 + $0x10] sm:$0xff] %v2876_v6  ;;  %2881 = vst [vmem:[%s923_s6 + $0x18] sm:$0xff] %v2877_v54 }
 0x7d8   : > { %v2904_v40 = vld [vmem:[%s923_s6] sm:$0xff]  ;;  %v2906_v27 = vld [vmem:[%s923_s6 + $0x8] sm:$0xff] }
 0x7d9   : > { %2905 = vst [vmem:[%s2891_s3] sm:$0xff] %v2904_v40  ;;  %2907 = vst [vmem:[%s2891_s3 + $0x8] sm:$0xff] %v2906_v27 }
 0x7de   : > { %v2908_v51 = vld [vmem:[%s923_s6 + $0x10] sm:$0xff]  ;;  %v2910_v41 = vld [vmem:[%s923_s6 + $0x18] sm:$0xff] }
 0x7df   : > { %2909 = vst [vmem:[%s2891_s3 + $0x20] sm:$0xff] %v2908_v51  ;;  %2911 = vst [vmem:[%s2891_s3 + $0x28] sm:$0xff] %v2910_v41 }
 0x7e0 PF: > { %s5916_s24 = sld [smem:[#allocation40_spill]] }
 0x7e1   : > { %s5917_s4 = sld [smem:[#allocation39_spill]] }
 0x7e2   : > { %s5918_s30 = sld [smem:[#allocation41_spill]] }
 0x7e6   : > { %p39_p7 = scmp.ge.s32.totalorder %s5916_s24, 4  }
 0x7e8   :  { %41 = sbr.rel (!%p39_p7) target bundleno = 21 (0x15), region = 262 }
 0x7ed   :  { %2927 = vsyncpa [#allocation4], 1 }
 0x7ee   :  { %2929 = vsyncpa [#allocation4 + $0x1], 1 }
 0x7ef   :  { %2930 = vsyncpa [#allocation6], 1 }
 0x7f0   :  { %2931 = vsyncpa [#allocation9], 1 }
 0x7f1   :  { %2932 = vsyncpa [#allocation12], 1 }
 0x7f2   :  { %2933 = vsyncpa [#allocation15], 1 }
 0x7f3   :  { %2934 = vsyncpa [#allocation18], 1 }
 0x7f4   :  { %2935 = vsyncpa [#allocation21], 1 }
 0x7f5   :  { %2936 = vsyncpa [#allocation24], 1 }
 0x7f6   :  { %2937 = vsyncpa [#allocation27], 1 }

</bundles_post_ra>
